<compile_context>
chip_gen: v5e
topology: v5e:2x2
jax: 0.10.0
libtpu: 0.0.40
codegen_flags: <defaults>
</compile_context>

<pallas_src>
import math
import functools

import jax
import jax.numpy as jnp
from jax.experimental import pallas as pl
from jax.experimental.pallas import tpu as pltpu

NUM_GROUPS = 32   # GroupNorm(num_groups=32, ...)
EPS = 1e-6


def _pick_tile(n, candidates):
    for c in candidates:
        if n % c == 0:
            return c
    return n


# --------------------------------------------------------------------------
# Kernel A: GroupNorm statistics  ->  per-channel scale / shift columns
# --------------------------------------------------------------------------
def gn_stats_kernel(x_ref, gamma_ref, beta_ref, gmap_ref, gmapt_ref,
                    scale_ref, shift_ref, sum_sc, sumsq_sc, *, n, eps):
    t = pl.program_id(1)

    @pl.when(t == 0)
    def _():
        sum_sc[...] = jnp.zeros_like(sum_sc)
        sumsq_sc[...] = jnp.zeros_like(sumsq_sc)

    x = x_ref[0]                                            # (C, ts) f32
    sum_sc[...] += jnp.sum(x, axis=1, keepdims=True)        # (C, 1)
    sumsq_sc[...] += jnp.sum(x * x, axis=1, keepdims=True)  # (C, 1)

    @pl.when(t == pl.num_programs(1) - 1)
    def _():
        gmap = gmap_ref[...]                                # (C, G) channel->group
        gmapt = gmapt_ref[...]                              # (G, C)
        inv_n = 1.0 / n
        sum_g = jnp.dot(gmapt, sum_sc[...], preferred_element_type=jnp.float32)
        sumsq_g = jnp.dot(gmapt, sumsq_sc[...], preferred_element_type=jnp.float32)
        mean_g = sum_g * inv_n
        # NOTE: single-pass E[x^2]-E[x]^2 in f32 (adequate for typical activation
        # magnitudes; a two-pass variant would require a second sweep over x).
        var_g = sumsq_g * inv_n - mean_g * mean_g
        mean_c = jnp.dot(gmap, mean_g, preferred_element_type=jnp.float32)   # (C,1)
        var_c = jnp.dot(gmap, var_g, preferred_element_type=jnp.float32)     # (C,1)
        sc = gamma_ref[...] * jax.lax.rsqrt(var_c + eps)                     # (C,1)
        scale_ref[0] = sc
        shift_ref[0] = beta_ref[...] - mean_c * sc


# --------------------------------------------------------------------------
# Kernel B: GN apply + fused [Q(scaled); V; K] 1x1-conv projection
# --------------------------------------------------------------------------
def gn_qkv_kernel(x_ref, scale_ref, shift_ref, w_ref, b_ref, qv_ref, kt_ref):
    C = x_ref.shape[1]
    h = x_ref[0] * scale_ref[0] + shift_ref[0]                     # (C, ts) f32
    qvk = jnp.dot(w_ref[...], h.astype(jnp.bfloat16),
                  preferred_element_type=jnp.float32) + b_ref[...]  # (3C, ts) f32
    # Q (already scaled by 1/sqrt(head_dim)) and V stay channel-major.
    qv_ref[0] = qvk[:2 * C, :].astype(jnp.bfloat16)
    # K is stored token-major so the attention kernel never transposes anything.
    kt_ref[0] = jnp.transpose(qvk[2 * C:, :]).astype(jnp.bfloat16)


# --------------------------------------------------------------------------
# Kernel C: flash attention (online softmax over KV tiles) + proj_out + residual
# --------------------------------------------------------------------------
def flash_attn_kernel(q_ref, v_ref, k_ref, xr_ref, wp_ref, bp_ref, o_ref,
                      acc_sc, m_sc, l_sc, *, heads):
    kv = pl.program_id(2)
    C, TQ = acc_sc.shape
    dh = C // heads

    @pl.when(kv == 0)
    def _():
        m_sc[...] = jnp.full_like(m_sc, -jnp.inf)
        l_sc[...] = jnp.zeros_like(l_sc)
        acc_sc[...] = jnp.zeros_like(acc_sc)

    qt = q_ref[0]          # (C, TQ)  bf16, channel-major, pre-scaled by 1/sqrt(dh)
    vt = v_ref[0]          # (C, TK)  bf16, channel-major
    kt = k_ref[0]          # (TK, C)  bf16, token-major

    for h in range(heads):                     # static, unrolled (heads is small)
        sl = slice(h * dh, (h + 1) * dh)
        q_h = qt[sl, :]                        # (dh, TQ) bf16
        k_h = kt[:, sl]                        # (TK, dh) bf16
        v_h = vt[sl, :]                        # (dh, TK) bf16

        # scores, transposed: (TK, TQ) = K_h @ Q_h  (MXU-native, no transposes)
        s = jnp.dot(k_h, q_h, preferred_element_type=jnp.float32)

        m_prev = m_sc[h]                                        # (1, TQ)
        m_cur = jnp.max(s, axis=0, keepdims=True)               # (1, TQ)
        m_new = jnp.maximum(m_prev, m_cur)
        alpha = jnp.exp(m_prev - m_new)                         # (1, TQ)
        p = jnp.exp(s - m_new)                                  # (TK, TQ) f32

        l_sc[h] = alpha * l_sc[h] + jnp.sum(p, axis=0, keepdims=True)
        pv = jnp.dot(v_h, p.astype(jnp.bfloat16),
                     preferred_element_type=jnp.float32)        # (dh, TQ)
        acc_sc[sl, :] = alpha * acc_sc[sl, :] + pv
        m_sc[h] = m_new

    @pl.when(kv == pl.num_programs(2) - 1)
    def _():
        # normalize each head by its softmax denominator (EUP approx reciprocal)
        for h in range(heads):
            sl = slice(h * dh, (h + 1) * dh)
            acc_sc[sl, :] = acc_sc[sl, :] * pl.reciprocal(l_sc[h], approx=True)
        attn = acc_sc[...].astype(jnp.bfloat16)                 # (C, TQ)
        proj = jnp.dot(wp_ref[...], attn,
                       preferred_element_type=jnp.float32)      # (C, TQ)
        o_ref[0] = proj + bp_ref[...] + xr_ref[0]               # bias + residual


# --------------------------------------------------------------------------
# Wrapper
# --------------------------------------------------------------------------
@functools.partial(jax.jit, static_argnames=("heads",))
def mem_efficient_attn_block(x_nchw, params, heads=4):
    B, C, H, W = x_nchw.shape
    HW = H * W
    G = NUM_GROUPS
    assert C % G == 0, "GroupNorm(32) requires C % 32 == 0"
    assert C % heads == 0
    dh = C // heads
    sm_scale = 1.0 / math.sqrt(dh)      # xformers default scale = 1/sqrt(head_dim)

    TS = _pick_tile(HW, (512, 256, 128))   # stats / projection HW tile
    TQ = _pick_tile(HW, (128,))            # flash query tile
    TK = TQ                                # flash kv tile
    # TODO(synk): HW not divisible by 128 falls back to a single whole-image tile;
    # padded-KV masking for ragged tiles is not implemented.

    x = x_nchw.reshape(B, C, HW).astype(jnp.float32)       # NCHW, free reshape only

    gamma_col = params["gamma"].reshape(C, 1).astype(jnp.float32)
    beta_col = params["beta"].reshape(C, 1).astype(jnp.float32)
    gmap = ((jnp.arange(C) // (C // G))[:, None] == jnp.arange(G)[None, :]
            ).astype(jnp.float32)                           # (C, G)
    gmapt = gmap.T                                          # (G, C)

    # fused, pre-ordered [Q(scaled); V; K] weights (out, in) -> used as the LHS of
    # channel-major matmuls, so no transposes are needed anywhere in the kernels.
    w_qvk = jnp.concatenate(
        [params["wq"] * sm_scale, params["wv"], params["wk"]], axis=0
    ).astype(jnp.bfloat16)                                                   # (3C, C)
    b_qvk = jnp.concatenate(
        [params["bq"] * sm_scale, params["bv"], params["bk"]]
    ).reshape(3 * C, 1).astype(jnp.float32)                                  # (3C, 1)
    w_p = params["wp"].astype(jnp.bfloat16)                                  # (C, C)
    b_p = params["bp"].reshape(C, 1).astype(jnp.float32)                     # (C, 1)

    n_per_group = float(HW * (C // G))

    # ---- Kernel A: GroupNorm statistics -> per-channel scale / shift ----
    scale, shift = pl.pallas_call(
        functools.partial(gn_stats_kernel, n=n_per_group, eps=EPS),
        out_shape=(jax.ShapeDtypeStruct((B, C, 1), jnp.float32),
                   jax.ShapeDtypeStruct((B, C, 1), jnp.float32)),
        grid=(B, HW // TS),
        in_specs=[
            pl.BlockSpec((1, C, TS), lambda b, t: (b, 0, t)),
            pl.BlockSpec((C, 1), lambda b, t: (0, 0)),
            pl.BlockSpec((C, 1), lambda b, t: (0, 0)),
            pl.BlockSpec((C, G), lambda b, t: (0, 0)),
            pl.BlockSpec((G, C), lambda b, t: (0, 0)),
        ],
        out_specs=(pl.BlockSpec((1, C, 1), lambda b, t: (b, 0, 0)),
                   pl.BlockSpec((1, C, 1), lambda b, t: (b, 0, 0))),
        scratch_shapes=[pltpu.VMEM((C, 1), jnp.float32),
                        pltpu.VMEM((C, 1), jnp.float32)],
        compiler_params=pltpu.CompilerParams(
            dimension_semantics=("parallel", "arbitrary")),
    )(x, gamma_col, beta_col, gmap, gmapt)

    # ---- Kernel B: GN apply + fused QKV 1x1 conv ----
    qv, kt = pl.pallas_call(
        gn_qkv_kernel,
        out_shape=(jax.ShapeDtypeStruct((B, 2 * C, HW), jnp.bfloat16),   # [Q; V]
                   jax.ShapeDtypeStruct((B, HW, C), jnp.bfloat16)),      # K token-major
        grid=(B, HW // TS),
        in_specs=[
            pl.BlockSpec((1, C, TS), lambda b, t: (b, 0, t)),
            pl.BlockSpec((1, C, 1), lambda b, t: (b, 0, 0)),
            pl.BlockSpec((1, C, 1), lambda b, t: (b, 0, 0)),
            pl.BlockSpec((3 * C, C), lambda b, t: (0, 0)),
            pl.BlockSpec((3 * C, 1), lambda b, t: (0, 0)),
        ],
        out_specs=(pl.BlockSpec((1, 2 * C, TS), lambda b, t: (b, 0, t)),
                   pl.BlockSpec((1, TS, C), lambda b, t: (b, t, 0))),
        compiler_params=pltpu.CompilerParams(
            dimension_semantics=("parallel", "parallel"),
            vmem_limit_bytes=48 * 1024 * 1024),
    )(x, scale, shift, w_qvk, b_qvk)

    # ---- Kernel C: flash attention + proj_out + residual ----
    out = pl.pallas_call(
        functools.partial(flash_attn_kernel, heads=heads),
        out_shape=jax.ShapeDtypeStruct((B, C, HW), jnp.float32),
        grid=(B, HW // TQ, HW // TK),
        in_specs=[
            pl.BlockSpec((1, C, TQ), lambda b, qi, kv: (b, 0, qi)),   # Q  (rows 0..C)
            pl.BlockSpec((1, C, TK), lambda b, qi, kv: (b, 1, kv)),   # V  (rows C..2C)
            pl.BlockSpec((1, TK, C), lambda b, qi, kv: (b, kv, 0)),   # K  token-major
            pl.BlockSpec((1, C, TQ), lambda b, qi, kv: (b, 0, qi)),   # residual x
            pl.BlockSpec((C, C), lambda b, qi, kv: (0, 0)),           # Wp
            pl.BlockSpec((C, 1), lambda b, qi, kv: (0, 0)),           # bp
        ],
        out_specs=pl.BlockSpec((1, C, TQ), lambda b, qi, kv: (b, 0, qi)),
        scratch_shapes=[pltpu.VMEM((C, TQ), jnp.float32),         # acc (all heads)
                        pltpu.VMEM((heads, 1, TQ), jnp.float32),  # running max
                        pltpu.VMEM((heads, 1, TQ), jnp.float32)], # running denom
        compiler_params=pltpu.CompilerParams(
            dimension_semantics=("parallel", "parallel", "arbitrary"),
            vmem_limit_bytes=48 * 1024 * 1024),
    )(qv, qv, kt, x, w_p, b_p)

    return out.reshape(B, C, H, W)


# --------------------------------------------------------------------------
# Pure-JAX reference mirroring the PyTorch module
# --------------------------------------------------------------------------
def reference_forward(x, params, heads=4):
    B, C, H, W = x.shape
    G = NUM_GROUPS
    dh = C // heads
    xg = x.reshape(B, G, C // G, H, W)
    mean = xg.mean(axis=(2, 3, 4), keepdims=True)
    var = xg.var(axis=(2, 3, 4), keepdims=True)
    xn = ((xg - mean) / jnp.sqrt(var + EPS)).reshape(B, C, H, W)
    hn = xn * params["gamma"].reshape(1, C, 1, 1) + params["beta"].reshape(1, C, 1, 1)

    t = jnp.transpose(hn.reshape(B, C, H * W), (0, 2, 1))   # (B, HW, C)
    q = t @ params["wq"].T + params["bq"]
    k = t @ params["wk"].T + params["bk"]
    v = t @ params["wv"].T + params["bv"]

    def split(a):
        return jnp.transpose(a.reshape(B, H * W, heads, dh), (0, 2, 1, 3))

    qh, kh, vh = split(q), split(k), split(v)
    s = jnp.einsum("bhqc,bhkc->bhqk", qh, kh) / jnp.sqrt(dh)
    p = jax.nn.softmax(s, axis=-1)
    oh = jnp.einsum("bhqk,bhkc->bhqc", p, vh)               # (B, heads, HW, dh)
    o = jnp.transpose(oh, (0, 2, 1, 3)).reshape(B, H * W, C)
    o = o @ params["wp"].T + params["bp"]
    o = jnp.transpose(o, (0, 2, 1)).reshape(B, C, H, W)
    return x + o


if __name__ == "__main__":
    B, C, H, W = 2, 32, 16, 16       # C must be divisible by 32 (GroupNorm groups)
    heads = 4
    key = jax.random.PRNGKey(0)
    ks = jax.random.split(key, 11)

    x = jax.random.normal(ks[0], (B, C, H, W), jnp.float32)
    params = {
        "gamma": 1.0 + 0.1 * jax.random.normal(ks[1], (C,), jnp.float32),
        "beta": 0.1 * jax.random.normal(ks[2], (C,), jnp.float32),
        "wq": 0.1 * jax.random.normal(ks[3], (C, C), jnp.float32),
        "bq": 0.1 * jax.random.normal(ks[4], (C,), jnp.float32),
        "wk": 0.1 * jax.random.normal(ks[5], (C, C), jnp.float32),
        "bk": 0.1 * jax.random.normal(ks[6], (C,), jnp.float32),
        "wv": 0.1 * jax.random.normal(ks[7], (C, C), jnp.float32),
        "bv": 0.1 * jax.random.normal(ks[8], (C,), jnp.float32),
        "wp": 0.1 * jax.random.normal(ks[9], (C, C), jnp.float32),
        "bp": 0.1 * jax.random.normal(ks[10], (C,), jnp.float32),
    }

    out = jax.block_until_ready(mem_efficient_attn_block(x, params, heads=heads))
    ref = reference_forward(x, params, heads=heads)

    assert out.shape == x.shape, (out.shape, x.shape)
    max_err = float(jnp.max(jnp.abs(out - ref)))
    assert max_err < 5e-2, f"max abs error too large: {max_err}"
    print("KERNEL_OK")
</pallas_src>

<mosaic_0001>
module attributes {stable_mosaic.version = 11 : i64} {
  func.func @gn_stats_kernel(%arg0: i32, %arg1: i32, %arg2: memref<1x32x256xf32, #tpu.memory_space<vmem>>, %arg3: memref<32x1xf32, #tpu.memory_space<vmem>>, %arg4: memref<32x1xf32, #tpu.memory_space<vmem>>, %arg5: memref<32x32xf32, #tpu.memory_space<vmem>>, %arg6: memref<32x32xf32, #tpu.memory_space<vmem>>, %arg7: memref<1x32x1xf32, #tpu.memory_space<vmem>>, %arg8: memref<1x32x1xf32, #tpu.memory_space<vmem>>, %arg9: memref<32x1xf32, #tpu.memory_space<vmem>>, %arg10: memref<32x1xf32, #tpu.memory_space<vmem>>) attributes {dimension_semantics = [#tpu.dimension_semantics<parallel>, #tpu.dimension_semantics<arbitrary>], iteration_bounds = array<i64: 2, 1>, scalar_prefetch = 0 : i64, scratch_operands = 2 : i64, tpu.core_type = #tpu.core_type<tc>, window_params = [{transform_indices = @transform_0, window_bounds = array<i64: 1, 32, 256>}, {pipeline_mode = #tpu.pipeline_mode<synchronous>, transform_indices = @transform_1, window_bounds = array<i64: 32, 1>}, {pipeline_mode = #tpu.pipeline_mode<synchronous>, transform_indices = @transform_2, window_bounds = array<i64: 32, 1>}, {pipeline_mode = #tpu.pipeline_mode<synchronous>, transform_indices = @transform_3, window_bounds = array<i64: 32, 32>}, {pipeline_mode = #tpu.pipeline_mode<synchronous>, transform_indices = @transform_4, window_bounds = array<i64: 32, 32>}, {transform_indices = @transform_5, window_bounds = array<i64: 1, 32, 1>}, {transform_indices = @transform_6, window_bounds = array<i64: 1, 32, 1>}]} {
    %c0_i32 = arith.constant 0 : i32
    %0 = arith.cmpi eq, %arg1, %c0_i32 : i32
    %1 = arith.extui %0 : i1 to i32
    %c0_i32_0 = arith.constant 0 : i32
    %2 = arith.cmpi ne, %1, %c0_i32_0 : i32
    scf.if %2 {
      %cst_14 = arith.constant 0.000000e+00 : f32
      %19 = vector.broadcast %cst_14 : f32 to vector<32x1xf32>
      %c0_15 = arith.constant 0 : index
      %c0_16 = arith.constant 0 : index
      %20 = vector.load %arg9[%c0_15, %c0_16] : memref<32x1xf32, #tpu.memory_space<vmem>>, vector<32x1xf32>
      tpu.vector_store %arg9[%c0_15, %c0_16], %19 {strides = array<i32>} : memref<32x1xf32, #tpu.memory_space<vmem>>, vector<32x1xf32>,
      %cst_17 = arith.constant 0.000000e+00 : f32
      %21 = vector.broadcast %cst_17 : f32 to vector<32x1xf32>
      %c0_18 = arith.constant 0 : index
      %c0_19 = arith.constant 0 : index
      %22 = vector.load %arg10[%c0_18, %c0_19] : memref<32x1xf32, #tpu.memory_space<vmem>>, vector<32x1xf32>
      tpu.vector_store %arg10[%c0_18, %c0_19], %21 {strides = array<i32>} : memref<32x1xf32, #tpu.memory_space<vmem>>, vector<32x1xf32>,
    } else {
    }
    %c0 = arith.constant 0 : index
    %c0_1 = arith.constant 0 : index
    %c0_2 = arith.constant 0 : index
    %3 = vector.load %arg2[%c0, %c0_1, %c0_2] : memref<1x32x256xf32, #tpu.memory_space<vmem>>, vector<1x32x256xf32>
    %4 = vector.shape_cast %3 : vector<1x32x256xf32> to vector<32x256xf32>
    %c0_3 = arith.constant 0 : index
    %c0_4 = arith.constant 0 : index
    %5 = vector.load %arg9[%c0_3, %c0_4] : memref<32x1xf32, #tpu.memory_space<vmem>>, vector<32x1xf32>
    %cst = arith.constant dense<0.000000e+00> : vector<32xf32>
    %6 = vector.multi_reduction <add>, %4, %cst [1] : vector<32x256xf32> to vector<32xf32>
    %7 = vector.shape_cast %6 : vector<32xf32> to vector<32x1xf32>
    %8 = arith.addf %5, %7 : vector<32x1xf32>
    %c0_5 = arith.constant 0 : index
    %c0_6 = arith.constant 0 : index
    %9 = vector.load %arg9[%c0_5, %c0_6] : memref<32x1xf32, #tpu.memory_space<vmem>>, vector<32x1xf32>
    tpu.vector_store %arg9[%c0_5, %c0_6], %8 {strides = array<i32>} : memref<32x1xf32, #tpu.memory_space<vmem>>, vector<32x1xf32>,
    %c0_7 = arith.constant 0 : index
    %c0_8 = arith.constant 0 : index
    %10 = vector.load %arg10[%c0_7, %c0_8] : memref<32x1xf32, #tpu.memory_space<vmem>>, vector<32x1xf32>
    %11 = arith.mulf %4, %4 : vector<32x256xf32>
    %cst_9 = arith.constant dense<0.000000e+00> : vector<32xf32>
    %12 = vector.multi_reduction <add>, %11, %cst_9 [1] : vector<32x256xf32> to vector<32xf32>
    %13 = vector.shape_cast %12 : vector<32xf32> to vector<32x1xf32>
    %14 = arith.addf %10, %13 : vector<32x1xf32>
    %c0_10 = arith.constant 0 : index
    %c0_11 = arith.constant 0 : index
    %15 = vector.load %arg10[%c0_10, %c0_11] : memref<32x1xf32, #tpu.memory_space<vmem>>, vector<32x1xf32>
    tpu.vector_store %arg10[%c0_10, %c0_11], %14 {strides = array<i32>} : memref<32x1xf32, #tpu.memory_space<vmem>>, vector<32x1xf32>,
    %c0_i32_12 = arith.constant 0 : i32
    %16 = arith.cmpi eq, %arg1, %c0_i32_12 : i32
    %17 = arith.extui %16 : i1 to i32
    %c0_i32_13 = arith.constant 0 : i32
    %18 = arith.cmpi ne, %17, %c0_i32_13 : i32
    scf.if %18 {
      %c0_14 = arith.constant 0 : index
      %c0_15 = arith.constant 0 : index
      %19 = vector.load %arg5[%c0_14, %c0_15] : memref<32x32xf32, #tpu.memory_space<vmem>>, vector<32x32xf32>
      %c0_16 = arith.constant 0 : index
      %c0_17 = arith.constant 0 : index
      %20 = vector.load %arg6[%c0_16, %c0_17] : memref<32x32xf32, #tpu.memory_space<vmem>>, vector<32x32xf32>
      %c0_18 = arith.constant 0 : index
      %c0_19 = arith.constant 0 : index
      %21 = vector.load %arg9[%c0_18, %c0_19] : memref<32x1xf32, #tpu.memory_space<vmem>>, vector<32x1xf32>
      %cst_20 = arith.constant dense<0.000000e+00> : vector<32x1xf32>
      %22 = tpu.matmul %20, %21, %cst_20 {dimension_numbers = #tpu.dot_dimension_numbers<[1], [0], [0], [1], [0, 0, 1, 1], [], []>} : vector<32x32xf32>, vector<32x1xf32>, vector<32x1xf32> -> vector<32x1xf32>
      %c0_21 = arith.constant 0 : index
      %c0_22 = arith.constant 0 : index
      %23 = vector.load %arg10[%c0_21, %c0_22] : memref<32x1xf32, #tpu.memory_space<vmem>>, vector<32x1xf32>
      %cst_23 = arith.constant dense<0.000000e+00> : vector<32x1xf32>
      %24 = tpu.matmul %20, %23, %cst_23 {dimension_numbers = #tpu.dot_dimension_numbers<[1], [0], [0], [1], [0, 0, 1, 1], [], []>} : vector<32x32xf32>, vector<32x1xf32>, vector<32x1xf32> -> vector<32x1xf32>
      %cst_24 = arith.constant 3.906250e-03 : f32
      %25 = vector.broadcast %cst_24 : f32 to vector<32x1xf32>
      %26 = arith.mulf %22, %25 : vector<32x1xf32>
      %cst_25 = arith.constant 3.906250e-03 : f32
      %27 = vector.broadcast %cst_25 : f32 to vector<32x1xf32>
      %28 = arith.mulf %24, %27 : vector<32x1xf32>
      %29 = arith.mulf %26, %26 : vector<32x1xf32>
      %30 = arith.subf %28, %29 : vector<32x1xf32>
      %cst_26 = arith.constant dense<0.000000e+00> : vector<32x1xf32>
      %31 = tpu.matmul %19, %26, %cst_26 {dimension_numbers = #tpu.dot_dimension_numbers<[1], [0], [0], [1], [0, 0, 1, 1], [], []>} : vector<32x32xf32>, vector<32x1xf32>, vector<32x1xf32> -> vector<32x1xf32>
      %cst_27 = arith.constant dense<0.000000e+00> : vector<32x1xf32>
      %32 = tpu.matmul %19, %30, %cst_27 {dimension_numbers = #tpu.dot_dimension_numbers<[1], [0], [0], [1], [0, 0, 1, 1], [], []>} : vector<32x32xf32>, vector<32x1xf32>, vector<32x1xf32> -> vector<32x1xf32>
      %c0_28 = arith.constant 0 : index
      %c0_29 = arith.constant 0 : index
      %33 = vector.load %arg3[%c0_28, %c0_29] : memref<32x1xf32, #tpu.memory_space<vmem>>, vector<32x1xf32>
      %cst_30 = arith.constant 9.99999997E-7 : f32
      %34 = vector.broadcast %cst_30 : f32 to vector<32x1xf32>
      %35 = arith.addf %32, %34 : vector<32x1xf32>
      %36 = math.rsqrt %35 : vector<32x1xf32>
      %37 = arith.mulf %33, %36 : vector<32x1xf32>
      %c0_31 = arith.constant 0 : index
      %c0_32 = arith.constant 0 : index
      %c0_33 = arith.constant 0 : index
      %38 = vector.load %arg7[%c0_31, %c0_32, %c0_33] : memref<1x32x1xf32, #tpu.memory_space<vmem>>, vector<1x32x1xf32>
      %39 = vector.shape_cast %38 : vector<1x32x1xf32> to vector<32x1xf32>
      %40 = vector.shape_cast %37 : vector<32x1xf32> to vector<1x32x1xf32>
      tpu.vector_store %arg7[%c0_31, %c0_32, %c0_33], %40 {strides = array<i32>} : memref<1x32x1xf32, #tpu.memory_space<vmem>>, vector<1x32x1xf32>,
      %c0_34 = arith.constant 0 : index
      %c0_35 = arith.constant 0 : index
      %41 = vector.load %arg4[%c0_34, %c0_35] : memref<32x1xf32, #tpu.memory_space<vmem>>, vector<32x1xf32>
      %42 = arith.mulf %31, %37 : vector<32x1xf32>
      %43 = arith.subf %41, %42 : vector<32x1xf32>
      %c0_36 = arith.constant 0 : index
      %c0_37 = arith.constant 0 : index
      %c0_38 = arith.constant 0 : index
      %44 = vector.load %arg8[%c0_36, %c0_37, %c0_38] : memref<1x32x1xf32, #tpu.memory_space<vmem>>, vector<1x32x1xf32>
      %45 = vector.shape_cast %44 : vector<1x32x1xf32> to vector<32x1xf32>
      %46 = vector.shape_cast %43 : vector<32x1xf32> to vector<1x32x1xf32>
      tpu.vector_store %arg8[%c0_36, %c0_37, %c0_38], %46 {strides = array<i32>} : memref<1x32x1xf32, #tpu.memory_space<vmem>>, vector<1x32x1xf32>,
    } else {
    }
    return
  }
  func.func @transform_0(%arg0: i32, %arg1: i32) -> (i32, i32, i32) {
    %c0_i32 = arith.constant 0 : i32
    %c0_i32_0 = arith.constant 0 : i32
    return %arg0, %c0_i32, %arg1 : i32, i32, i32
  }
  func.func @transform_1(%arg0: i32, %arg1: i32) -> (i32, i32) {
    %c0_i32 = arith.constant 0 : i32
    %c0_i32_0 = arith.constant 0 : i32
    %c0_i32_1 = arith.constant 0 : i32
    return %c0_i32, %c0_i32_0 : i32, i32
  }
  func.func @transform_2(%arg0: i32, %arg1: i32) -> (i32, i32) {
    %c0_i32 = arith.constant 0 : i32
    %c0_i32_0 = arith.constant 0 : i32
    %c0_i32_1 = arith.constant 0 : i32
    return %c0_i32, %c0_i32_0 : i32, i32
  }
  func.func @transform_3(%arg0: i32, %arg1: i32) -> (i32, i32) {
    %c0_i32 = arith.constant 0 : i32
    %c0_i32_0 = arith.constant 0 : i32
    %c0_i32_1 = arith.constant 0 : i32
    return %c0_i32, %c0_i32_0 : i32, i32
  }
  func.func @transform_4(%arg0: i32, %arg1: i32) -> (i32, i32) {
    %c0_i32 = arith.constant 0 : i32
    %c0_i32_0 = arith.constant 0 : i32
    %c0_i32_1 = arith.constant 0 : i32
    return %c0_i32, %c0_i32_0 : i32, i32
  }
  func.func @transform_5(%arg0: i32, %arg1: i32) -> (i32, i32, i32) {
    %c0_i32 = arith.constant 0 : i32
    %c0_i32_0 = arith.constant 0 : i32
    %c0_i32_1 = arith.constant 0 : i32
    return %arg0, %c0_i32, %c0_i32_0 : i32, i32, i32
  }
  func.func @transform_6(%arg0: i32, %arg1: i32) -> (i32, i32, i32) {
    %c0_i32 = arith.constant 0 : i32
    %c0_i32_0 = arith.constant 0 : i32
    %c0_i32_1 = arith.constant 0 : i32
    return %arg0, %c0_i32, %c0_i32_0 : i32, i32, i32
  }
}

module attributes {stable_mosaic.version = 11 : i64} {
  func.func @gn_qkv_kernel(%arg0: i32, %arg1: i32, %arg2: memref<1x32x256xf32, #tpu.memory_space<vmem>>, %arg3: memref<1x32x1xf32, #tpu.memory_space<vmem>>, %arg4: memref<1x32x1xf32, #tpu.memory_space<vmem>>, %arg5: memref<96x32xbf16, #tpu.memory_space<vmem>>, %arg6: memref<96x1xf32, #tpu.memory_space<vmem>>, %arg7: memref<1x64x256xbf16, #tpu.memory_space<vmem>>, %arg8: memref<1x256x32xbf16, #tpu.memory_space<vmem>>) attributes {dimension_semantics = [#tpu.dimension_semantics<parallel>, #tpu.dimension_semantics<parallel>], iteration_bounds = array<i64: 2, 1>, scalar_prefetch = 0 : i64, scratch_operands = 0 : i64, tpu.core_type = #tpu.core_type<tc>, window_params = [{transform_indices = @transform_0, window_bounds = array<i64: 1, 32, 256>}, {transform_indices = @transform_1, window_bounds = array<i64: 1, 32, 1>}, {transform_indices = @transform_2, window_bounds = array<i64: 1, 32, 1>}, {pipeline_mode = #tpu.pipeline_mode<synchronous>, transform_indices = @transform_3, window_bounds = array<i64: 96, 32>}, {pipeline_mode = #tpu.pipeline_mode<synchronous>, transform_indices = @transform_4, window_bounds = array<i64: 96, 1>}, {transform_indices = @transform_5, window_bounds = array<i64: 1, 64, 256>}, {transform_indices = @transform_6, window_bounds = array<i64: 1, 256, 32>}]} {
    %c0 = arith.constant 0 : index
    %c0_0 = arith.constant 0 : index
    %c0_1 = arith.constant 0 : index
    %0 = vector.load %arg2[%c0, %c0_0, %c0_1] : memref<1x32x256xf32, #tpu.memory_space<vmem>>, vector<1x32x256xf32>
    %1 = vector.shape_cast %0 : vector<1x32x256xf32> to vector<32x256xf32>
    %c0_2 = arith.constant 0 : index
    %c0_3 = arith.constant 0 : index
    %c0_4 = arith.constant 0 : index
    %2 = vector.load %arg3[%c0_2, %c0_3, %c0_4] : memref<1x32x1xf32, #tpu.memory_space<vmem>>, vector<1x32x1xf32>
    %3 = vector.shape_cast %2 : vector<1x32x1xf32> to vector<32x1xf32>
    %4 = vector.broadcast %3 : vector<32x1xf32> to vector<32x256xf32>
    %5 = arith.mulf %1, %4 : vector<32x256xf32>
    %c0_5 = arith.constant 0 : index
    %c0_6 = arith.constant 0 : index
    %c0_7 = arith.constant 0 : index
    %6 = vector.load %arg4[%c0_5, %c0_6, %c0_7] : memref<1x32x1xf32, #tpu.memory_space<vmem>>, vector<1x32x1xf32>
    %7 = vector.shape_cast %6 : vector<1x32x1xf32> to vector<32x1xf32>
    %8 = vector.broadcast %7 : vector<32x1xf32> to vector<32x256xf32>
    %9 = arith.addf %5, %8 : vector<32x256xf32>
    %c0_8 = arith.constant 0 : index
    %c0_9 = arith.constant 0 : index
    %10 = vector.load %arg5[%c0_8, %c0_9] : memref<96x32xbf16, #tpu.memory_space<vmem>>, vector<96x32xbf16>
    %11 = arith.truncf %9 : vector<32x256xf32> to vector<32x256xbf16>
    %cst = arith.constant dense<0.000000e+00> : vector<96x256xf32>
    %12 = tpu.matmul %10, %11, %cst {dimension_numbers = #tpu.dot_dimension_numbers<[1], [0], [0], [1], [0, 0, 1, 1], [], []>} : vector<96x32xbf16>, vector<32x256xbf16>, vector<96x256xf32> -> vector<96x256xf32>
    %c0_10 = arith.constant 0 : index
    %c0_11 = arith.constant 0 : index
    %13 = vector.load %arg6[%c0_10, %c0_11] : memref<96x1xf32, #tpu.memory_space<vmem>>, vector<96x1xf32>
    %14 = vector.broadcast %13 : vector<96x1xf32> to vector<96x256xf32>
    %15 = arith.addf %12, %14 : vector<96x256xf32>
    %16 = vector.extract_strided_slice %15 {offsets = [0, 0], sizes = [64, 256], strides = [1, 1]} : vector<96x256xf32> to vector<64x256xf32>
    %17 = arith.truncf %16 : vector<64x256xf32> to vector<64x256xbf16>
    %c0_12 = arith.constant 0 : index
    %c0_13 = arith.constant 0 : index
    %c0_14 = arith.constant 0 : index
    %18 = vector.load %arg7[%c0_12, %c0_13, %c0_14] : memref<1x64x256xbf16, #tpu.memory_space<vmem>>, vector<1x64x256xbf16>
    %19 = vector.shape_cast %18 : vector<1x64x256xbf16> to vector<64x256xbf16>
    %20 = vector.shape_cast %17 : vector<64x256xbf16> to vector<1x64x256xbf16>
    tpu.vector_store %arg7[%c0_12, %c0_13, %c0_14], %20 {strides = array<i32>} : memref<1x64x256xbf16, #tpu.memory_space<vmem>>, vector<1x64x256xbf16>,
    %21 = vector.extract_strided_slice %15 {offsets = [64, 0], sizes = [32, 256], strides = [1, 1]} : vector<96x256xf32> to vector<32x256xf32>
    %22 = tpu.transpose %21, [1, 0] : vector<32x256xf32> -> vector<256x32xf32>
    %23 = arith.truncf %22 : vector<256x32xf32> to vector<256x32xbf16>
    %c0_15 = arith.constant 0 : index
    %c0_16 = arith.constant 0 : index
    %c0_17 = arith.constant 0 : index
    %24 = vector.load %arg8[%c0_15, %c0_16, %c0_17] : memref<1x256x32xbf16, #tpu.memory_space<vmem>>, vector<1x256x32xbf16>
    %25 = vector.shape_cast %24 : vector<1x256x32xbf16> to vector<256x32xbf16>
    %26 = vector.shape_cast %23 : vector<256x32xbf16> to vector<1x256x32xbf16>
    tpu.vector_store %arg8[%c0_15, %c0_16, %c0_17], %26 {strides = array<i32>} : memref<1x256x32xbf16, #tpu.memory_space<vmem>>, vector<1x256x32xbf16>,
    return
  }
  func.func @transform_0(%arg0: i32, %arg1: i32) -> (i32, i32, i32) {
    %c0_i32 = arith.constant 0 : i32
    %c0_i32_0 = arith.constant 0 : i32
    return %arg0, %c0_i32, %arg1 : i32, i32, i32
  }
  func.func @transform_1(%arg0: i32, %arg1: i32) -> (i32, i32, i32) {
    %c0_i32 = arith.constant 0 : i32
    %c0_i32_0 = arith.constant 0 : i32
    %c0_i32_1 = arith.constant 0 : i32
    return %arg0, %c0_i32, %c0_i32_0 : i32, i32, i32
  }
  func.func @transform_2(%arg0: i32, %arg1: i32) -> (i32, i32, i32) {
    %c0_i32 = arith.constant 0 : i32
    %c0_i32_0 = arith.constant 0 : i32
    %c0_i32_1 = arith.constant 0 : i32
    return %arg0, %c0_i32, %c0_i32_0 : i32, i32, i32
  }
  func.func @transform_3(%arg0: i32, %arg1: i32) -> (i32, i32) {
    %c0_i32 = arith.constant 0 : i32
    %c0_i32_0 = arith.constant 0 : i32
    %c0_i32_1 = arith.constant 0 : i32
    return %c0_i32, %c0_i32_0 : i32, i32
  }
  func.func @transform_4(%arg0: i32, %arg1: i32) -> (i32, i32) {
    %c0_i32 = arith.constant 0 : i32
    %c0_i32_0 = arith.constant 0 : i32
    %c0_i32_1 = arith.constant 0 : i32
    return %c0_i32, %c0_i32_0 : i32, i32
  }
  func.func @transform_5(%arg0: i32, %arg1: i32) -> (i32, i32, i32) {
    %c0_i32 = arith.constant 0 : i32
    %c0_i32_0 = arith.constant 0 : i32
    return %arg0, %c0_i32, %arg1 : i32, i32, i32
  }
  func.func @transform_6(%arg0: i32, %arg1: i32) -> (i32, i32, i32) {
    %c0_i32 = arith.constant 0 : i32
    %c0_i32_0 = arith.constant 0 : i32
    return %arg0, %arg1, %c0_i32 : i32, i32, i32
  }
}

module attributes {stable_mosaic.version = 11 : i64} {
  func.func @flash_attn_kernel(%arg0: i32, %arg1: i32, %arg2: i32, %arg3: memref<1x32x128xbf16, #tpu.memory_space<vmem>>, %arg4: memref<1x32x128xbf16, #tpu.memory_space<vmem>>, %arg5: memref<1x128x32xbf16, #tpu.memory_space<vmem>>, %arg6: memref<1x32x128xf32, #tpu.memory_space<vmem>>, %arg7: memref<32x32xbf16, #tpu.memory_space<vmem>>, %arg8: memref<32x1xf32, #tpu.memory_space<vmem>>, %arg9: memref<1x32x128xf32, #tpu.memory_space<vmem>>, %arg10: memref<32x128xf32, #tpu.memory_space<vmem>>, %arg11: memref<4x1x128xf32, #tpu.memory_space<vmem>>, %arg12: memref<4x1x128xf32, #tpu.memory_space<vmem>>) attributes {dimension_semantics = [#tpu.dimension_semantics<parallel>, #tpu.dimension_semantics<parallel>, #tpu.dimension_semantics<arbitrary>], iteration_bounds = array<i64: 2, 2, 2>, scalar_prefetch = 0 : i64, scratch_operands = 3 : i64, tpu.core_type = #tpu.core_type<tc>, window_params = [{transform_indices = @transform_0, window_bounds = array<i64: 1, 32, 128>}, {transform_indices = @transform_1, window_bounds = array<i64: 1, 32, 128>}, {transform_indices = @transform_2, window_bounds = array<i64: 1, 128, 32>}, {transform_indices = @transform_3, window_bounds = array<i64: 1, 32, 128>}, {pipeline_mode = #tpu.pipeline_mode<synchronous>, transform_indices = @transform_4, window_bounds = array<i64: 32, 32>}, {pipeline_mode = #tpu.pipeline_mode<synchronous>, transform_indices = @transform_5, window_bounds = array<i64: 32, 1>}, {transform_indices = @transform_6, window_bounds = array<i64: 1, 32, 128>}]} {
    %c0_i32 = arith.constant 0 : i32
    %0 = arith.cmpi eq, %arg2, %c0_i32 : i32
    %1 = arith.extui %0 : i1 to i32
    %c0_i32_0 = arith.constant 0 : i32
    %2 = arith.cmpi ne, %1, %c0_i32_0 : i32
    scf.if %2 {
      %cst_83 = arith.constant 0xFF800000 : f32
      %144 = vector.broadcast %cst_83 : f32 to vector<4x1x128xf32>
      %c0_84 = arith.constant 0 : index
      %c0_85 = arith.constant 0 : index
      %c0_86 = arith.constant 0 : index
      %145 = vector.load %arg11[%c0_84, %c0_85, %c0_86] : memref<4x1x128xf32, #tpu.memory_space<vmem>>, vector<4x1x128xf32>
      tpu.vector_store %arg11[%c0_84, %c0_85, %c0_86], %144 {strides = array<i32>} : memref<4x1x128xf32, #tpu.memory_space<vmem>>, vector<4x1x128xf32>,
      %cst_87 = arith.constant 0.000000e+00 : f32
      %146 = vector.broadcast %cst_87 : f32 to vector<4x1x128xf32>
      %c0_88 = arith.constant 0 : index
      %c0_89 = arith.constant 0 : index
      %c0_90 = arith.constant 0 : index
      %147 = vector.load %arg12[%c0_88, %c0_89, %c0_90] : memref<4x1x128xf32, #tpu.memory_space<vmem>>, vector<4x1x128xf32>
      tpu.vector_store %arg12[%c0_88, %c0_89, %c0_90], %146 {strides = array<i32>} : memref<4x1x128xf32, #tpu.memory_space<vmem>>, vector<4x1x128xf32>,
      %cst_91 = arith.constant 0.000000e+00 : f32
      %148 = vector.broadcast %cst_91 : f32 to vector<32x128xf32>
      %c0_92 = arith.constant 0 : index
      %c0_93 = arith.constant 0 : index
      %149 = vector.load %arg10[%c0_92, %c0_93] : memref<32x128xf32, #tpu.memory_space<vmem>>, vector<32x128xf32>
      tpu.vector_store %arg10[%c0_92, %c0_93], %148 {strides = array<i32>} : memref<32x128xf32, #tpu.memory_space<vmem>>, vector<32x128xf32>,
    } else {
    }
    %c0 = arith.constant 0 : index
    %c0_1 = arith.constant 0 : index
    %c0_2 = arith.constant 0 : index
    %3 = vector.load %arg3[%c0, %c0_1, %c0_2] : memref<1x32x128xbf16, #tpu.memory_space<vmem>>, vector<1x32x128xbf16>
    %4 = vector.shape_cast %3 : vector<1x32x128xbf16> to vector<32x128xbf16>
    %c0_3 = arith.constant 0 : index
    %c0_4 = arith.constant 0 : index
    %c0_5 = arith.constant 0 : index
    %5 = vector.load %arg4[%c0_3, %c0_4, %c0_5] : memref<1x32x128xbf16, #tpu.memory_space<vmem>>, vector<1x32x128xbf16>
    %6 = vector.shape_cast %5 : vector<1x32x128xbf16> to vector<32x128xbf16>
    %c0_6 = arith.constant 0 : index
    %c0_7 = arith.constant 0 : index
    %c0_8 = arith.constant 0 : index
    %7 = vector.load %arg5[%c0_6, %c0_7, %c0_8] : memref<1x128x32xbf16, #tpu.memory_space<vmem>>, vector<1x128x32xbf16>
    %8 = vector.shape_cast %7 : vector<1x128x32xbf16> to vector<128x32xbf16>
    %9 = vector.extract_strided_slice %4 {offsets = [0, 0], sizes = [8, 128], strides = [1, 1]} : vector<32x128xbf16> to vector<8x128xbf16>
    %10 = vector.extract_strided_slice %8 {offsets = [0, 0], sizes = [128, 8], strides = [1, 1]} : vector<128x32xbf16> to vector<128x8xbf16>
    %11 = vector.extract_strided_slice %6 {offsets = [0, 0], sizes = [8, 128], strides = [1, 1]} : vector<32x128xbf16> to vector<8x128xbf16>
    %cst = arith.constant dense<0.000000e+00> : vector<128x128xf32>
    %12 = tpu.matmul %10, %9, %cst {dimension_numbers = #tpu.dot_dimension_numbers<[1], [0], [0], [1], [0, 0, 1, 1], [], []>} : vector<128x8xbf16>, vector<8x128xbf16>, vector<128x128xf32> -> vector<128x128xf32>
    %c0_9 = arith.constant 0 : index
    %c0_10 = arith.constant 0 : index
    %c0_11 = arith.constant 0 : index
    %13 = vector.load %arg11[%c0_9, %c0_10, %c0_11] : memref<4x1x128xf32, #tpu.memory_space<vmem>>, vector<1x1x128xf32>
    %14 = vector.shape_cast %13 : vector<1x1x128xf32> to vector<1x128xf32>
    %cst_12 = arith.constant dense<0xFF800000> : vector<128xf32>
    %15 = vector.multi_reduction <maximumf>, %12, %cst_12 [0] : vector<128x128xf32> to vector<128xf32>
    %16 = vector.shape_cast %15 : vector<128xf32> to vector<1x128xf32>
    %17 = arith.maximumf %14, %16 : vector<1x128xf32>
    %18 = arith.subf %14, %17 : vector<1x128xf32>
    %19 = math.exp %18 : vector<1x128xf32>
    %20 = vector.broadcast %17 : vector<1x128xf32> to vector<128x128xf32>
    %21 = arith.subf %12, %20 : vector<128x128xf32>
    %22 = math.exp %21 : vector<128x128xf32>
    %c0_13 = arith.constant 0 : index
    %c0_14 = arith.constant 0 : index
    %c0_15 = arith.constant 0 : index
    %23 = vector.load %arg12[%c0_13, %c0_14, %c0_15] : memref<4x1x128xf32, #tpu.memory_space<vmem>>, vector<1x1x128xf32>
    %24 = vector.shape_cast %23 : vector<1x1x128xf32> to vector<1x128xf32>
    %25 = arith.mulf %19, %24 : vector<1x128xf32>
    %cst_16 = arith.constant dense<0.000000e+00> : vector<128xf32>
    %26 = vector.multi_reduction <add>, %22, %cst_16 [0] : vector<128x128xf32> to vector<128xf32>
    %27 = vector.shape_cast %26 : vector<128xf32> to vector<1x128xf32>
    %28 = arith.addf %25, %27 : vector<1x128xf32>
    %c0_17 = arith.constant 0 : index
    %c0_18 = arith.constant 0 : index
    %c0_19 = arith.constant 0 : index
    %29 = vector.load %arg12[%c0_17, %c0_18, %c0_19] : memref<4x1x128xf32, #tpu.memory_space<vmem>>, vector<1x1x128xf32>
    %30 = vector.shape_cast %29 : vector<1x1x128xf32> to vector<1x128xf32>
    %31 = vector.shape_cast %28 : vector<1x128xf32> to vector<1x1x128xf32>
    tpu.vector_store %arg12[%c0_17, %c0_18, %c0_19], %31 {strides = array<i32>} : memref<4x1x128xf32, #tpu.memory_space<vmem>>, vector<1x1x128xf32>,
    %32 = arith.truncf %22 : vector<128x128xf32> to vector<128x128xbf16>
    %cst_20 = arith.constant dense<0.000000e+00> : vector<8x128xf32>
    %33 = tpu.matmul %11, %32, %cst_20 {dimension_numbers = #tpu.dot_dimension_numbers<[1], [0], [0], [1], [0, 0, 1, 1], [], []>} : vector<8x128xbf16>, vector<128x128xbf16>, vector<8x128xf32> -> vector<8x128xf32>
    %c0_21 = arith.constant 0 : index
    %c0_22 = arith.constant 0 : index
    %34 = vector.load %arg10[%c0_21, %c0_22] : memref<32x128xf32, #tpu.memory_space<vmem>>, vector<8x128xf32>
    %35 = vector.broadcast %19 : vector<1x128xf32> to vector<8x128xf32>
    %36 = arith.mulf %35, %34 : vector<8x128xf32>
    %37 = arith.addf %36, %33 : vector<8x128xf32>
    %c0_23 = arith.constant 0 : index
    %c0_24 = arith.constant 0 : index
    %38 = vector.load %arg10[%c0_23, %c0_24] : memref<32x128xf32, #tpu.memory_space<vmem>>, vector<8x128xf32>
    tpu.vector_store %arg10[%c0_23, %c0_24], %37 {strides = array<i32>} : memref<32x128xf32, #tpu.memory_space<vmem>>, vector<8x128xf32>,
    %c0_25 = arith.constant 0 : index
    %c0_26 = arith.constant 0 : index
    %c0_27 = arith.constant 0 : index
    %39 = vector.load %arg11[%c0_25, %c0_26, %c0_27] : memref<4x1x128xf32, #tpu.memory_space<vmem>>, vector<1x1x128xf32>
    %40 = vector.shape_cast %39 : vector<1x1x128xf32> to vector<1x128xf32>
    %41 = vector.shape_cast %17 : vector<1x128xf32> to vector<1x1x128xf32>
    tpu.vector_store %arg11[%c0_25, %c0_26, %c0_27], %41 {strides = array<i32>} : memref<4x1x128xf32, #tpu.memory_space<vmem>>, vector<1x1x128xf32>,
    %42 = vector.extract_strided_slice %4 {offsets = [8, 0], sizes = [8, 128], strides = [1, 1]} : vector<32x128xbf16> to vector<8x128xbf16>
    %43 = vector.extract_strided_slice %8 {offsets = [0, 8], sizes = [128, 8], strides = [1, 1]} : vector<128x32xbf16> to vector<128x8xbf16>
    %44 = vector.extract_strided_slice %6 {offsets = [8, 0], sizes = [8, 128], strides = [1, 1]} : vector<32x128xbf16> to vector<8x128xbf16>
    %cst_28 = arith.constant dense<0.000000e+00> : vector<128x128xf32>
    %45 = tpu.matmul %43, %42, %cst_28 {dimension_numbers = #tpu.dot_dimension_numbers<[1], [0], [0], [1], [0, 0, 1, 1], [], []>} : vector<128x8xbf16>, vector<8x128xbf16>, vector<128x128xf32> -> vector<128x128xf32>
    %c1 = arith.constant 1 : index
    %c0_29 = arith.constant 0 : index
    %c0_30 = arith.constant 0 : index
    %46 = vector.load %arg11[%c1, %c0_29, %c0_30] : memref<4x1x128xf32, #tpu.memory_space<vmem>>, vector<1x1x128xf32>
    %47 = vector.shape_cast %46 : vector<1x1x128xf32> to vector<1x128xf32>
    %cst_31 = arith.constant dense<0xFF800000> : vector<128xf32>
    %48 = vector.multi_reduction <maximumf>, %45, %cst_31 [0] : vector<128x128xf32> to vector<128xf32>
    %49 = vector.shape_cast %48 : vector<128xf32> to vector<1x128xf32>
    %50 = arith.maximumf %47, %49 : vector<1x128xf32>
    %51 = arith.subf %47, %50 : vector<1x128xf32>
    %52 = math.exp %51 : vector<1x128xf32>
    %53 = vector.broadcast %50 : vector<1x128xf32> to vector<128x128xf32>
    %54 = arith.subf %45, %53 : vector<128x128xf32>
    %55 = math.exp %54 : vector<128x128xf32>
    %c1_32 = arith.constant 1 : index
    %c0_33 = arith.constant 0 : index
    %c0_34 = arith.constant 0 : index
    %56 = vector.load %arg12[%c1_32, %c0_33, %c0_34] : memref<4x1x128xf32, #tpu.memory_space<vmem>>, vector<1x1x128xf32>
    %57 = vector.shape_cast %56 : vector<1x1x128xf32> to vector<1x128xf32>
    %58 = arith.mulf %52, %57 : vector<1x128xf32>
    %cst_35 = arith.constant dense<0.000000e+00> : vector<128xf32>
    %59 = vector.multi_reduction <add>, %55, %cst_35 [0] : vector<128x128xf32> to vector<128xf32>
    %60 = vector.shape_cast %59 : vector<128xf32> to vector<1x128xf32>
    %61 = arith.addf %58, %60 : vector<1x128xf32>
    %c1_36 = arith.constant 1 : index
    %c0_37 = arith.constant 0 : index
    %c0_38 = arith.constant 0 : index
    %62 = vector.load %arg12[%c1_36, %c0_37, %c0_38] : memref<4x1x128xf32, #tpu.memory_space<vmem>>, vector<1x1x128xf32>
    %63 = vector.shape_cast %62 : vector<1x1x128xf32> to vector<1x128xf32>
    %64 = vector.shape_cast %61 : vector<1x128xf32> to vector<1x1x128xf32>
    tpu.vector_store %arg12[%c1_36, %c0_37, %c0_38], %64 {strides = array<i32>} : memref<4x1x128xf32, #tpu.memory_space<vmem>>, vector<1x1x128xf32>,
    %65 = arith.truncf %55 : vector<128x128xf32> to vector<128x128xbf16>
    %cst_39 = arith.constant dense<0.000000e+00> : vector<8x128xf32>
    %66 = tpu.matmul %44, %65, %cst_39 {dimension_numbers = #tpu.dot_dimension_numbers<[1], [0], [0], [1], [0, 0, 1, 1], [], []>} : vector<8x128xbf16>, vector<128x128xbf16>, vector<8x128xf32> -> vector<8x128xf32>
    %c8 = arith.constant 8 : index
    %c0_40 = arith.constant 0 : index
    %67 = vector.load %arg10[%c8, %c0_40] : memref<32x128xf32, #tpu.memory_space<vmem>>, vector<8x128xf32>
    %68 = vector.broadcast %52 : vector<1x128xf32> to vector<8x128xf32>
    %69 = arith.mulf %68, %67 : vector<8x128xf32>
    %70 = arith.addf %69, %66 : vector<8x128xf32>
    %c8_41 = arith.constant 8 : index
    %c0_42 = arith.constant 0 : index
    %71 = vector.load %arg10[%c8_41, %c0_42] : memref<32x128xf32, #tpu.memory_space<vmem>>, vector<8x128xf32>
    tpu.vector_store %arg10[%c8_41, %c0_42], %70 {strides = array<i32>} : memref<32x128xf32, #tpu.memory_space<vmem>>, vector<8x128xf32>,
    %c1_43 = arith.constant 1 : index
    %c0_44 = arith.constant 0 : index
    %c0_45 = arith.constant 0 : index
    %72 = vector.load %arg11[%c1_43, %c0_44, %c0_45] : memref<4x1x128xf32, #tpu.memory_space<vmem>>, vector<1x1x128xf32>
    %73 = vector.shape_cast %72 : vector<1x1x128xf32> to vector<1x128xf32>
    %74 = vector.shape_cast %50 : vector<1x128xf32> to vector<1x1x128xf32>
    tpu.vector_store %arg11[%c1_43, %c0_44, %c0_45], %74 {strides = array<i32>} : memref<4x1x128xf32, #tpu.memory_space<vmem>>, vector<1x1x128xf32>,
    %75 = vector.extract_strided_slice %4 {offsets = [16, 0], sizes = [8, 128], strides = [1, 1]} : vector<32x128xbf16> to vector<8x128xbf16>
    %76 = vector.extract_strided_slice %8 {offsets = [0, 16], sizes = [128, 8], strides = [1, 1]} : vector<128x32xbf16> to vector<128x8xbf16>
    %77 = vector.extract_strided_slice %6 {offsets = [16, 0], sizes = [8, 128], strides = [1, 1]} : vector<32x128xbf16> to vector<8x128xbf16>
    %cst_46 = arith.constant dense<0.000000e+00> : vector<128x128xf32>
    %78 = tpu.matmul %76, %75, %cst_46 {dimension_numbers = #tpu.dot_dimension_numbers<[1], [0], [0], [1], [0, 0, 1, 1], [], []>} : vector<128x8xbf16>, vector<8x128xbf16>, vector<128x128xf32> -> vector<128x128xf32>
    %c2 = arith.constant 2 : index
    %c0_47 = arith.constant 0 : index
    %c0_48 = arith.constant 0 : index
    %79 = vector.load %arg11[%c2, %c0_47, %c0_48] : memref<4x1x128xf32, #tpu.memory_space<vmem>>, vector<1x1x128xf32>
    %80 = vector.shape_cast %79 : vector<1x1x128xf32> to vector<1x128xf32>
    %cst_49 = arith.constant dense<0xFF800000> : vector<128xf32>
    %81 = vector.multi_reduction <maximumf>, %78, %cst_49 [0] : vector<128x128xf32> to vector<128xf32>
    %82 = vector.shape_cast %81 : vector<128xf32> to vector<1x128xf32>
    %83 = arith.maximumf %80, %82 : vector<1x128xf32>
    %84 = arith.subf %80, %83 : vector<1x128xf32>
    %85 = math.exp %84 : vector<1x128xf32>
    %86 = vector.broadcast %83 : vector<1x128xf32> to vector<128x128xf32>
    %87 = arith.subf %78, %86 : vector<128x128xf32>
    %88 = math.exp %87 : vector<128x128xf32>
    %c2_50 = arith.constant 2 : index
    %c0_51 = arith.constant 0 : index
    %c0_52 = arith.constant 0 : index
    %89 = vector.load %arg12[%c2_50, %c0_51, %c0_52] : memref<4x1x128xf32, #tpu.memory_space<vmem>>, vector<1x1x128xf32>
    %90 = vector.shape_cast %89 : vector<1x1x128xf32> to vector<1x128xf32>
    %91 = arith.mulf %85, %90 : vector<1x128xf32>
    %cst_53 = arith.constant dense<0.000000e+00> : vector<128xf32>
    %92 = vector.multi_reduction <add>, %88, %cst_53 [0] : vector<128x128xf32> to vector<128xf32>
    %93 = vector.shape_cast %92 : vector<128xf32> to vector<1x128xf32>
    %94 = arith.addf %91, %93 : vector<1x128xf32>
    %c2_54 = arith.constant 2 : index
    %c0_55 = arith.constant 0 : index
    %c0_56 = arith.constant 0 : index
    %95 = vector.load %arg12[%c2_54, %c0_55, %c0_56] : memref<4x1x128xf32, #tpu.memory_space<vmem>>, vector<1x1x128xf32>
    %96 = vector.shape_cast %95 : vector<1x1x128xf32> to vector<1x128xf32>
    %97 = vector.shape_cast %94 : vector<1x128xf32> to vector<1x1x128xf32>
    tpu.vector_store %arg12[%c2_54, %c0_55, %c0_56], %97 {strides = array<i32>} : memref<4x1x128xf32, #tpu.memory_space<vmem>>, vector<1x1x128xf32>,
    %98 = arith.truncf %88 : vector<128x128xf32> to vector<128x128xbf16>
    %cst_57 = arith.constant dense<0.000000e+00> : vector<8x128xf32>
    %99 = tpu.matmul %77, %98, %cst_57 {dimension_numbers = #tpu.dot_dimension_numbers<[1], [0], [0], [1], [0, 0, 1, 1], [], []>} : vector<8x128xbf16>, vector<128x128xbf16>, vector<8x128xf32> -> vector<8x128xf32>
    %c16 = arith.constant 16 : index
    %c0_58 = arith.constant 0 : index
    %100 = vector.load %arg10[%c16, %c0_58] : memref<32x128xf32, #tpu.memory_space<vmem>>, vector<8x128xf32>
    %101 = vector.broadcast %85 : vector<1x128xf32> to vector<8x128xf32>
    %102 = arith.mulf %101, %100 : vector<8x128xf32>
    %103 = arith.addf %102, %99 : vector<8x128xf32>
    %c16_59 = arith.constant 16 : index
    %c0_60 = arith.constant 0 : index
    %104 = vector.load %arg10[%c16_59, %c0_60] : memref<32x128xf32, #tpu.memory_space<vmem>>, vector<8x128xf32>
    tpu.vector_store %arg10[%c16_59, %c0_60], %103 {strides = array<i32>} : memref<32x128xf32, #tpu.memory_space<vmem>>, vector<8x128xf32>,
    %c2_61 = arith.constant 2 : index
    %c0_62 = arith.constant 0 : index
    %c0_63 = arith.constant 0 : index
    %105 = vector.load %arg11[%c2_61, %c0_62, %c0_63] : memref<4x1x128xf32, #tpu.memory_space<vmem>>, vector<1x1x128xf32>
    %106 = vector.shape_cast %105 : vector<1x1x128xf32> to vector<1x128xf32>
    %107 = vector.shape_cast %83 : vector<1x128xf32> to vector<1x1x128xf32>
    tpu.vector_store %arg11[%c2_61, %c0_62, %c0_63], %107 {strides = array<i32>} : memref<4x1x128xf32, #tpu.memory_space<vmem>>, vector<1x1x128xf32>,
    %108 = vector.extract_strided_slice %4 {offsets = [24, 0], sizes = [8, 128], strides = [1, 1]} : vector<32x128xbf16> to vector<8x128xbf16>
    %109 = vector.extract_strided_slice %8 {offsets = [0, 24], sizes = [128, 8], strides = [1, 1]} : vector<128x32xbf16> to vector<128x8xbf16>
    %110 = vector.extract_strided_slice %6 {offsets = [24, 0], sizes = [8, 128], strides = [1, 1]} : vector<32x128xbf16> to vector<8x128xbf16>
    %cst_64 = arith.constant dense<0.000000e+00> : vector<128x128xf32>
    %111 = tpu.matmul %109, %108, %cst_64 {dimension_numbers = #tpu.dot_dimension_numbers<[1], [0], [0], [1], [0, 0, 1, 1], [], []>} : vector<128x8xbf16>, vector<8x128xbf16>, vector<128x128xf32> -> vector<128x128xf32>
    %c3 = arith.constant 3 : index
    %c0_65 = arith.constant 0 : index
    %c0_66 = arith.constant 0 : index
    %112 = vector.load %arg11[%c3, %c0_65, %c0_66] : memref<4x1x128xf32, #tpu.memory_space<vmem>>, vector<1x1x128xf32>
    %113 = vector.shape_cast %112 : vector<1x1x128xf32> to vector<1x128xf32>
    %cst_67 = arith.constant dense<0xFF800000> : vector<128xf32>
    %114 = vector.multi_reduction <maximumf>, %111, %cst_67 [0] : vector<128x128xf32> to vector<128xf32>
    %115 = vector.shape_cast %114 : vector<128xf32> to vector<1x128xf32>
    %116 = arith.maximumf %113, %115 : vector<1x128xf32>
    %117 = arith.subf %113, %116 : vector<1x128xf32>
    %118 = math.exp %117 : vector<1x128xf32>
    %119 = vector.broadcast %116 : vector<1x128xf32> to vector<128x128xf32>
    %120 = arith.subf %111, %119 : vector<128x128xf32>
    %121 = math.exp %120 : vector<128x128xf32>
    %c3_68 = arith.constant 3 : index
    %c0_69 = arith.constant 0 : index
    %c0_70 = arith.constant 0 : index
    %122 = vector.load %arg12[%c3_68, %c0_69, %c0_70] : memref<4x1x128xf32, #tpu.memory_space<vmem>>, vector<1x1x128xf32>
    %123 = vector.shape_cast %122 : vector<1x1x128xf32> to vector<1x128xf32>
    %124 = arith.mulf %118, %123 : vector<1x128xf32>
    %cst_71 = arith.constant dense<0.000000e+00> : vector<128xf32>
    %125 = vector.multi_reduction <add>, %121, %cst_71 [0] : vector<128x128xf32> to vector<128xf32>
    %126 = vector.shape_cast %125 : vector<128xf32> to vector<1x128xf32>
    %127 = arith.addf %124, %126 : vector<1x128xf32>
    %c3_72 = arith.constant 3 : index
    %c0_73 = arith.constant 0 : index
    %c0_74 = arith.constant 0 : index
    %128 = vector.load %arg12[%c3_72, %c0_73, %c0_74] : memref<4x1x128xf32, #tpu.memory_space<vmem>>, vector<1x1x128xf32>
    %129 = vector.shape_cast %128 : vector<1x1x128xf32> to vector<1x128xf32>
    %130 = vector.shape_cast %127 : vector<1x128xf32> to vector<1x1x128xf32>
    tpu.vector_store %arg12[%c3_72, %c0_73, %c0_74], %130 {strides = array<i32>} : memref<4x1x128xf32, #tpu.memory_space<vmem>>, vector<1x1x128xf32>,
    %131 = arith.truncf %121 : vector<128x128xf32> to vector<128x128xbf16>
    %cst_75 = arith.constant dense<0.000000e+00> : vector<8x128xf32>
    %132 = tpu.matmul %110, %131, %cst_75 {dimension_numbers = #tpu.dot_dimension_numbers<[1], [0], [0], [1], [0, 0, 1, 1], [], []>} : vector<8x128xbf16>, vector<128x128xbf16>, vector<8x128xf32> -> vector<8x128xf32>
    %c24 = arith.constant 24 : index
    %c0_76 = arith.constant 0 : index
    %133 = vector.load %arg10[%c24, %c0_76] : memref<32x128xf32, #tpu.memory_space<vmem>>, vector<8x128xf32>
    %134 = vector.broadcast %118 : vector<1x128xf32> to vector<8x128xf32>
    %135 = arith.mulf %134, %133 : vector<8x128xf32>
    %136 = arith.addf %135, %132 : vector<8x128xf32>
    %c24_77 = arith.constant 24 : index
    %c0_78 = arith.constant 0 : index
    %137 = vector.load %arg10[%c24_77, %c0_78] : memref<32x128xf32, #tpu.memory_space<vmem>>, vector<8x128xf32>
    tpu.vector_store %arg10[%c24_77, %c0_78], %136 {strides = array<i32>} : memref<32x128xf32, #tpu.memory_space<vmem>>, vector<8x128xf32>,
    %c3_79 = arith.constant 3 : index
    %c0_80 = arith.constant 0 : index
    %c0_81 = arith.constant 0 : index
    %138 = vector.load %arg11[%c3_79, %c0_80, %c0_81] : memref<4x1x128xf32, #tpu.memory_space<vmem>>, vector<1x1x128xf32>
    %139 = vector.shape_cast %138 : vector<1x1x128xf32> to vector<1x128xf32>
    %140 = vector.shape_cast %116 : vector<1x128xf32> to vector<1x1x128xf32>
    tpu.vector_store %arg11[%c3_79, %c0_80, %c0_81], %140 {strides = array<i32>} : memref<4x1x128xf32, #tpu.memory_space<vmem>>, vector<1x1x128xf32>,
    %c1_i32 = arith.constant 1 : i32
    %141 = arith.cmpi eq, %arg2, %c1_i32 : i32
    %142 = arith.extui %141 : i1 to i32
    %c0_i32_82 = arith.constant 0 : i32
    %143 = arith.cmpi ne, %142, %c0_i32_82 : i32
    scf.if %143 {
      %c0_83 = arith.constant 0 : index
      %c0_84 = arith.constant 0 : index
      %144 = vector.load %arg10[%c0_83, %c0_84] : memref<32x128xf32, #tpu.memory_space<vmem>>, vector<8x128xf32>
      %c0_85 = arith.constant 0 : index
      %c0_86 = arith.constant 0 : index
      %c0_87 = arith.constant 0 : index
      %145 = vector.load %arg12[%c0_85, %c0_86, %c0_87] : memref<4x1x128xf32, #tpu.memory_space<vmem>>, vector<1x1x128xf32>
      %146 = vector.shape_cast %145 : vector<1x1x128xf32> to vector<1x128xf32>
      %147 = tpu.reciprocal %146 {approx = true} : vector<1x128xf32> -> vector<1x128xf32>
      %148 = vector.broadcast %147 : vector<1x128xf32> to vector<8x128xf32>
      %149 = arith.mulf %144, %148 : vector<8x128xf32>
      %c0_88 = arith.constant 0 : index
      %c0_89 = arith.constant 0 : index
      %150 = vector.load %arg10[%c0_88, %c0_89] : memref<32x128xf32, #tpu.memory_space<vmem>>, vector<8x128xf32>
      tpu.vector_store %arg10[%c0_88, %c0_89], %149 {strides = array<i32>} : memref<32x128xf32, #tpu.memory_space<vmem>>, vector<8x128xf32>,
      %c8_90 = arith.constant 8 : index
      %c0_91 = arith.constant 0 : index
      %151 = vector.load %arg10[%c8_90, %c0_91] : memref<32x128xf32, #tpu.memory_space<vmem>>, vector<8x128xf32>
      %c1_92 = arith.constant 1 : index
      %c0_93 = arith.constant 0 : index
      %c0_94 = arith.constant 0 : index
      %152 = vector.load %arg12[%c1_92, %c0_93, %c0_94] : memref<4x1x128xf32, #tpu.memory_space<vmem>>, vector<1x1x128xf32>
      %153 = vector.shape_cast %152 : vector<1x1x128xf32> to vector<1x128xf32>
      %154 = tpu.reciprocal %153 {approx = true} : vector<1x128xf32> -> vector<1x128xf32>
      %155 = vector.broadcast %154 : vector<1x128xf32> to vector<8x128xf32>
      %156 = arith.mulf %151, %155 : vector<8x128xf32>
      %c8_95 = arith.constant 8 : index
      %c0_96 = arith.constant 0 : index
      %157 = vector.load %arg10[%c8_95, %c0_96] : memref<32x128xf32, #tpu.memory_space<vmem>>, vector<8x128xf32>
      tpu.vector_store %arg10[%c8_95, %c0_96], %156 {strides = array<i32>} : memref<32x128xf32, #tpu.memory_space<vmem>>, vector<8x128xf32>,
      %c16_97 = arith.constant 16 : index
      %c0_98 = arith.constant 0 : index
      %158 = vector.load %arg10[%c16_97, %c0_98] : memref<32x128xf32, #tpu.memory_space<vmem>>, vector<8x128xf32>
      %c2_99 = arith.constant 2 : index
      %c0_100 = arith.constant 0 : index
      %c0_101 = arith.constant 0 : index
      %159 = vector.load %arg12[%c2_99, %c0_100, %c0_101] : memref<4x1x128xf32, #tpu.memory_space<vmem>>, vector<1x1x128xf32>
      %160 = vector.shape_cast %159 : vector<1x1x128xf32> to vector<1x128xf32>
      %161 = tpu.reciprocal %160 {approx = true} : vector<1x128xf32> -> vector<1x128xf32>
      %162 = vector.broadcast %161 : vector<1x128xf32> to vector<8x128xf32>
      %163 = arith.mulf %158, %162 : vector<8x128xf32>
      %c16_102 = arith.constant 16 : index
      %c0_103 = arith.constant 0 : index
      %164 = vector.load %arg10[%c16_102, %c0_103] : memref<32x128xf32, #tpu.memory_space<vmem>>, vector<8x128xf32>
      tpu.vector_store %arg10[%c16_102, %c0_103], %163 {strides = array<i32>} : memref<32x128xf32, #tpu.memory_space<vmem>>, vector<8x128xf32>,
      %c24_104 = arith.constant 24 : index
      %c0_105 = arith.constant 0 : index
      %165 = vector.load %arg10[%c24_104, %c0_105] : memref<32x128xf32, #tpu.memory_space<vmem>>, vector<8x128xf32>
      %c3_106 = arith.constant 3 : index
      %c0_107 = arith.constant 0 : index
      %c0_108 = arith.constant 0 : index
      %166 = vector.load %arg12[%c3_106, %c0_107, %c0_108] : memref<4x1x128xf32, #tpu.memory_space<vmem>>, vector<1x1x128xf32>
      %167 = vector.shape_cast %166 : vector<1x1x128xf32> to vector<1x128xf32>
      %168 = tpu.reciprocal %167 {approx = true} : vector<1x128xf32> -> vector<1x128xf32>
      %169 = vector.broadcast %168 : vector<1x128xf32> to vector<8x128xf32>
      %170 = arith.mulf %165, %169 : vector<8x128xf32>
      %c24_109 = arith.constant 24 : index
      %c0_110 = arith.constant 0 : index
      %171 = vector.load %arg10[%c24_109, %c0_110] : memref<32x128xf32, #tpu.memory_space<vmem>>, vector<8x128xf32>
      tpu.vector_store %arg10[%c24_109, %c0_110], %170 {strides = array<i32>} : memref<32x128xf32, #tpu.memory_space<vmem>>, vector<8x128xf32>,
      %c0_111 = arith.constant 0 : index
      %c0_112 = arith.constant 0 : index
      %172 = vector.load %arg10[%c0_111, %c0_112] : memref<32x128xf32, #tpu.memory_space<vmem>>, vector<32x128xf32>
      %173 = arith.truncf %172 : vector<32x128xf32> to vector<32x128xbf16>
      %c0_113 = arith.constant 0 : index
      %c0_114 = arith.constant 0 : index
      %174 = vector.load %arg7[%c0_113, %c0_114] : memref<32x32xbf16, #tpu.memory_space<vmem>>, vector<32x32xbf16>
      %cst_115 = arith.constant dense<0.000000e+00> : vector<32x128xf32>
      %175 = tpu.matmul %174, %173, %cst_115 {dimension_numbers = #tpu.dot_dimension_numbers<[1], [0], [0], [1], [0, 0, 1, 1], [], []>} : vector<32x32xbf16>, vector<32x128xbf16>, vector<32x128xf32> -> vector<32x128xf32>
      %c0_116 = arith.constant 0 : index
      %c0_117 = arith.constant 0 : index
      %176 = vector.load %arg8[%c0_116, %c0_117] : memref<32x1xf32, #tpu.memory_space<vmem>>, vector<32x1xf32>
      %177 = vector.broadcast %176 : vector<32x1xf32> to vector<32x128xf32>
      %178 = arith.addf %175, %177 : vector<32x128xf32>
      %c0_118 = arith.constant 0 : index
      %c0_119 = arith.constant 0 : index
      %c0_120 = arith.constant 0 : index
      %179 = vector.load %arg6[%c0_118, %c0_119, %c0_120] : memref<1x32x128xf32, #tpu.memory_space<vmem>>, vector<1x32x128xf32>
      %180 = vector.shape_cast %179 : vector<1x32x128xf32> to vector<32x128xf32>
      %181 = arith.addf %178, %180 : vector<32x128xf32>
      %c0_121 = arith.constant 0 : index
      %c0_122 = arith.constant 0 : index
      %c0_123 = arith.constant 0 : index
      %182 = vector.load %arg9[%c0_121, %c0_122, %c0_123] : memref<1x32x128xf32, #tpu.memory_space<vmem>>, vector<1x32x128xf32>
      %183 = vector.shape_cast %182 : vector<1x32x128xf32> to vector<32x128xf32>
      %184 = vector.shape_cast %181 : vector<32x128xf32> to vector<1x32x128xf32>
      tpu.vector_store %arg9[%c0_121, %c0_122, %c0_123], %184 {strides = array<i32>} : memref<1x32x128xf32, #tpu.memory_space<vmem>>, vector<1x32x128xf32>,
    } else {
    }
    return
  }
  func.func @transform_0(%arg0: i32, %arg1: i32, %arg2: i32) -> (i32, i32, i32) {
    %c0_i32 = arith.constant 0 : i32
    %c0_i32_0 = arith.constant 0 : i32
    return %arg0, %c0_i32, %arg1 : i32, i32, i32
  }
  func.func @transform_1(%arg0: i32, %arg1: i32, %arg2: i32) -> (i32, i32, i32) {
    %c1_i32 = arith.constant 1 : i32
    %c0_i32 = arith.constant 0 : i32
    return %arg0, %c1_i32, %arg2 : i32, i32, i32
  }
  func.func @transform_2(%arg0: i32, %arg1: i32, %arg2: i32) -> (i32, i32, i32) {
    %c0_i32 = arith.constant 0 : i32
    %c0_i32_0 = arith.constant 0 : i32
    return %arg0, %arg2, %c0_i32 : i32, i32, i32
  }
  func.func @transform_3(%arg0: i32, %arg1: i32, %arg2: i32) -> (i32, i32, i32) {
    %c0_i32 = arith.constant 0 : i32
    %c0_i32_0 = arith.constant 0 : i32
    return %arg0, %c0_i32, %arg1 : i32, i32, i32
  }
  func.func @transform_4(%arg0: i32, %arg1: i32, %arg2: i32) -> (i32, i32) {
    %c0_i32 = arith.constant 0 : i32
    %c0_i32_0 = arith.constant 0 : i32
    %c0_i32_1 = arith.constant 0 : i32
    return %c0_i32, %c0_i32_0 : i32, i32
  }
  func.func @transform_5(%arg0: i32, %arg1: i32, %arg2: i32) -> (i32, i32) {
    %c0_i32 = arith.constant 0 : i32
    %c0_i32_0 = arith.constant 0 : i32
    %c0_i32_1 = arith.constant 0 : i32
    return %c0_i32, %c0_i32_0 : i32, i32
  }
  func.func @transform_6(%arg0: i32, %arg1: i32, %arg2: i32) -> (i32, i32, i32) {
    %c0_i32 = arith.constant 0 : i32
    %c0_i32_0 = arith.constant 0 : i32
    return %arg0, %c0_i32, %arg1 : i32, i32, i32
  }
}

</mosaic_0001>

<bundles_post_ra>
// kernel: mem_efficient_attn_block.3
= control target key start
LH: loop header
LB: loop body
LE: loop exit
PB: predicated region body
PF: predicated region fallthrough
CT: control target
= control target key end

     0   :  { %s842_s21 = smov 0   ;;  %s844_s22 = smov 0   ;;  %s982_s0 = inlined_call_operand.vmem [shape: f32[2,32,256], index: 0, kind: input, shape index: {}]   ;;  %s983_s1 = inlined_call_operand.vmem [shape: f32[32,1], index: 1, kind: input, shape index: {}]   ;;  %s984_s2 = inlined_call_operand.vmem [shape: f32[32,1], index: 2, kind: input, shape index: {}]   ;;  %s985_s3 = inlined_call_operand.vmem [shape: f32[32,32], index: 3, kind: input, shape index: {}]   ;;  %s986_s4 = inlined_call_operand.vmem [shape: f32[32,32], index: 4, kind: input, shape index: {}]   ;;  %s987_s5 = inlined_call_operand.vmem [shape: f32[2,32,1], index: 5, kind: output, shape index: {0}]   ;;  %s988_s6 = inlined_call_operand.vmem [shape: f32[2,32,1], index: 6, kind: output, shape index: {1}]  }
   0x1   :  { %s846_s23 = smov 0  }
   0x2 LB: > { %s29_s24 = sadd.s32 1, %s800_s22  ;;  %p721_p0 = scmp.ge.s32.totalorder %s804_s23, 1  ;;  %s804_s23 = sphi %s846_s23, %s17_s23   ;;  %s800_s22 = sphi %s844_s22, %s990_s22   ;;  %s796_s21 = sphi %s842_s21, %s989_s21  }
   0x3   : > { %p31_p1 = scmp.ge.s32.totalorder %s29_s24, 2  ;;  %p234_p2 = scmp.lt.s32.totalorder %s804_s23, 3 }
   0x5   : > { %s992_s24 = smov (%p31_p1, %s29_s24), 0  ;;  %p235_p3 = pnand %p721_p0, %p234_p2 }
   0x6   : > { %p274_p4 = scmp.lt.s32.totalorder (!%p235_p3), %s796_s21, 1 }
   0x7   : > { %238 = sbr.rel (%p235_p3) target bundleno = 507 (0x1fb), region = 40 }
   0xc   : > { %vm297_vm0 = vcmask 7168   ;;  %v806_v0 = vmov 0.0   ;;  %s994_s21 = smov (!%p274_p4, %s796_s21), 1  ;;  %v378_v55 = vld [vmem:[%s986_s4] sm:$0xff]  ;;  %vm386_vm1 = vcmask 261120   ;;  %v379_v58 = vld [vmem:[%s986_s4 + $0x8] sm:$0xff] }
   0xd   : > { %301 = vst.msk [vmem:[#allocation2 + $0x18] sm:$0xff] %vm297_vm0, %v806_v0  ;;  %s746_s25 = sshll.u32 %s994_s21, 6  ;;  %v380_v59 = vld [vmem:[%s986_s4 + $0x10] sm:$0xff]  ;;  %v381_v60 = vld [vmem:[%s986_s4 + $0x18] sm:$0xff] }
   0xe   : > { %298 = vst.msk [vmem:[#allocation2] sm:$0xff] %vm297_vm0, %v806_v0  ;;  %s281_s28 = scalar_lea.vmem %s982_s0, %s746_s25  ;;  %s747_s25 = sshll.u32 %s994_s21, 5 }
   0xf   : > { %299 = vst.msk [vmem:[#allocation2 + $0x8] sm:$0xff] %vm297_vm0, %v806_v0  ;;  %v312_v1 = vld [vmem:[%s281_s28 + $0x30] sm:$0xff]  ;;  %v313_v2 = vld [vmem:[%s281_s28 + $0x38] sm:$0xff]  ;;  %v310_v6 = vld [vmem:[%s281_s28 + $0x20] sm:$0xff]  ;;  %s929_s30 = scalar_lea.vmem %s987_s5, %s747_s25  ;;  %s939_s10 = scalar_lea.vmem %s988_s6, %s747_s25 }
  0x10   : > { %300 = vst.msk [vmem:[#allocation2 + $0x10] sm:$0xff] %vm297_vm0, %v806_v0  ;;  %v308_v3 = vld [vmem:[%s281_s28 + $0x10] sm:$0xff]  ;;  %v327_v4 = vadd.f32 %v313_v2, %v312_v1  ;;  %v309_v5 = vld [vmem:[%s281_s28 + $0x18] sm:$0xff]  ;;  %v311_v7 = vld [vmem:[%s281_s28 + $0x28] sm:$0xff]  ;;  %v347_v9 = vmul.f32 %v310_v6, %v310_v6  ;;  %v349_v11 = vmul.f32 %v312_v1, %v312_v1  ;;  %v350_v12 = vmul.f32 %v313_v2, %v313_v2 }
  0x11   : > { %302 = vst.msk [vmem:[#allocation3] sm:$0xff] %vm297_vm0, %v806_v0  ;;  %v321_v8 = vadd.f32 %v309_v5, %v308_v3  ;;  %v348_v10 = vmul.f32 %v311_v7, %v311_v7  ;;  %v324_v14 = vadd.f32 %v311_v7, %v310_v6  ;;  %v306_v15 = vld [vmem:[%s281_s28] sm:$0xff]  ;;  %v307_v16 = vld [vmem:[%s281_s28 + $0x8] sm:$0xff]  ;;  %v345_v19 = vmul.f32 %v308_v3, %v308_v3 }
  0x12   : > { %303 = vst.msk [vmem:[#allocation3 + $0x8] sm:$0xff] %vm297_vm0, %v806_v0  ;;  %328 = vadd.xlane.f32.xlu0 %v327_v4  ;;  %v360_v17 = vadd.f32 %v350_v12, %v349_v11  ;;  %v318_v18 = vadd.f32 %v307_v16, %v306_v15  ;;  %v346_v20 = vmul.f32 %v309_v5, %v309_v5 }
  0x13   : > { %304 = vst.msk [vmem:[#allocation3 + $0x10] sm:$0xff] %vm297_vm0, %v806_v0  ;;  %322 = vadd.xlane.f32.xlu1 %v321_v8  ;;  %v357_v13 = vadd.f32 %v348_v10, %v347_v9  ;;  %v343_v21 = vmul.f32 %v306_v15, %v306_v15  ;;  %v344_v22 = vmul.f32 %v307_v16, %v307_v16  ;;  %v374_v16 = vld [vmem:[%s985_s3] sm:$0xff] }
  0x14   : > { %305 = vst.msk [vmem:[#allocation3 + $0x18] sm:$0xff] %vm297_vm0, %v806_v0  ;;  %v354_v23 = vadd.f32 %v346_v20, %v345_v19  ;;  %v317_v25 = vld [vmem:[#allocation2 + $0x18] sm:$0xff] }
  0x15   : > { %358 = vadd.xlane.f32.xlu2 %v357_v13  ;;  %v351_v24 = vadd.f32 %v344_v22, %v343_v21  ;;  %v314_v39 = vld [vmem:[#allocation2] sm:$0xff]  ;;  %v375_v22 = vld [vmem:[%s985_s3 + $0x8] sm:$0xff] }
  0x16   : > { %v315_v26 = vld [vmem:[#allocation2 + $0x8] sm:$0xff] }
  0x17   : > { %v316_v34 = vld [vmem:[#allocation2 + $0x10] sm:$0xff] }
  0x18   : > { %v339_v45 = vld [vmem:[#allocation3] sm:$0xff] }
  0x19   : > { %v340_v44 = vld [vmem:[#allocation3 + $0x8] sm:$0xff] }
  0x1a   : > { %325 = vadd.xlane.f32.xlu0 %v324_v14  ;;  %v341_v30 = vld [vmem:[#allocation3 + $0x10] sm:$0xff] }
  0x1b   : > { %361 = vadd.xlane.f32.xlu1 %v360_v17  ;;  %v342_v35 = vld [vmem:[#allocation3 + $0x18] sm:$0xff] }
  0x1d   : > { %319 = vadd.xlane.f32.xlu2 %v318_v18 }
  0x22   : > { %355 = vadd.xlane.f32.xlu0 %v354_v23  ;;  %v376_v23 = vld [vmem:[%s985_s3 + $0x10] sm:$0xff] }
  0x23   : > { %352 = vadd.xlane.f32.xlu1 %v351_v24  ;;  %v377_v24 = vld [vmem:[%s985_s3 + $0x18] sm:$0xff] }
  0x85   : > { %v329_v27 = vpop.xlane.xlu0 %328 }
  0x86   : > { %v333_v28 = vadd.f32 %v329_v27, %v317_v25  ;;  %v323_v29 = vpop.xlane.xlu1 %322 }
  0x87   : > { %v331_v31 = vadd.f32 %v323_v29, %v315_v26 }
  0x88   : > { %338 = vst.msk [vmem:[#allocation2 + $0x18] sm:$0xff] %vm297_vm0, %v333_v28  ;;  %v359_v32 = vpop.xlane.xlu2 %358 }
  0x89   : > { %336 = vst.msk [vmem:[#allocation2 + $0x8] sm:$0xff] %vm297_vm0, %v331_v31  ;;  %v365_v33 = vadd.f32 %v359_v32, %v341_v30 }
  0x8b   : > { %369 = vst.msk [vmem:[#allocation3 + $0x10] sm:$0xff] %vm297_vm0, %v365_v33 }
  0x8d   : > { %v326_v36 = vpop.xlane.xlu0 %325 }
  0x8e   : > { %v332_v37 = vadd.f32 %v326_v36, %v316_v34  ;;  %v362_v38 = vpop.xlane.xlu1 %361 }
  0x8f   : > { %v366_v40 = vadd.f32 %v362_v38, %v342_v35  ;;  %v385_v41 = vld [vmem:[#allocation2 + $0x18] sm:$0xff] }
  0x90   : > { %337 = vst.msk [vmem:[#allocation2 + $0x10] sm:$0xff] %vm297_vm0, %v332_v37  ;;  %411 = vmatpush.msra.mxu0 %v385_v41  ;;  %v320_v42 = vpop.xlane.xlu2 %319  ;;  %v383_v52 = vld [vmem:[#allocation2 + $0x8] sm:$0xff] }
  0x91   : > { %370 = vst.msk [vmem:[#allocation3 + $0x18] sm:$0xff] %vm297_vm0, %v366_v40  ;;  %v330_v43 = vadd.f32 %v320_v42, %v314_v39  ;;  %v518_v39 = vld [vmem:[%s983_s1] sm:$0xff] }
  0x92   : > { %v430_v53 = vld [vmem:[#allocation3 + $0x10] sm:$0xff] }
  0x93   : > { %335 = vst.msk [vmem:[#allocation2] sm:$0xff] %vm297_vm0, %v330_v43 }
  0x95   : > { %v356_v46 = vpop.xlane.xlu0 %355 }
  0x96   : > { %v364_v47 = vadd.f32 %v356_v46, %v340_v44  ;;  %v353_v48 = vpop.xlane.xlu1 %352 }
  0x97   : > { %v363_v49 = vadd.f32 %v353_v48, %v339_v45  ;;  %v384_v50 = vld [vmem:[#allocation2 + $0x10] sm:$0xff]  ;;  %v599_v45 = vld [vmem:[%s984_s2] sm:$0xff] }
  0x98   : > { %368 = vst.msk [vmem:[#allocation3 + $0x8] sm:$0xff] %vm297_vm0, %v364_v47  ;;  %412 = vmatpush.msra.mxu0 %v384_v50  ;;  %v431_v51 = vld [vmem:[#allocation3 + $0x18] sm:$0xff] }
  0x99   : > { %367 = vst.msk [vmem:[#allocation3] sm:$0xff] %vm297_vm0, %v363_v49  ;;  %444 = vmatpush.msra.mxu1 %v431_v51 }
  0x9a   : > { %413 = vmatpush.msra.mxu0 %v383_v52  ;;  %v382_v54 = vld [vmem:[#allocation2] sm:$0xff] }
  0x9b   : > { %445 = vmatpush.msra.mxu1 %v430_v53 }
  0x9c   : > { %414 = vmatpush.msra.mxu0 %v382_v54  ;;  %v519_v54 = vld [vmem:[%s983_s1 + $0x8] sm:$0xff] }
  0x9d   : > { %728 = vmatmul.msk.f32.vlgmr.msra.gmra.mxu0 %vm386_vm1, %v378_v55 }
  0x9f   : > { %v429_v56 = vld [vmem:[#allocation3 + $0x8] sm:$0xff] }
  0xa0   : > { %446 = vmatpush.msra.mxu1 %v429_v56  ;;  %v428_v57 = vld [vmem:[#allocation3] sm:$0xff] }
  0xa2   : > { %447 = vmatpush.msra.mxu1 %v428_v57 }
  0xa3   : > { %732 = vmatmul.msk.f32.vlgmr.msra.gmra.mxu1 %vm386_vm1, %v378_v55 }
  0xa5   : > { %729 = vmatmul.msk.f32.gmra.mxu0 %vm386_vm1, %v379_v58 }
  0xab   : > { %733 = vmatmul.msk.f32.gmra.mxu1 %vm386_vm1, %v379_v58 }
  0xad   : > { %730 = vmatmul.msk.f32.gmra.mxu0 %vm386_vm1, %v380_v59 }
  0xb3   : > { %734 = vmatmul.msk.f32.gmra.mxu1 %vm386_vm1, %v380_v59 }
  0xb5   : > { %731 = vmatmul.msk.f32.gmra.mxu0 %vm386_vm1, %v381_v60 }
  0xbb   : > { %735 = vmatmul.msk.f32.gmra.mxu1 %vm386_vm1, %v381_v60  ;;  %v600_v60 = vld [vmem:[%s984_s2 + $0x8] sm:$0xff] }
 0x11a   : > { %v416_v61 = vpop.f32.mrf.mxu0 }
 0x11b   : > { %v461_v9 = vmul.f32 0.00390625, %v416_v61 }
 0x11d   : > { %v469_v17 = vmul.f32 %v461_v9, %v461_v9 }
 0x120   : > { %v449_v62 = vpop.f32.mrf.mxu1 }
 0x121   : > { %v465_v18 = vmul.f32 0.00390625, %v449_v62 }
 0x122   : > { %v419_v63 = vpop.f32.mrf.mxu0 }
 0x123   : > { %v462_v6 = vmul.f32 0.00390625, %v419_v63  ;;  %v473_v21 = vsub.f32 %v465_v18, %v469_v17  ;;  %v602_v18 = vld [vmem:[%s984_s2 + $0x18] sm:$0xff] }
 0x125   : > { %v470_v13 = vmul.f32 %v462_v6, %v462_v6 }
 0x128   : > { %v452_v0 = vpop.f32.mrf.mxu1 }
 0x129   : > { %v466_v14 = vmul.f32 0.00390625, %v452_v0 }
 0x12a   : > { %v422_v1 = vpop.f32.mrf.mxu0 }
 0x12b   : > { %v463_v5 = vmul.f32 0.00390625, %v422_v1  ;;  %v474_v20 = vsub.f32 %v466_v14, %v470_v13  ;;  %v521_v13 = vld [vmem:[%s983_s1 + $0x18] sm:$0xff] }
 0x12d   : > { %v471_v10 = vmul.f32 %v463_v5, %v463_v5 }
 0x130   : > { %v455_v2 = vpop.f32.mrf.mxu1 }
 0x131   : > { %v467_v11 = vmul.f32 0.00390625, %v455_v2 }
 0x132   : > { %v425_v3 = vpop.f32.mrf.mxu0 }
 0x133   : > { %v464_v4 = vmul.f32 0.00390625, %v425_v3  ;;  %v475_v19 = vsub.f32 %v467_v11, %v471_v10  ;;  %v520_v3 = vld [vmem:[%s983_s1 + $0x10] sm:$0xff] }
 0x135   : > { %501 = vmatpush.msra.mxu2 %v464_v4  ;;  %v472_v7 = vmul.f32 %v464_v4, %v464_v4 }
 0x137   : > { %502 = vmatpush.msra.mxu2 %v463_v5 }
 0x138   : > { %v458_v8 = vpop.f32.mrf.mxu1 }
 0x139   : > { %v468_v12 = vmul.f32 0.00390625, %v458_v8  ;;  %503 = vmatpush.msra.mxu2 %v462_v6 }
 0x13b   : > { %504 = vmatpush.msra.mxu2 %v461_v9  ;;  %v476_v15 = vsub.f32 %v468_v12, %v472_v7  ;;  %v601_v9 = vld [vmem:[%s984_s2 + $0x10] sm:$0xff] }
 0x13c   : > { %736 = vmatmul.msk.f32.vlgmr.msra.gmra.mxu2 %vm386_vm1, %v374_v16 }
 0x13d   : > { %534 = vmatpush.msra.mxu3 %v476_v15 }
 0x13f   : > { %535 = vmatpush.msra.mxu3 %v475_v19 }
 0x141   : > { %536 = vmatpush.msra.mxu3 %v474_v20 }
 0x143   : > { %537 = vmatpush.msra.mxu3 %v473_v21 }
 0x144   : > { %740 = vmatmul.msk.f32.vlgmr.msra.gmra.mxu3 %vm386_vm1, %v374_v16  ;;  %737 = vmatmul.msk.f32.gmra.mxu2 %vm386_vm1, %v375_v22 }
 0x14c   : > { %741 = vmatmul.msk.f32.gmra.mxu3 %vm386_vm1, %v375_v22  ;;  %738 = vmatmul.msk.f32.gmra.mxu2 %vm386_vm1, %v376_v23 }
 0x154   : > { %742 = vmatmul.msk.f32.gmra.mxu3 %vm386_vm1, %v376_v23  ;;  %739 = vmatmul.msk.f32.gmra.mxu2 %vm386_vm1, %v377_v24 }
 0x15c   : > { %743 = vmatmul.msk.f32.gmra.mxu3 %vm386_vm1, %v377_v24 }
 0x1bf   : > { %v506_v33 = vpop.f32.mrf.mxu2 }
 0x1c7   : > { %v539_v25 = vpop.f32.mrf.mxu3  ;;  %v509_v49 = vpop.f32.mrf.mxu2 }
 0x1c8   : > { %v540_v26 = vadd.f32 1e-06, %v539_v25 }
 0x1ca   : > { %774 = vrsqrt.f32 %v540_v26  ;;  %vm557_vm3 = vweird.f32 %v540_v26 }
 0x1cf   : > { %v542_v27 = vpop.f32.mrf.mxu3  ;;  %v512_v2 = vpop.f32.mrf.mxu2 }
 0x1d0   : > { %v775_v28 = vpop.eup %774  ;;  %v543_v29 = vadd.f32 1e-06, %v542_v27 }
 0x1d1   : > { %v552_v30 = vmul.f32 %v775_v28, %v540_v26  ;;  %vm558_vm2 = vweird.f32 %v775_v28 }
 0x1d2   : > { %776 = vrsqrt.f32 %v543_v29  ;;  %vm559_vm4 = vmor %vm557_vm3, %vm558_vm2  ;;  %vm567_vm6 = vweird.f32 %v543_v29 }
 0x1d3   : > { %v553_v31 = vmul.f32 %v775_v28, %v552_v30 }
 0x1d5   : > { %v554_v32 = vmul.f32 0.5, %v553_v31 }
 0x1d7   : > { %v555_v34 = vsub.f32 1.5, %v554_v32  ;;  %v545_v35 = vpop.f32.mrf.mxu3  ;;  %v515_v15 = vpop.f32.mrf.mxu2 }
 0x1d8   : > { %v777_v36 = vpop.eup %776  ;;  %v546_v37 = vadd.f32 1e-06, %v545_v35 }
 0x1d9   : > { %v562_v38 = vmul.f32 %v777_v36, %v543_v29  ;;  %v556_v40 = vmul.f32 %v775_v28, %v555_v34  ;;  %vm568_vm5 = vweird.f32 %v777_v36 }
 0x1da   : > { %778 = vrsqrt.f32 %v546_v37  ;;  %vm569_vm7 = vmor %vm567_vm6, %vm568_vm5  ;;  %vm577_vm9 = vweird.f32 %v546_v37 }
 0x1db   : > { %v563_v41 = vmul.f32 %v777_v36, %v562_v38  ;;  %v560_v42 = vsel %vm559_vm4, %v775_v28, %v556_v40 }
 0x1dc   : > { %v591_v43 = vmul.f32 %v560_v42, %v518_v39 }
 0x1dd   : > { %v564_v44 = vmul.f32 0.5, %v563_v41 }
 0x1de   : > { %595 = vst.msk [vmem:[%s929_s30] sm:$0xff] %vm297_vm0, %v591_v43  ;;  %v603_v46 = vmul.f32 %v591_v43, %v506_v33 }
 0x1df   : > { %v565_v47 = vsub.f32 1.5, %v564_v44  ;;  %v548_v48 = vpop.f32.mrf.mxu3 }
 0x1e0   : > { %v779_v50 = vpop.eup %778  ;;  %v607_v51 = vsub.f32 %v599_v45, %v603_v46  ;;  %v549_v52 = vadd.f32 1e-06, %v548_v48 }
 0x1e1   : > { %v572_v53 = vmul.f32 %v779_v50, %v546_v37  ;;  %v566_v55 = vmul.f32 %v777_v36, %v565_v47  ;;  %vm578_vm8 = vweird.f32 %v779_v50 }
 0x1e2   : > { %611 = vst.msk [vmem:[%s939_s10] sm:$0xff] %vm297_vm0, %v607_v51  ;;  %780 = vrsqrt.f32 %v549_v52  ;;  %vm579_vm10 = vmor %vm577_vm9, %vm578_vm8  ;;  %vm587_vm12 = vweird.f32 %v549_v52 }
 0x1e3   : > { %v573_v56 = vmul.f32 %v779_v50, %v572_v53  ;;  %v570_v57 = vsel %vm569_vm7, %v777_v36, %v566_v55 }
 0x1e4   : > { %v592_v58 = vmul.f32 %v570_v57, %v519_v54 }
 0x1e5   : > { %v574_v59 = vmul.f32 0.5, %v573_v56 }
 0x1e6   : > { %596 = vst.msk [vmem:[%s929_s30 + $0x8] sm:$0xff] %vm297_vm0, %v592_v58  ;;  %v604_v61 = vmul.f32 %v592_v58, %v509_v49 }
 0x1e7   : > { %v575_v62 = vsub.f32 1.5, %v574_v59 }
 0x1e8   : > { %v781_v63 = vpop.eup %780  ;;  %v608_v0 = vsub.f32 %v600_v60, %v604_v61 }
 0x1e9   : > { %v582_v1 = vmul.f32 %v781_v63, %v549_v52  ;;  %v576_v4 = vmul.f32 %v779_v50, %v575_v62  ;;  %vm588_vm11 = vweird.f32 %v781_v63 }
 0x1ea   : > { %612 = vst.msk [vmem:[%s939_s10 + $0x8] sm:$0xff] %vm297_vm0, %v608_v0  ;;  %vm589_vm13 = vmor %vm587_vm12, %vm588_vm11 }
 0x1eb   : > { %v583_v5 = vmul.f32 %v781_v63, %v582_v1  ;;  %v580_v6 = vsel %vm579_vm10, %v779_v50, %v576_v4 }
 0x1ec   : > { %v593_v7 = vmul.f32 %v580_v6, %v520_v3 }
 0x1ed   : > { %v584_v8 = vmul.f32 0.5, %v583_v5 }
 0x1ee   : > { %597 = vst.msk [vmem:[%s929_s30 + $0x10] sm:$0xff] %vm297_vm0, %v593_v7  ;;  %v605_v10 = vmul.f32 %v593_v7, %v512_v2 }
 0x1ef   : > { %v585_v11 = vsub.f32 1.5, %v584_v8 }
 0x1f0   : > { %v609_v12 = vsub.f32 %v601_v9, %v605_v10 }
 0x1f1   : > { %v586_v14 = vmul.f32 %v781_v63, %v585_v11 }
 0x1f2   : > { %613 = vst.msk [vmem:[%s939_s10 + $0x10] sm:$0xff] %vm297_vm0, %v609_v12 }
 0x1f3   : > { %v590_v16 = vsel %vm589_vm13, %v781_v63, %v586_v14 }
 0x1f4   : > { %v594_v17 = vmul.f32 %v590_v16, %v521_v13 }
 0x1f6   : > { %598 = vst.msk [vmem:[%s929_s30 + $0x18] sm:$0xff] %vm297_vm0, %v594_v17  ;;  %v606_v19 = vmul.f32 %v594_v17, %v515_v15 }
 0x1f8   : > { %v610_v20 = vsub.f32 %v602_v18, %v606_v19 }
 0x1fa   : > { %614 = vst.msk [vmem:[%s939_s10 + $0x18] sm:$0xff] %vm297_vm0, %v610_v20 }
 0x1fb PF: > { %s17_s23 = sadd.s32 1, %s804_s23   ;;  %s989_s21 = smov %s800_s22 }
 0x1fc   : > { %p14_p5 = scmp.ge.s32.totalorder %s17_s23, 4   ;;  %s990_s22 = smov %s992_s24 }
 0x1fe   :  { %16 = sbr.rel (!%p14_p5) target bundleno = 2 (0x2), region = 90 }

// kernel: mem_efficient_attn_block.4
= control target key start
LH: loop header
LB: loop body
LE: loop exit
PB: predicated region body
PF: predicated region fallthrough
CT: control target
= control target key end

     0   :  { %s1194_s21 = smov 0   ;;  %s1196_s22 = smov 0   ;;  %s1391_s0 = inlined_call_operand.vmem [shape: f32[2,32,256], index: 0, kind: input, shape index: {}]   ;;  %s1392_s1 = inlined_call_operand.vmem [shape: f32[2,32,1], index: 1, kind: input, shape index: {}]   ;;  %s1393_s2 = inlined_call_operand.vmem [shape: f32[2,32,1], index: 2, kind: input, shape index: {}]   ;;  %s1394_s3 = inlined_call_operand.vmem [shape: bf16[96,32], index: 3, kind: input, shape index: {}]   ;;  %s1395_s4 = inlined_call_operand.vmem [shape: f32[96,1], index: 4, kind: input, shape index: {}]   ;;  %s1396_s5 = inlined_call_operand.vmem [shape: bf16[2,64,256], index: 5, kind: output, shape index: {0}]   ;;  %s1397_s6 = inlined_call_operand.vmem [shape: bf16[2,256,32], index: 6, kind: output, shape index: {1}]  }
   0x1   :  { %s1198_s23 = smov 0  }
   0x2 LB: > { %s29_s24 = sadd.s32 1, %s1152_s22  ;;  %p953_p0 = scmp.ge.s32.totalorder %s1156_s23, 1  ;;  %s1156_s23 = sphi %s1198_s23, %s17_s23   ;;  %s1152_s22 = sphi %s1196_s22, %s1399_s22   ;;  %s1148_s21 = sphi %s1194_s21, %s1398_s21  }
   0x3   : > { %p31_p1 = scmp.ge.s32.totalorder %s29_s24, 2  ;;  %p258_p2 = scmp.lt.s32.totalorder %s1156_s23, 3 }
   0x5   : > { %s1401_s24 = smov (%p31_p1, %s29_s24), 0  ;;  %p259_p3 = pnand %p953_p0, %p258_p2 }
   0x6   : > { %p316_p4 = scmp.lt.s32.totalorder (!%p259_p3), %s1148_s21, 1 }
   0x7   : > { %262 = sbr.rel (%p259_p3) target bundleno = 588 (0x24c), region = 40 }
   0xc   : > { %v1158_v0 = vmov 0   ;;  %s1403_s21 = smov (!%p316_p4, %s1148_s21), 1  ;;  %v444_v9 = vld [vmem:[%s1395_s4] sm:$0xff]  ;;  %v446_v10 = vld [vmem:[%s1395_s4 + $0x10] sm:$0xff]  ;;  %v445_v11 = vld [vmem:[%s1395_s4 + $0x8] sm:$0xff]  ;;  %vm546_vm0 = vcmask 261120  }
   0xd   : > { %1045 = vset.pattern.permute.xlu2 %v1158_v0  ;;  %1044 = vset.pattern.permute.xlu1 %v1158_v0  ;;  %s1003_s25 = sshll.u32 %s1403_s21, 5  ;;  %v447_v12 = vld [vmem:[%s1395_s4 + $0x18] sm:$0xff]  ;;  %v453_v13 = vld [vmem:[%s1395_s4 + $0x48] sm:$0xff]  ;;  %v452_v14 = vld [vmem:[%s1395_s4 + $0x40] sm:$0xff]  ;;  %s1002_s12 = sshll.u32 %s1403_s21, 6  ;;  %vm755_vm1 = vcmask 257024  }
   0xe   : > { %1043 = vset.pattern.permute.xlu0 %v1158_v0  ;;  %s334_s28 = scalar_lea.vmem %s1393_s2, %s1003_s25  ;;  %s329_s7 = scalar_lea.vmem %s1392_s1, %s1003_s25  ;;  %v454_v15 = vld [vmem:[%s1395_s4 + $0x50] sm:$0xff]  ;;  %v448_v16 = vld [vmem:[%s1395_s4 + $0x20] sm:$0xff]  ;;  %v455_v17 = vld [vmem:[%s1395_s4 + $0x58] sm:$0xff] }
   0xf   : > { %v398_v1 = vld [vmem:[%s334_s28 + $0x10] sm:$0xff]  ;;  %v364_v3 = vld [vmem:[%s329_s7] sm:$0xff]  ;;  %v399_v4 = vld [vmem:[%s334_s28 + $0x18] sm:$0xff]  ;;  %s323_s15 = scalar_lea.vmem %s1391_s0, %s1002_s12  ;;  %s1300_s10 = scalar_lea.vmem %s1396_s5, %s1002_s12 }
  0x10   : > { %412 = vperm.xlu1 %1044, %v398_v1   ;;  %v366_v2 = vld [vmem:[%s329_s7 + $0x10] sm:$0xff]  ;;  %370 = vperm.xlu2 %1045, %v364_v3   ;;  %v367_v5 = vld [vmem:[%s329_s7 + $0x18] sm:$0xff]  ;;  %v365_v6 = vld [vmem:[%s329_s7 + $0x8] sm:$0xff]  ;;  %s1006_s11 = sshll.u32 %s1403_s21, 7 }
  0x11   : > { %380 = vperm.xlu0 %1043, %v366_v2   ;;  %v397_v7 = vld [vmem:[%s334_s28 + $0x8] sm:$0xff]  ;;  %v396_v8 = vld [vmem:[%s334_s28] sm:$0xff]  ;;  %v451_v19 = vld [vmem:[%s1395_s4 + $0x38] sm:$0xff]  ;;  %s1316_s14 = scalar_lea.vmem %s1397_s6, %s1006_s11 }
  0x12   : > { %v449_v18 = vld [vmem:[%s1395_s4 + $0x28] sm:$0xff]  ;;  %v450_v20 = vld [vmem:[%s1395_s4 + $0x30] sm:$0xff]  ;;  %v360_v24 = vld [vmem:[%s323_s15 + $0x20] sm:$0xff] }
  0x13   : > { %v361_v25 = vld [vmem:[%s323_s15 + $0x28] sm:$0xff]  ;;  %v362_v26 = vld [vmem:[%s323_s15 + $0x30] sm:$0xff]  ;;  %v363_v27 = vld [vmem:[%s323_s15 + $0x38] sm:$0xff] }
  0x14   : > { %v358_v34 = vld [vmem:[%s323_s15 + $0x10] sm:$0xff]  ;;  %v359_v35 = vld [vmem:[%s323_s15 + $0x18] sm:$0xff]  ;;  %v356_v40 = vld [vmem:[%s323_s15] sm:$0xff] }
  0x15   : > { %v357_v41 = vld [vmem:[%s323_s15 + $0x8] sm:$0xff]  ;;  %v1007_v57 = vld [vmem:[%s1394_s3] sm:$0xff]  ;;  %v1010_v58 = vld [vmem:[%s1394_s3 + $0x18] sm:$0xff] }
  0x16   : > { %v1008_v59 = vld [vmem:[%s1394_s3 + $0x8] sm:$0xff]  ;;  %v1011_v60 = vld [vmem:[%s1394_s3 + $0x20] sm:$0xff]  ;;  %v1009_v61 = vld [vmem:[%s1394_s3 + $0x10] sm:$0xff] }
  0x17   : > { %v1012_v62 = vld [vmem:[%s1394_s3 + $0x28] sm:$0xff] }
  0x18   : > { %417 = vperm.xlu1 %1044, %v399_v4   ;;  %375 = vperm.xlu2 %1045, %v365_v6  }
  0x19   : > { %385 = vperm.xlu0 %1043, %v367_v5  }
  0x20   : > { %407 = vperm.xlu1 %1044, %v397_v7   ;;  %458 = vperm.xlu2 %1045, %v444_v9  }
  0x21   : > { %402 = vperm.xlu0 %1043, %v396_v8  }
  0x28   : > { %468 = vperm.xlu1 %1044, %v446_v10   ;;  %473 = vperm.xlu2 %1045, %v447_v12  }
  0x29   : > { %463 = vperm.xlu0 %1043, %v445_v11  }
  0x30   : > { %503 = vperm.xlu1 %1044, %v453_v13   ;;  %508 = vperm.xlu2 %1045, %v454_v15  }
  0x31   : > { %498 = vperm.xlu0 %1043, %v452_v14  }
  0x38   : > { %478 = vperm.xlu1 %1044, %v448_v16   ;;  %483 = vperm.xlu2 %1045, %v449_v18  }
  0x39   : > { %513 = vperm.xlu0 %1043, %v455_v17  }
  0x40   : > { %493 = vperm.xlu1 %1044, %v451_v19  }
  0x41   : > { %488 = vperm.xlu0 %1043, %v450_v20  }
  0x6a   : > { %v371_v23 = vpop.permute.xlu2 %370 }
  0x6b   : > { %v388_v47 = vmul.f32 %v371_v23, %v356_v40  ;;  %v389_v48 = vmul.f32 %v371_v23, %v357_v41 }
  0x72   : > { %v376_v42 = vpop.permute.xlu2 %375 }
  0x73   : > { %v390_v45 = vmul.f32 %v376_v42, %v358_v34  ;;  %v391_v46 = vmul.f32 %v376_v42, %v359_v35 }
  0x7a   : > { %v459_v4 = vpop.permute.xlu2 %458 }
  0x82   : > { %v413_v21 = vpop.permute.xlu1 %412 }
  0x83   : > { %v381_v22 = vpop.permute.xlu0 %380 }
  0x84   : > { %v392_v28 = vmul.f32 %v381_v22, %v360_v24  ;;  %v393_v29 = vmul.f32 %v381_v22, %v361_v25 }
  0x86   : > { %v424_v36 = vadd.f32 %v413_v21, %v392_v28  ;;  %v425_v38 = vadd.f32 %v413_v21, %v393_v29 }
  0x8a   : > { %v418_v30 = vpop.permute.xlu1 %417 }
  0x8b   : > { %v386_v31 = vpop.permute.xlu0 %385 }
  0x8c   : > { %v394_v32 = vmul.f32 %v386_v31, %v362_v26  ;;  %v395_v33 = vmul.f32 %v386_v31, %v363_v27 }
  0x8e   : > { %v426_v37 = vadd.f32 %v418_v30, %v394_v32  ;;  %v427_v39 = vadd.f32 %v418_v30, %v395_v33  ;;  %v474_v32 = vpop.permute.xlu2 %473 }
  0x90   : > { %v442_v43 = vpack.c.bf16 %v426_v37, %v424_v36  ;;  %v443_v44 = vpack.c.bf16 %v427_v39, %v425_v38 }
  0x92   : > { %571 = vmatpush.bf16.msra.mxu0 %v442_v43  ;;  %1013 = vmatpush.bf16.msra.mxu2 %v442_v43  ;;  %v408_v49 = vpop.permute.xlu1 %407 }
  0x93   : > { %610 = vmatpush.bf16.msra.mxu1 %v443_v44  ;;  %1015 = vmatpush.bf16.msra.mxu3 %v443_v44  ;;  %v422_v50 = vadd.f32 %v408_v49, %v390_v45  ;;  %v423_v51 = vadd.f32 %v408_v49, %v391_v46  ;;  %v403_v52 = vpop.permute.xlu0 %402 }
  0x94   : > { %v420_v53 = vadd.f32 %v403_v52, %v388_v47  ;;  %v421_v54 = vadd.f32 %v403_v52, %v389_v48 }
  0x96   : > { %v440_v55 = vpack.c.bf16 %v422_v50, %v420_v53  ;;  %v441_v56 = vpack.c.bf16 %v423_v51, %v421_v54  ;;  %v509_v44 = vpop.permute.xlu2 %508 }
  0x98   : > { %572 = vmatpush.bf16.msra.mxu0 %v440_v55  ;;  %1014 = vmatpush.bf16.msra.mxu2 %v440_v55 }
  0x99   : > { %611 = vmatpush.bf16.msra.mxu1 %v441_v56  ;;  %1016 = vmatpush.bf16.msra.mxu3 %v441_v56 }
  0x9a   : > { %v469_v0 = vpop.permute.xlu1 %468 }
  0x9b   : > { %988 = vmatmul.msk.bf16.vlgmr.msra.gmra.mxu0 %vm546_vm0, %v1007_v57  ;;  %991 = vmatmul.msk.bf16.vlgmr.msra.gmra.mxu2 %vm546_vm0, %v1010_v58  ;;  %v464_v63 = vpop.permute.xlu0 %463 }
  0x9c   : > { %994 = vmatmul.msk.bf16.vlgmr.msra.gmra.mxu1 %vm546_vm0, %v1007_v57  ;;  %997 = vmatmul.msk.bf16.vlgmr.msra.gmra.mxu3 %vm546_vm0, %v1010_v58 }
  0x9e   : > { %v484_v58 = vpop.permute.xlu2 %483 }
  0xa2   : > { %v504_v2 = vpop.permute.xlu1 %503 }
  0xa3   : > { %v499_v1 = vpop.permute.xlu0 %498 }
  0xaa   : > { %v479_v9 = vpop.permute.xlu1 %478 }
  0xab   : > { %989 = vmatmul.msk.bf16.gmra.mxu0 %vm546_vm0, %v1008_v59  ;;  %992 = vmatmul.msk.bf16.gmra.mxu2 %vm546_vm0, %v1011_v60  ;;  %v1293_v3 = vpop.permute.xlu0 %513 }
  0xac   : > { %995 = vmatmul.msk.bf16.gmra.mxu1 %vm546_vm0, %v1008_v59  ;;  %998 = vmatmul.msk.bf16.gmra.mxu3 %vm546_vm0, %v1011_v60 }
  0xb2   : > { %v494_v22 = vpop.permute.xlu1 %493 }
  0xb3   : > { %v489_v11 = vpop.permute.xlu0 %488 }
  0xbb   : > { %990 = vmatmul.msk.bf16.gmra.mxu0 %vm546_vm0, %v1009_v61  ;;  %993 = vmatmul.msk.bf16.gmra.mxu2 %vm546_vm0, %v1012_v62 }
  0xbc   : > { %996 = vmatmul.msk.bf16.gmra.mxu1 %vm546_vm0, %v1009_v61  ;;  %999 = vmatmul.msk.bf16.gmra.mxu3 %vm546_vm0, %v1012_v62 }
 0x118   : > { %v574_v5 = vpop.f32.mrf.mxu0 }
 0x119   : > { %v575_v6 = vadd.f32 %v574_v5, %v459_v4  ;;  %v613_v7 = vpop.f32.mrf.mxu1 }
 0x11a   : > { %v614_v8 = vadd.f32 %v613_v7, %v459_v4 }
 0x11c   : > { %v643_v10 = vpack.c.bf16 %v614_v8, %v575_v6 }
 0x11e   : > { %651 = vst [vmem:[%s1300_s10] sm:$0xff] %v643_v10  ;;  %v589_v12 = vpop.f32.mrf.mxu2 }
 0x11f   : > { %v590_v13 = vadd.f32 %v589_v12, %v489_v11  ;;  %v628_v14 = vpop.f32.mrf.mxu3 }
 0x120   : > { %v629_v15 = vadd.f32 %v628_v14, %v489_v11  ;;  %v576_v16 = vpop.f32.mrf.mxu0 }
 0x121   : > { %v577_v17 = vadd.f32 %v576_v16, %v464_v63  ;;  %v615_v18 = vpop.f32.mrf.mxu1 }
 0x122   : > { %v649_v19 = vpack.c.bf16 %v629_v15, %v590_v13  ;;  %v616_v20 = vadd.f32 %v615_v18, %v464_v63 }
 0x124   : > { %657 = vst [vmem:[%s1300_s10 + $0x30] sm:$0xff] %v649_v19  ;;  %v644_v21 = vpack.c.bf16 %v616_v20, %v577_v17 }
 0x126   : > { %652 = vst [vmem:[%s1300_s10 + $0x8] sm:$0xff] %v644_v21  ;;  %v591_v23 = vpop.f32.mrf.mxu2 }
 0x127   : > { %v592_v24 = vadd.f32 %v591_v23, %v494_v22  ;;  %v630_v25 = vpop.f32.mrf.mxu3 }
 0x128   : > { %v631_v26 = vadd.f32 %v630_v25, %v494_v22  ;;  %v579_v27 = vpop.f32.mrf.mxu0 }
 0x129   : > { %v580_v28 = vadd.f32 %v579_v27, %v469_v0  ;;  %v618_v29 = vpop.f32.mrf.mxu1 }
 0x12a   : > { %v650_v30 = vpack.c.bf16 %v631_v26, %v592_v24  ;;  %v619_v31 = vadd.f32 %v618_v29, %v469_v0 }
 0x12c   : > { %658 = vst [vmem:[%s1300_s10 + $0x38] sm:$0xff] %v650_v30  ;;  %v645_v33 = vpack.c.bf16 %v619_v31, %v580_v28 }
 0x12e   : > { %653 = vst [vmem:[%s1300_s10 + $0x10] sm:$0xff] %v645_v33  ;;  %v594_v34 = vpop.f32.mrf.mxu2 }
 0x12f   : > { %v595_v35 = vadd.f32 %v594_v34, %v499_v1  ;;  %v633_v36 = vpop.f32.mrf.mxu3 }
 0x130   : > { %v634_v37 = vadd.f32 %v633_v36, %v499_v1  ;;  %v581_v38 = vpop.f32.mrf.mxu0 }
 0x131   : > { %v582_v39 = vadd.f32 %v581_v38, %v474_v32  ;;  %v620_v40 = vpop.f32.mrf.mxu1 }
 0x132   : > { %v1046_v41 = vpack.i.bf16 %v634_v37, %v595_v35  ;;  %v621_v42 = vadd.f32 %v620_v40, %v474_v32 }
 0x134   : > { %v646_v43 = vpack.c.bf16 %v621_v42, %v582_v39  ;;  %1047 = vxpose.xlu2.b32.start [1/4] (short) %v1046_v41, 128 }
 0x136   : > { %654 = vst [vmem:[%s1300_s10 + $0x18] sm:$0xff] %v646_v43  ;;  %v596_v45 = vpop.f32.mrf.mxu2 }
 0x137   : > { %v597_v46 = vadd.f32 %v596_v45, %v504_v2  ;;  %v635_v47 = vpop.f32.mrf.mxu3 }
 0x138   : > { %v636_v48 = vadd.f32 %v635_v47, %v504_v2  ;;  %v584_v49 = vpop.f32.mrf.mxu0 }
 0x139   : > { %v585_v50 = vadd.f32 %v584_v49, %v479_v9  ;;  %v623_v51 = vpop.f32.mrf.mxu1 }
 0x13a   : > { %v1048_v52 = vpack.i.bf16 %v636_v48, %v597_v46  ;;  %v624_v53 = vadd.f32 %v623_v51, %v479_v9 }
 0x13c   : > { %v647_v54 = vpack.c.bf16 %v624_v53, %v585_v50  ;;  %1049 = vxpose.xlu2.b32.cont [2/4] (short) %v1048_v52, 128 }
 0x13e   : > { %655 = vst [vmem:[%s1300_s10 + $0x20] sm:$0xff] %v647_v54  ;;  %v599_v55 = vpop.f32.mrf.mxu2 }
 0x13f   : > { %v600_v56 = vadd.f32 %v599_v55, %v509_v44  ;;  %v638_v57 = vpop.f32.mrf.mxu3 }
 0x140   : > { %v639_v59 = vadd.f32 %v638_v57, %v509_v44  ;;  %v586_v60 = vpop.f32.mrf.mxu0 }
 0x141   : > { %v587_v61 = vadd.f32 %v586_v60, %v484_v58  ;;  %v625_v62 = vpop.f32.mrf.mxu1 }
 0x142   : > { %v1050_v63 = vpack.i.bf16 %v639_v59, %v600_v56  ;;  %v626_v0 = vadd.f32 %v625_v62, %v484_v58 }
 0x144   : > { %v648_v1 = vpack.c.bf16 %v626_v0, %v587_v61  ;;  %1051 = vxpose.xlu2.b32.cont [3/4] (short) %v1050_v63, 128 }
 0x146   : > { %656 = vst [vmem:[%s1300_s10 + $0x28] sm:$0xff] %v648_v1  ;;  %v601_v2 = vpop.f32.mrf.mxu2 }
 0x147   : > { %v602_v4 = vadd.f32 %v601_v2, %v1293_v3  ;;  %v640_v5 = vpop.f32.mrf.mxu3 }
 0x148   : > { %v641_v6 = vadd.f32 %v640_v5, %v1293_v3 }
 0x14a   : > { %v1052_v7 = vpack.i.bf16 %v641_v6, %v602_v4 }
 0x14c   : > { %1053 = vxpose.xlu2.b32.end [4/4] (short) %v1052_v7, 128 }
 0x1cd   : > { %v1054_v8 = vpop.trf.xlu2 }
 0x1ce   : > { %v1058_v9 = vunpack.i.h.bf16 %v1054_v8  ;;  %v1055_v10 = vunpack.i.l.bf16 %v1054_v8 }
 0x1d0   : > { %v739_v11 = vpack.c.bf16 %v1058_v9, %v1058_v9  ;;  %v723_v12 = vpack.c.bf16 %v1055_v10, %v1055_v10 }
 0x1d2   : > { %772 = vst.msk [vmem:[%s1316_s14 + $0x40] sm:$0xf] %vm755_vm1, %v739_v11 }
 0x1d3   : > { %756 = vst.msk [vmem:[%s1316_s14] sm:$0xf] %vm755_vm1, %v723_v12 }
 0x1d5   : > { %v1059_v3 = vpop.trf.xlu2 }
 0x1d6   : > { %v1063_v13 = vunpack.i.h.bf16 %v1059_v3  ;;  %v1060_v14 = vunpack.i.l.bf16 %v1059_v3 }
 0x1d8   : > { %v740_v15 = vpack.c.bf16 %v1063_v13, %v1063_v13  ;;  %v724_v16 = vpack.c.bf16 %v1060_v14, %v1060_v14 }
 0x1da   : > { %773 = vst.msk [vmem:[%s1316_s14 + $0x44] sm:$0xf] %vm755_vm1, %v740_v15 }
 0x1db   : > { %757 = vst.msk [vmem:[%s1316_s14 + $0x4] sm:$0xf] %vm755_vm1, %v724_v16 }
 0x1dd   : > { %v1064_v17 = vpop.trf.xlu2 }
 0x1de   : > { %v1068_v18 = vunpack.i.h.bf16 %v1064_v17  ;;  %v1065_v19 = vunpack.i.l.bf16 %v1064_v17 }
 0x1e0   : > { %v741_v20 = vpack.c.bf16 %v1068_v18, %v1068_v18  ;;  %v725_v21 = vpack.c.bf16 %v1065_v19, %v1065_v19 }
 0x1e2   : > { %774 = vst.msk [vmem:[%s1316_s14 + $0x48] sm:$0xf] %vm755_vm1, %v741_v20 }
 0x1e3   : > { %758 = vst.msk [vmem:[%s1316_s14 + $0x8] sm:$0xf] %vm755_vm1, %v725_v21 }
 0x1e5   : > { %v1069_v22 = vpop.trf.xlu2 }
 0x1e6   : > { %v1073_v23 = vunpack.i.h.bf16 %v1069_v22  ;;  %v1070_v24 = vunpack.i.l.bf16 %v1069_v22 }
 0x1e8   : > { %v742_v25 = vpack.c.bf16 %v1073_v23, %v1073_v23  ;;  %v726_v26 = vpack.c.bf16 %v1070_v24, %v1070_v24 }
 0x1ea   : > { %775 = vst.msk [vmem:[%s1316_s14 + $0x4c] sm:$0xf] %vm755_vm1, %v742_v25 }
 0x1eb   : > { %759 = vst.msk [vmem:[%s1316_s14 + $0xc] sm:$0xf] %vm755_vm1, %v726_v26 }
 0x1ed   : > { %v1074_v27 = vpop.trf.xlu2 }
 0x1ee   : > { %v1078_v28 = vunpack.i.h.bf16 %v1074_v27  ;;  %v1075_v29 = vunpack.i.l.bf16 %v1074_v27 }
 0x1f0   : > { %v743_v30 = vpack.c.bf16 %v1078_v28, %v1078_v28  ;;  %v727_v31 = vpack.c.bf16 %v1075_v29, %v1075_v29 }
 0x1f2   : > { %776 = vst.msk [vmem:[%s1316_s14 + $0x50] sm:$0xf] %vm755_vm1, %v743_v30 }
 0x1f3   : > { %760 = vst.msk [vmem:[%s1316_s14 + $0x10] sm:$0xf] %vm755_vm1, %v727_v31 }
 0x1f5   : > { %v1079_v32 = vpop.trf.xlu2 }
 0x1f6   : > { %v1083_v33 = vunpack.i.h.bf16 %v1079_v32  ;;  %v1080_v34 = vunpack.i.l.bf16 %v1079_v32 }
 0x1f8   : > { %v744_v35 = vpack.c.bf16 %v1083_v33, %v1083_v33  ;;  %v728_v36 = vpack.c.bf16 %v1080_v34, %v1080_v34 }
 0x1fa   : > { %777 = vst.msk [vmem:[%s1316_s14 + $0x54] sm:$0xf] %vm755_vm1, %v744_v35 }
 0x1fb   : > { %761 = vst.msk [vmem:[%s1316_s14 + $0x14] sm:$0xf] %vm755_vm1, %v728_v36 }
 0x1fd   : > { %v1084_v37 = vpop.trf.xlu2 }
 0x1fe   : > { %v1088_v38 = vunpack.i.h.bf16 %v1084_v37  ;;  %v1085_v39 = vunpack.i.l.bf16 %v1084_v37 }
 0x200   : > { %v745_v40 = vpack.c.bf16 %v1088_v38, %v1088_v38  ;;  %v729_v41 = vpack.c.bf16 %v1085_v39, %v1085_v39 }
 0x202   : > { %778 = vst.msk [vmem:[%s1316_s14 + $0x58] sm:$0xf] %vm755_vm1, %v745_v40 }
 0x203   : > { %762 = vst.msk [vmem:[%s1316_s14 + $0x18] sm:$0xf] %vm755_vm1, %v729_v41 }
 0x205   : > { %v1089_v42 = vpop.trf.xlu2 }
 0x206   : > { %v1093_v43 = vunpack.i.h.bf16 %v1089_v42  ;;  %v1090_v44 = vunpack.i.l.bf16 %v1089_v42 }
 0x208   : > { %v746_v45 = vpack.c.bf16 %v1093_v43, %v1093_v43  ;;  %v730_v46 = vpack.c.bf16 %v1090_v44, %v1090_v44 }
 0x20a   : > { %779 = vst.msk [vmem:[%s1316_s14 + $0x5c] sm:$0xf] %vm755_vm1, %v746_v45 }
 0x20b   : > { %763 = vst.msk [vmem:[%s1316_s14 + $0x1c] sm:$0xf] %vm755_vm1, %v730_v46 }
 0x20d   : > { %v1094_v47 = vpop.trf.xlu2 }
 0x20e   : > { %v1098_v48 = vunpack.i.h.bf16 %v1094_v47  ;;  %v1095_v49 = vunpack.i.l.bf16 %v1094_v47 }
 0x210   : > { %v747_v50 = vpack.c.bf16 %v1098_v48, %v1098_v48  ;;  %v731_v51 = vpack.c.bf16 %v1095_v49, %v1095_v49 }
 0x212   : > { %780 = vst.msk [vmem:[%s1316_s14 + $0x60] sm:$0xf] %vm755_vm1, %v747_v50 }
 0x213   : > { %764 = vst.msk [vmem:[%s1316_s14 + $0x20] sm:$0xf] %vm755_vm1, %v731_v51 }
 0x215   : > { %v1099_v52 = vpop.trf.xlu2 }
 0x216   : > { %v1103_v53 = vunpack.i.h.bf16 %v1099_v52  ;;  %v1100_v54 = vunpack.i.l.bf16 %v1099_v52 }
 0x218   : > { %v748_v55 = vpack.c.bf16 %v1103_v53, %v1103_v53  ;;  %v732_v56 = vpack.c.bf16 %v1100_v54, %v1100_v54 }
 0x21a   : > { %781 = vst.msk [vmem:[%s1316_s14 + $0x64] sm:$0xf] %vm755_vm1, %v748_v55 }
 0x21b   : > { %765 = vst.msk [vmem:[%s1316_s14 + $0x24] sm:$0xf] %vm755_vm1, %v732_v56 }
 0x21d   : > { %v1104_v57 = vpop.trf.xlu2 }
 0x21e   : > { %v1108_v58 = vunpack.i.h.bf16 %v1104_v57  ;;  %v1105_v59 = vunpack.i.l.bf16 %v1104_v57 }
 0x220   : > { %v749_v60 = vpack.c.bf16 %v1108_v58, %v1108_v58  ;;  %v733_v61 = vpack.c.bf16 %v1105_v59, %v1105_v59 }
 0x222   : > { %782 = vst.msk [vmem:[%s1316_s14 + $0x68] sm:$0xf] %vm755_vm1, %v749_v60 }
 0x223   : > { %766 = vst.msk [vmem:[%s1316_s14 + $0x28] sm:$0xf] %vm755_vm1, %v733_v61 }
 0x225   : > { %v1109_v62 = vpop.trf.xlu2 }
 0x226   : > { %v1113_v63 = vunpack.i.h.bf16 %v1109_v62  ;;  %v1110_v0 = vunpack.i.l.bf16 %v1109_v62 }
 0x228   : > { %v750_v1 = vpack.c.bf16 %v1113_v63, %v1113_v63  ;;  %v734_v2 = vpack.c.bf16 %v1110_v0, %v1110_v0 }
 0x22a   : > { %783 = vst.msk [vmem:[%s1316_s14 + $0x6c] sm:$0xf] %vm755_vm1, %v750_v1 }
 0x22b   : > { %767 = vst.msk [vmem:[%s1316_s14 + $0x2c] sm:$0xf] %vm755_vm1, %v734_v2 }
 0x22d   : > { %v1114_v4 = vpop.trf.xlu2 }
 0x22e   : > { %v1118_v5 = vunpack.i.h.bf16 %v1114_v4  ;;  %v1115_v6 = vunpack.i.l.bf16 %v1114_v4 }
 0x230   : > { %v751_v7 = vpack.c.bf16 %v1118_v5, %v1118_v5  ;;  %v735_v8 = vpack.c.bf16 %v1115_v6, %v1115_v6 }
 0x232   : > { %784 = vst.msk [vmem:[%s1316_s14 + $0x70] sm:$0xf] %vm755_vm1, %v751_v7 }
 0x233   : > { %768 = vst.msk [vmem:[%s1316_s14 + $0x30] sm:$0xf] %vm755_vm1, %v735_v8 }
 0x235   : > { %v1119_v9 = vpop.trf.xlu2 }
 0x236   : > { %v1123_v10 = vunpack.i.h.bf16 %v1119_v9  ;;  %v1120_v11 = vunpack.i.l.bf16 %v1119_v9 }
 0x238   : > { %v752_v12 = vpack.c.bf16 %v1123_v10, %v1123_v10  ;;  %v736_v3 = vpack.c.bf16 %v1120_v11, %v1120_v11 }
 0x23a   : > { %785 = vst.msk [vmem:[%s1316_s14 + $0x74] sm:$0xf] %vm755_vm1, %v752_v12 }
 0x23b   : > { %769 = vst.msk [vmem:[%s1316_s14 + $0x34] sm:$0xf] %vm755_vm1, %v736_v3 }
 0x23d   : > { %v1124_v13 = vpop.trf.xlu2 }
 0x23e   : > { %v1128_v14 = vunpack.i.h.bf16 %v1124_v13  ;;  %v1125_v15 = vunpack.i.l.bf16 %v1124_v13 }
 0x240   : > { %v753_v16 = vpack.c.bf16 %v1128_v14, %v1128_v14  ;;  %v737_v17 = vpack.c.bf16 %v1125_v15, %v1125_v15 }
 0x242   : > { %786 = vst.msk [vmem:[%s1316_s14 + $0x78] sm:$0xf] %vm755_vm1, %v753_v16 }
 0x243   : > { %770 = vst.msk [vmem:[%s1316_s14 + $0x38] sm:$0xf] %vm755_vm1, %v737_v17 }
 0x245   : > { %v1129_v18 = vpop.trf.xlu2 }
 0x246   : > { %v1133_v19 = vunpack.i.h.bf16 %v1129_v18  ;;  %v1130_v20 = vunpack.i.l.bf16 %v1129_v18 }
 0x248   : > { %v754_v21 = vpack.c.bf16 %v1133_v19, %v1133_v19  ;;  %v738_v22 = vpack.c.bf16 %v1130_v20, %v1130_v20 }
 0x24a   : > { %787 = vst.msk [vmem:[%s1316_s14 + $0x7c] sm:$0xf] %vm755_vm1, %v754_v21 }
 0x24b   : > { %771 = vst.msk [vmem:[%s1316_s14 + $0x3c] sm:$0xf] %vm755_vm1, %v738_v22 }
 0x24c PF: > { %s17_s23 = sadd.s32 1, %s1156_s23   ;;  %s1398_s21 = smov %s1152_s22 }
 0x24d   : > { %p14_p5 = scmp.ge.s32.totalorder %s17_s23, 4   ;;  %s1399_s22 = smov %s1401_s24 }
 0x24f   :  { %16 = sbr.rel (!%p14_p5) target bundleno = 2 (0x2), region = 88 }

// kernel: mem_efficient_attn_block.5
= control target key start
LH: loop header
LB: loop body
LE: loop exit
PB: predicated region body
PF: predicated region fallthrough
CT: control target
= control target key end

     0   :  { %s2907_s0 = inlined_call_operand.vmem [shape: bf16[2,64,256], index: 0, kind: input, shape index: {}, may-alias: {0,1}]   ;;  %s2908_s1 = inlined_call_operand.vmem [shape: bf16[2,64,256], index: 1, kind: input, shape index: {}, may-alias: {0,1}]   ;;  %s2909_s2 = inlined_call_operand.vmem [shape: bf16[2,256,32], index: 2, kind: input, shape index: {}]   ;;  %s2910_s3 = inlined_call_operand.vmem [shape: f32[2,32,256], index: 3, kind: input, shape index: {}]   ;;  %s2911_s4 = inlined_call_operand.vmem [shape: bf16[32,32], index: 4, kind: input, shape index: {}]   ;;  %s2912_s5 = inlined_call_operand.vmem [shape: f32[32,1], index: 5, kind: input, shape index: {}]   ;;  %s2913_s6 = inlined_call_operand.vmem [shape: f32[2,32,256], index: 6, kind: output, shape index: {}]  }
   0x1   :  { %2917 = sst [smem:[#allocation13_spill]] %s2907_s0 }
   0x2   :  { %2918 = sst [smem:[#allocation14_spill]] %s2908_s1 }
   0x3   :  { %2919 = sst [smem:[#allocation15_spill]] %s2913_s6 }
   0x4   :  { %s2276_s21 = smov 0   ;;  %s2278_s22 = smov 0  }
   0x5   :  { %s2280_s23 = smov 0   ;;  %s2282_s24 = smov 0  }
   0x6   :  { %s2284_s25 = smov 0   ;;  %s2286_s26 = smov 0  }
   0x7   :  { %s2288_s27 = smov 0   ;;  %s2290_s28 = smov 0  }
   0x8   :  { %s2292_s29 = smov 0   ;;  %s2294_s30 = smov 0  }
   0x9   :  { %s2296_s7 = smov 0  }
   0xa LB: > { %2920 = sst [smem:[#allocation9_spill]] %s2213_s26  ;;  %s28_s8 = sadd.s32 1, %s2221_s28  ;;  %s2233_s7 = sphi %s2296_s7, %s16_s7   ;;  %s2229_s30 = sphi %s2294_s30, %s2943_s30   ;;  %s2225_s29 = sphi %s2292_s29, %s2942_s29   ;;  %s2221_s28 = sphi %s2290_s28, %s2941_s28   ;;  %s2217_s27 = sphi %s2288_s27, %s2940_s27   ;;  %s2213_s26 = sphi %s2286_s26, %s2939_s26   ;;  %s2209_s25 = sphi %s2284_s25, %s2938_s25   ;;  %s2205_s24 = sphi %s2282_s24, %s2937_s24   ;;  %s2201_s23 = sphi %s2280_s23, %s2936_s23   ;;  %s2197_s22 = sphi %s2278_s22, %s2935_s22   ;;  %s2193_s21 = sphi %s2276_s21, %s2934_s21  }
   0xb   : > { %p29_p0 = scmp.ge.s32.totalorder %s28_s8, 2  ;;  %s31_s9 = sadd.s32 1, %s2225_s29 }
   0xc   : > { %p51_p1 = scmp.ne.s32.totalorder %s2205_s24, %s2201_s23  ;;  %p52_p2 = scmp.eq.s32.totalorder %s2233_s7, 0 }
   0xd   : > { %s2945_s8 = smov (%p29_p0, %s28_s8), 0  ;;  %s2947_s9 = smov (!%p29_p0, %s31_s9), %s2225_s29 }
   0xe   : > { %2921 = sst [smem:[#allocation10_spill]] %s2945_s8  ;;  %p33_p3 = scmp.ge.s32.totalorder %s2947_s9, 2 }
   0xf   : > { %s35_s10 = sadd.s32 1, %s2229_s30  ;;  %s1789_s11 = sadd.s32 4294967295, %s2233_s7  }
  0x10   : > { %p2344_p4 = por %p52_p2, %p51_p1  ;;  %s2949_s9 = smov (%p33_p3, %s2947_s9), 0 }
  0x11   : > { %2923 = sst [smem:[#allocation11_spill]] %s2949_s9  ;;  %s2951_s10 = smov (!%p33_p3, %s35_s10), %s2229_s30 }
  0x12   : > { %s68_s13 = ssub.s32 %s2221_s28, %s2945_s8  ;;  %p79_p5 = scmp.ne.s32.totalorder %s2197_s22, %s2193_s21 }
  0x13   : > { %p37_p6 = scmp.ge.s32.totalorder %s2951_s10, 2  ;;  %p209_p7 = scmp.eq.s32.totalorder %s1789_s11, 7 }
  0x14   : > { %s40_s14 = ssub.s32 %s2225_s29, %s2949_s9  ;;  %p2357_p8 = por %p79_p5, %p52_p2 }
  0x15   : > { %s2953_s10 = smov (%p37_p6, %s2951_s10), 0  ;;  %s44_s16 = sadd.s32 1, %s2205_s24 }
  0x16   : > { %2925 = sst [smem:[#allocation12_spill]] %s2953_s10  ;;  %p2367_p9 = por %p209_p7, %p51_p1 }
  0x17   : > { %s39_s18 = ssub.s32 %s2229_s30, %s2953_s10  ;;  %s72_s19 = sadd.s32 1, %s2197_s22 }
  0x18   : > { %s41_s20 = sor.u32 %s40_s14, %s39_s18  ;;  %s69_s8 = sor.u32 %s68_s13, %s39_s18 }
  0x19   : > { %p42_p10 = scmp.eq.s32.totalorder %s41_s20, 0  ;;  %p70_p11 = scmp.eq.s32.totalorder %s69_s8, 0 }
  0x1a   : > { %p1792_p12 = scmp.ge.s32.totalorder %s2233_s7, 8 }
  0x1b   : > { %s2375_s11 = scalar_select %p42_p10, %s2205_s24, %s44_s16  }
  0x1c   : > { %s2378_s9 = scalar_select %p70_p11, %s2197_s22, %s72_s19  }
  0x1d   : > { %237 = sbr.rel (%p1792_p12) target bundleno = 72 (0x48), region = 24 }
  0x22   : > { %240 = sbr.rel (!%p2344_p4) target bundleno = 48 (0x30), region = 28  ;;  %s242_s6 = sand.u32 (%p2344_p4), 1, %s2205_s24  }
  0x23   : > { %s1794_s10 = sshll.u32 (%p2344_p4), %s2229_s30, 4  ;;  %s1793_s26 = sshll.u32 (%p2344_p4), %s242_s6, 4 }
  0x24   : > { %s246_s14 = sadd.s32 (%p2344_p4), %s2225_s29, %s1794_s10  ;;  %s2927_s0 = sld [smem:[#allocation13_spill]] (%p2344_p4) }
  0x25   : > { %s1795_s13 = sshll.u32 (%p2344_p4), %s246_s14, 2  ;;  %s244_s19 = scalar_lea.vmem (%p2344_p4), [#allocation5], %s1793_s26 }
  0x2a   : > { %s248_s16 = scalar_lea.vmem %s2927_s0, %s1795_s13 }
  0x2b   : > { %v265_v0 = vld [vmem:[%s248_s16] sm:$0xf]  ;;  %v267_v1 = vld [vmem:[%s248_s16 + $0x8] sm:$0xf]  ;;  %v269_v2 = vld [vmem:[%s248_s16 + $0x10] sm:$0xf] }
  0x2c   : > { %266 = vst [vmem:[%s244_s19] sm:$0xf] %v265_v0  ;;  %v271_v3 = vld [vmem:[%s248_s16 + $0x18] sm:$0xf] }
  0x2d   : > { %268 = vst [vmem:[%s244_s19 + $0x4] sm:$0xf] %v267_v1 }
  0x2e   : > { %270 = vst [vmem:[%s244_s19 + $0x8] sm:$0xf] %v269_v2 }
  0x2f   : > { %272 = vst [vmem:[%s244_s19 + $0xc] sm:$0xf] %v271_v3 }
  0x30 PF: > { %304 = sbr.rel (!%p2357_p8) target bundleno = 62 (0x3e), region = 69  ;;  %s306_s6 = sand.u32 (%p2357_p8), 1, %s2197_s22  }
  0x31   : > { %s1797_s10 = sshll.u32 (%p2357_p8), %s2229_s30, 4  ;;  %s1796_s20 = sshll.u32 (%p2357_p8), %s306_s6, 4 }
  0x32   : > { %s1673_s14 = sadd.s32 (%p2357_p8), %s2221_s28, %s1797_s10  ;;  %s2928_s1 = sld [smem:[#allocation14_spill]] (%p2357_p8) }
  0x33   : > { %s1798_s13 = sshll.u32 (%p2357_p8), %s1673_s14, 2  ;;  %s308_s16 = scalar_lea.vmem (%p2357_p8), [#allocation6], %s1796_s20 }
  0x38   : > { %s1675_s26 = scalar_lea.vmem %s2928_s1, %s1798_s13 }
  0x39   : > { %v1799_v4 = vld [vmem:[%s1675_s26 + $0x20] sm:$0xf]  ;;  %v1800_v5 = vld [vmem:[%s1675_s26 + $0x28] sm:$0xf]  ;;  %v1801_v6 = vld [vmem:[%s1675_s26 + $0x30] sm:$0xf] }
  0x3a   : > { %331 = vst [vmem:[%s308_s16] sm:$0xf] %v1799_v4  ;;  %v1802_v7 = vld [vmem:[%s1675_s26 + $0x38] sm:$0xf] }
  0x3b   : > { %333 = vst [vmem:[%s308_s16 + $0x4] sm:$0xf] %v1800_v5 }
  0x3c   : > { %335 = vst [vmem:[%s308_s16 + $0x8] sm:$0xf] %v1801_v6 }
  0x3d   : > { %337 = vst [vmem:[%s308_s16 + $0xc] sm:$0xf] %v1802_v7 }
  0x3e PF: > { %382 = sbr.rel (!%p2344_p4) target bundleno = 72 (0x48), region = 114  ;;  %s384_s15 = sand.u32 (%p2344_p4), 1, %s2205_s24  }
  0x3f   : > { %s1804_s19 = sshll.u32 (%p2344_p4), %s2229_s30, 3  ;;  %s1803_s6 = sshll.u32 (%p2344_p4), %s384_s15, 5 }
  0x40   : > { %s388_s10 = sadd.s32 (%p2344_p4), %s2225_s29, %s1804_s19  ;;  %s386_s8 = scalar_lea.vmem (%p2344_p4), [#allocation7], %s1803_s6 }
  0x41   : > { %s1805_s14 = sshll.u32 (%p2344_p4), %s388_s10, 3 }
  0x42   : > { %s390_s20 = scalar_lea.vmem (%p2344_p4), %s2910_s3, %s1805_s14 }
  0x43   : > { %v425_v8 = vld [vmem:[%s390_s20] sm:$0xff]  ;;  %v427_v9 = vld [vmem:[%s390_s20 + $0x10] sm:$0xff] }
  0x44   : > { %v429_v10 = vld [vmem:[%s390_s20 + $0x20] sm:$0xff]  ;;  %426 = vst [vmem:[%s386_s8] sm:$0xff] %v425_v8  ;;  %v431_v11 = vld [vmem:[%s390_s20 + $0x30] sm:$0xff] }
  0x45   : > { %428 = vst [vmem:[%s386_s8 + $0x8] sm:$0xff] %v427_v9 }
  0x46   : > { %430 = vst [vmem:[%s386_s8 + $0x10] sm:$0xff] %v429_v10 }
  0x47   : > { %432 = vst [vmem:[%s386_s8 + $0x18] sm:$0xff] %v431_v11 }
  0x48 PF: > { %p1806_p13 = scmp.ge.s32.totalorder %s2233_s7, 1  ;;  %p437_p0 = scmp.lt.s32.totalorder %s2233_s7, 9 }
  0x4a   : > { %p438_p1 = pnand %p1806_p13, %p437_p0 }
  0x4b   : > { %s444_s12 = sand.u32 (!%p438_p1), 1, %s2201_s23   ;;  %s451_s26 = sand.u32 (!%p438_p1), 1, %s2193_s21  }
  0x4c   : > { %441 = sbr.rel (%p438_p1) target bundleno = 1416 (0x588), region = 152  ;;  %s1807_s16 = sshll.u32 (!%p438_p1), %s444_s12, 4 }
  0x4d   : > { %s1808_s15 = sshll.u32 (!%p438_p1), %s451_s26, 4  ;;  %s1809_s19 = sshll.u32 (!%p438_p1), %s444_s12, 5 }
  0x4e   : > { %s1811_s6 = sshll.u32 (!%p438_p1), %s2209_s25, 4  ;;  %p504_p2 = scmp.lt.s32.totalorder (!%p438_p1), %s2217_s27, 1 }
  0x4f   : > { %p506_p3 = scmp.lt.s32.totalorder (!%p438_p1), %s1811_s6, 31  ;;  %s2417_s1 = scalar_lea.vmem (!%p438_p1), [#allocation5], %s1807_s16 }
  0x50   : > { %s2419_s23 = scalar_lea.vmem (!%p438_p1), [#allocation6], %s1808_s15  ;;  %s2421_s21 = scalar_lea.vmem (!%p438_p1), [#allocation7], %s1809_s19 }
  0x51   : > { %s505_s10 = scalar_select %p504_p2, %s2217_s27, 1 }
  0x52   : > { %s2955_s6 = smov (!%p506_p3, %s1811_s6), 31  ;;  %s2423_s12 = scalar_lea.vmem [#allocation8], %s1809_s19 }
  0x53   : > { %s1812_s14 = sshll.u32 %s505_s10, 5  ;;  %p1814_p4 = scmp.ne.s32.totalorder %s2209_s25, 0 }
  0x54   : > { %s509_s13 = sadd.s32 %s1812_s14, %s2955_s6 }
  0x55   : > { %s1813_s18 = sshll.u32 %s509_s13, 2  ;;  %517 = sbr.rel (%p1814_p4) target bundleno = 103 (0x67), region = 168 }
  0x56   : > { %s2415_s0 = scalar_lea.vmem %s2909_s2, %s1813_s18 }
  0x5a   : > { %v2235_v12 = vmov -inf   ;;  %v2236_v13 = vmov 0.0  }
  0x5b   : > { %518 = vst [vmem:[#allocation3] sm:$0x1] %v2235_v12 }
  0x5c   : > { %519 = vst [vmem:[#allocation3 + $0x1] sm:$0x1] %v2235_v12 }
  0x5d   : > { %520 = vst [vmem:[#allocation3 + $0x2] sm:$0x1] %v2235_v12 }
  0x5e   : > { %521 = vst [vmem:[#allocation3 + $0x3] sm:$0x1] %v2235_v12 }
  0x5f   : > { %522 = vst [vmem:[#allocation4] sm:$0x1] %v2236_v13 }
  0x60   : > { %523 = vst [vmem:[#allocation4 + $0x1] sm:$0x1] %v2236_v13 }
  0x61   : > { %524 = vst [vmem:[#allocation4 + $0x2] sm:$0x1] %v2236_v13 }
  0x62   : > { %525 = vst [vmem:[#allocation4 + $0x3] sm:$0x1] %v2236_v13 }
  0x63   : > { %526 = vst [vmem:[#allocation2 + $0x10] sm:$0xff] %v2236_v13 }
  0x64   : > { %527 = vst [vmem:[#allocation2] sm:$0xff] %v2236_v13 }
  0x65   : > { %528 = vst [vmem:[#allocation2 + $0x18] sm:$0xff] %v2236_v13 }
  0x66   : > { %529 = vst [vmem:[#allocation2 + $0x8] sm:$0xff] %v2236_v13 }
  0x67 PF: > { %v530_v14 = vld [vmem:[%s2417_s1] sm:$0xf]  ;;  %vm619_vm0 = vcmask 1043456   ;;  %v1895_v16 = vld [vmem:[%s2415_s0] sm:$0xff]  ;;  %vm594_vm1 = vcmask 64512   ;;  %v1897_v18 = vld [vmem:[%s2415_s0 + $0x10] sm:$0xff] }
  0x68   : > { %v621_v15 = vsel %vm619_vm0, %v530_v14, 0  ;;  %v1896_v17 = vld [vmem:[%s2415_s0 + $0x8] sm:$0xff]  ;;  %v1898_v19 = vld [vmem:[%s2415_s0 + $0x18] sm:$0xff]  ;;  %v1899_v20 = vld [vmem:[%s2415_s0 + $0x20] sm:$0xff]  ;;  %s2237_s26 = smov 112   ;;  %s2238_s16 = smov 120  }
  0x69   : > { %630 = vmatpush.bf16.msra.mxu0 %v621_v15  ;;  %v1900_v21 = vld [vmem:[%s2415_s0 + $0x28] sm:$0xff]  ;;  %1028 = vrot.lane.b32.xlu0 %v1895_v16, %s2237_s26  ;;  %v1901_v22 = vld [vmem:[%s2415_s0 + $0x30] sm:$0xff]  ;;  %v1902_v23 = vld [vmem:[%s2415_s0 + $0x38] sm:$0xff]  ;;  %s2239_s15 = smov 104   ;;  %p1879_p5 = scmp.ne.s32.totalorder %s2209_s25, 1 }
  0x6a   : > { %1032 = vrot.lane.b32.xlu1 %v1897_v18, %s2237_s26  ;;  %1036 = vrot.lane.b32.xlu2 %v1899_v20, %s2237_s26  ;;  %v2468_v60 = vld [vmem:[#allocation3] sm:$0x1] }
  0x6c   : > { %1847 = vmatmul.msk.bf16.vlgmr.msra.gmra.mxu0 %vm594_vm1, %v1895_v16 }
  0x71   : > { %1030 = vrot.lane.b32.xlu0 %v1896_v17, %s2237_s26 }
  0x72   : > { %1034 = vrot.lane.b32.xlu1 %v1898_v19, %s2237_s26  ;;  %1038 = vrot.lane.b32.xlu2 %v1900_v21, %s2237_s26 }
  0x79   : > { %1040 = vrot.lane.b32.xlu0 %v1901_v22, %s2237_s26 }
  0x7a   : > { %1042 = vrot.lane.b32.xlu1 %v1902_v23, %s2237_s26  ;;  %803 = vrot.lane.b32.xlu2 %v1895_v16, %s2238_s16 }
  0x7c   : > { %1848 = vmatmul.msk.bf16.gmra.mxu0 %vm594_vm1, %v1896_v17 }
  0x81   : > { %1253 = vrot.lane.b32.xlu0 %v1895_v16, %s2239_s15 }
  0x82   : > { %805 = vrot.lane.b32.xlu1 %v1896_v17, %s2238_s16  ;;  %1255 = vrot.lane.b32.xlu2 %v1896_v17, %s2239_s15 }
  0x89   : > { %807 = vrot.lane.b32.xlu0 %v1897_v18, %s2238_s16 }
  0x8a   : > { %1257 = vrot.lane.b32.xlu1 %v1897_v18, %s2239_s15  ;;  %809 = vrot.lane.b32.xlu2 %v1898_v19, %s2238_s16 }
  0x8c   : > { %1849 = vmatmul.msk.bf16.gmra.mxu0 %vm594_vm1, %v1897_v18 }
  0x91   : > { %1259 = vrot.lane.b32.xlu0 %v1898_v19, %s2239_s15 }
  0x92   : > { %811 = vrot.lane.b32.xlu1 %v1899_v20, %s2238_s16  ;;  %1261 = vrot.lane.b32.xlu2 %v1899_v20, %s2239_s15 }
  0x99   : > { %813 = vrot.lane.b32.xlu0 %v1900_v21, %s2238_s16 }
  0x9a   : > { %1263 = vrot.lane.b32.xlu1 %v1900_v21, %s2239_s15  ;;  %815 = vrot.lane.b32.xlu2 %v1901_v22, %s2238_s16 }
  0x9c   : > { %1850 = vmatmul.msk.bf16.gmra.mxu0 %vm594_vm1, %v1898_v19 }
  0xa1   : > { %1265 = vrot.lane.b32.xlu0 %v1901_v22, %s2239_s15 }
  0xa2   : > { %817 = vrot.lane.b32.xlu1 %v1902_v23, %s2238_s16  ;;  %1267 = vrot.lane.b32.xlu2 %v1902_v23, %s2239_s15 }
  0xac   : > { %1851 = vmatmul.msk.bf16.gmra.mxu0 %vm594_vm1, %v1899_v20 }
  0xbc   : > { %1852 = vmatmul.msk.bf16.gmra.mxu0 %vm594_vm1, %v1900_v21 }
  0xcc   : > { %1853 = vmatmul.msk.bf16.gmra.mxu0 %vm594_vm1, %v1901_v22 }
  0xdc   : > { %1854 = vmatmul.msk.bf16.gmra.mxu0 %vm594_vm1, %v1902_v23 }
  0xe9   : > { %v2444_v24 = vpop.f32.mrf.mxu0 }
  0xf1   : > { %v2446_v25 = vpop.f32.mrf.mxu0 }
  0xf9   : > { %v2448_v26 = vpop.f32.mrf.mxu0 }
 0x101   : > { %v2450_v27 = vpop.f32.mrf.mxu0 }
 0x109   : > { %v2452_v28 = vpop.f32.mrf.mxu0 }
 0x10a   : > { %v673_v40 = vmax.f32 %v2444_v24, %v2452_v28 }
 0x111   : > { %v2454_v29 = vpop.f32.mrf.mxu0 }
 0x112   : > { %v674_v39 = vmax.f32 %v2446_v25, %v2454_v29 }
 0x119   : > { %v2456_v30 = vpop.f32.mrf.mxu0 }
 0x11a   : > { %v675_v41 = vmax.f32 %v2448_v26, %v2456_v30 }
 0x121   : > { %v2458_v31 = vpop.f32.mrf.mxu0 }
 0x122   : > { %v676_v42 = vmax.f32 %v2450_v27, %v2458_v31 }
 0x129   : > { %v652_v32 = vpop.f32.mrf.mxu0 }
 0x12a   : > { %v677_v44 = vmax.f32 %v673_v40, %v652_v32 }
 0x131   : > { %v654_v33 = vpop.f32.mrf.mxu0 }
 0x132   : > { %v678_v43 = vmax.f32 %v674_v39, %v654_v33 }
 0x139   : > { %v657_v34 = vpop.f32.mrf.mxu0 }
 0x13a   : > { %v679_v45 = vmax.f32 %v675_v41, %v657_v34 }
 0x141   : > { %v659_v35 = vpop.f32.mrf.mxu0 }
 0x142   : > { %v680_v46 = vmax.f32 %v676_v42, %v659_v35 }
 0x149   : > { %v662_v36 = vpop.f32.mrf.mxu0 }
 0x14a   : > { %v681_v49 = vmax.f32 %v677_v44, %v662_v36 }
 0x151   : > { %v664_v37 = vpop.f32.mrf.mxu0 }
 0x152   : > { %v682_v47 = vmax.f32 %v678_v43, %v664_v37 }
 0x154   : > { %v685_v52 = vmax.f32 %v681_v49, %v682_v47 }
 0x159   : > { %v667_v38 = vpop.f32.mrf.mxu0 }
 0x15a   : > { %v683_v50 = vmax.f32 %v679_v45, %v667_v38 }
 0x161   : > { %v669_v48 = vpop.f32.mrf.mxu0 }
 0x162   : > { %v684_v51 = vmax.f32 %v680_v46, %v669_v48 }
 0x164   : > { %v686_v53 = vmax.f32 %v683_v50, %v684_v51 }
 0x166   : > { %v687_v54 = vmax.f32 %v685_v52, %v686_v53 }
 0x168   : > { %v688_v55 = vrot.slane %v687_v54, 4 }
 0x16a   : > { %v689_v56 = vmax.f32 %v687_v54, %v688_v55 }
 0x16c   : > { %v690_v57 = vrot.slane %v689_v56, 2 }
 0x16e   : > { %v691_v58 = vmax.f32 %v689_v56, %v690_v57 }
 0x170   : > { %v692_v59 = vrot.slane %v691_v58, 1 }
 0x172   : > { %v693_v61 = vmax.f32 %v691_v58, %v692_v59 }
 0x174   : > { %v2471_v62 = vmax.f32 %v2468_v60, %v693_v61 }
 0x176   : > { %v699_v63 = vperm.slane %v2471_v62, 0  ;;  %802 = vst [vmem:[#allocation3] sm:$0x1] %v2471_v62 }
 0x178   : > { %v716_v0 = vsub.f32 %v669_v48, %v699_v63  ;;  %v715_v1 = vsub.f32 %v667_v38, %v699_v63  ;;  %v713_v2 = vsub.f32 %v662_v36, %v699_v63  ;;  %v714_v3 = vsub.f32 %v664_v37, %v699_v63 }
 0x179   : > { %v711_v7 = vsub.f32 %v657_v34, %v699_v63  ;;  %v712_v9 = vsub.f32 %v659_v35, %v699_v63  ;;  %v709_v11 = vsub.f32 %v652_v32, %v699_v63  ;;  %v710_v13 = vsub.f32 %v654_v33, %v699_v63 }
 0x17a   : > { %v747_v4 = vmul.f32 1.442695, %v716_v0  ;;  %v745_v5 = vmul.f32 1.442695, %v715_v1  ;;  %v741_v6 = vmul.f32 1.442695, %v713_v2  ;;  %v707_v14 = vsub.f32 %v2456_v30, %v699_v63 }
 0x17b   : > { %v743_v8 = vmul.f32 1.442695, %v714_v3  ;;  %v737_v10 = vmul.f32 1.442695, %v711_v7  ;;  %v739_v12 = vmul.f32 1.442695, %v712_v9  ;;  %v708_v15 = vsub.f32 %v2458_v31, %v699_v63  ;;  %v1037_v7 = vpop.permute.xlu2 %1036 }
 0x17c   : > { %2001 = vpow2.f32 %v747_v4  ;;  %v733_v17 = vmul.f32 1.442695, %v709_v11  ;;  %v701_v18 = vsub.f32 %v2444_v24, %v699_v63  ;;  %v735_v20 = vmul.f32 1.442695, %v710_v13 }
 0x17d   : > { %2003 = vpow2.f32 %v745_v5  ;;  %v702_v21 = vsub.f32 %v2446_v25, %v699_v63  ;;  %v729_v30 = vmul.f32 1.442695, %v707_v14  ;;  %v705_v31 = vsub.f32 %v2452_v28, %v699_v63  ;;  %v534_v5 = vld [vmem:[%s2419_s23] sm:$0xf] }
 0x17e   : > { %2005 = vpow2.f32 %v741_v6  ;;  %v731_v33 = vmul.f32 1.442695, %v708_v15  ;;  %v703_v34 = vsub.f32 %v2448_v26, %v699_v63  ;;  %v706_v24 = vsub.f32 %v2454_v29, %v699_v63 }
 0x17f   : > { %2007 = vpow2.f32 %v743_v8  ;;  %v717_v35 = vmul.f32 1.442695, %v701_v18  ;;  %v704_v25 = vsub.f32 %v2450_v27, %v699_v63  ;;  %v719_v36 = vmul.f32 1.442695, %v702_v21  ;;  %v532_v63 = vld [vmem:[%s2417_s1 + $0x8] sm:$0xf]  ;;  %v1029_v21 = vpop.permute.xlu0 %1028 }
 0x180   : > { %2009 = vpow2.f32 %v737_v10  ;;  %v725_v28 = vmul.f32 1.442695, %v705_v31  ;;  %v721_v40 = vmul.f32 1.442695, %v703_v34  ;;  %v727_v26 = vmul.f32 1.442695, %v706_v24 }
 0x181   : > { %2011 = vpow2.f32 %v739_v12  ;;  %v723_v41 = vmul.f32 1.442695, %v704_v25  ;;  %v1069_v3 = vsel %vm619_vm0, %v532_v63, 0  ;;  %v695_v10 = vsub.f32 %v2468_v60, %v2471_v62  ;;  %v1033_v12 = vpop.permute.xlu1 %1032 }
 0x182   : > { %v2477_v16 = vpop.eup %2001  ;;  %2013 = vpow2.f32 %v733_v17 }
 0x183   : > { %v2480_v19 = vpop.eup %2003  ;;  %2015 = vpow2.f32 %v735_v20  ;;  %v1039_v14 = vpop.permute.xlu2 %1038  ;;  %v696_v15 = vmul.f32 1.442695, %v695_v10 }
 0x184   : > { %v2483_v22 = vpop.eup %2005  ;;  %v781_v23 = vpack.c.bf16 %v2477_v16, %v2480_v19  ;;  %2017 = vpow2.f32 %v729_v30 }
 0x185   : > { %v2488_v32 = vpop.eup %2007  ;;  %2019 = vpow2.f32 %v731_v33 }
 0x186   : > { %782 = vmatpush.bf16.msra.mxu1 %v781_v23  ;;  %v2010_v37 = vpop.eup %2009  ;;  %v780_v38 = vpack.c.bf16 %v2488_v32, %v2483_v22  ;;  %2021 = vpow2.f32 %v717_v35 }
 0x187   : > { %v2012_v39 = vpop.eup %2011  ;;  %2023 = vpow2.f32 %v719_v36  ;;  %v1031_v35 = vpop.permute.xlu0 %1030 }
 0x188   : > { %v2014_v29 = vpop.eup %2013  ;;  %v779_v42 = vpack.c.bf16 %v2012_v39, %v2010_v37  ;;  %2025 = vpow2.f32 %v725_v28 }
 0x189   : > { %v2016_v43 = vpop.eup %2015  ;;  %2027 = vpow2.f32 %v721_v40  ;;  %v1035_v30 = vpop.permute.xlu1 %1034 }
 0x18a   : > { %783 = vmatpush.bf16.msra.mxu1 %v780_v38  ;;  %v2018_v27 = vpop.eup %2017  ;;  %2029 = vpow2.f32 %v727_v26  ;;  %v778_v46 = vpack.c.bf16 %v2016_v43, %v2014_v29 }
 0x18b   : > { %v2020_v44 = vpop.eup %2019  ;;  %2031 = vpow2.f32 %v723_v41 }
 0x18c   : > { %v2022_v45 = vpop.eup %2021  ;;  %v777_v52 = vpack.c.bf16 %v2020_v44, %v2018_v27  ;;  %2033 = vpow2.f32 %v696_v15 }
 0x18d   : > { %v2024_v47 = vpop.eup %2023 }
 0x18e   : > { %784 = vmatpush.bf16.msra.mxu1 %v779_v42  ;;  %v2026_v48 = vpop.eup %2025  ;;  %v751_v49 = vadd.f32 %v2024_v47, %v2022_v45  ;;  %v774_v2 = vpack.c.bf16 %v2024_v47, %v2022_v45 }
 0x18f   : > { %v2028_v50 = vpop.eup %2027  ;;  %v1041_v36 = vpop.permute.xlu0 %1040 }
 0x190   : > { %v2030_v51 = vpop.eup %2029  ;;  %v752_v53 = vadd.f32 %v2028_v50, %v751_v49 }
 0x191   : > { %v2032_v54 = vpop.eup %2031  ;;  %v776_v56 = vpack.c.bf16 %v2030_v51, %v2026_v48  ;;  %v1043_v25 = vpop.permute.xlu1 %1042 }
 0x192   : > { %785 = vmatpush.bf16.msra.mxu1 %v778_v46  ;;  %v753_v55 = vadd.f32 %v2032_v54, %v752_v53  ;;  %v775_v59 = vpack.c.bf16 %v2032_v54, %v2028_v50  ;;  %v2034_v62 = vpop.eup %2033  ;;  %v795_v46 = vld [vmem:[#allocation2 + $0x10] sm:$0xff] }
 0x194   : > { %v754_v57 = vadd.f32 %v2026_v48, %v753_v55 }
 0x196   : > { %786 = vmatpush.bf16.msra.mxu1 %v777_v52  ;;  %v755_v58 = vadd.f32 %v2030_v51, %v754_v57 }
 0x197   : > { %v2510_v38 = vpop.permute.xlu0 %1253 }
 0x198   : > { %v756_v61 = vadd.f32 %v2018_v27, %v755_v58 }
 0x19a   : > { %787 = vmatpush.bf16.msra.mxu1 %v776_v56  ;;  %v757_v0 = vadd.f32 %v2020_v44, %v756_v61  ;;  %v797_v44 = vperm.slane %v2034_v62, 0 }
 0x19c   : > { %v758_v1 = vadd.f32 %v2014_v29, %v757_v0  ;;  %v799_v47 = vmul.f32 %v797_v44, %v795_v46 }
 0x19e   : > { %788 = vmatpush.bf16.msra.mxu1 %v775_v59  ;;  %v759_v4 = vadd.f32 %v2016_v43, %v758_v1 }
 0x19f   : > { %v808_v28 = vpop.permute.xlu0 %807 }
 0x1a0   : > { %v760_v6 = vadd.f32 %v2010_v37, %v759_v4  ;;  %v806_v37 = vpop.permute.xlu1 %805 }
 0x1a2   : > { %789 = vmatpush.bf16.msra.mxu1 %v774_v2  ;;  %v761_v8 = vadd.f32 %v2012_v39, %v760_v6 }
 0x1a4   : > { %v762_v9 = vadd.f32 %v2483_v22, %v761_v8  ;;  %v531_v22 = vld [vmem:[%s2417_s1 + $0x4] sm:$0xf] }
 0x1a5   : > { %790 = vmatmul.bf16.vlgmr.msra.gmra.mxu1 %v534_v5  ;;  %v844_v60 = vsel %vm619_vm0, %v531_v22, 0 }
 0x1a6   : > { %1078 = vmatpush.bf16.msrb.mxu1 %v1069_v3  ;;  %v763_v11 = vadd.f32 %v2488_v32, %v762_v9  ;;  %853 = vmatpush.bf16.msra.mxu2 %v844_v60  ;;  %v804_v32 = vpop.permute.xlu2 %803 }
 0x1a7   : > { %v2522_v29 = vpop.permute.xlu0 %1259 }
 0x1a8   : > { %v764_v13 = vadd.f32 %v2480_v19, %v763_v11  ;;  %v749_v19 = vld [vmem:[#allocation4] sm:$0x1]  ;;  %v2518_v26 = vpop.permute.xlu1 %1257 }
 0x1a9   : > { %1855 = vmatmul.msk.bf16.vlgmr.msra.gmra.mxu2 %vm594_vm1, %v804_v32 }
 0x1aa   : > { %v765_v17 = vadd.f32 %v2477_v16, %v764_v13  ;;  %v750_v16 = vmul.f32 %v2034_v62, %v749_v19 }
 0x1ac   : > { %v766_v18 = vrot.slane %v765_v17, 4 }
 0x1ae   : > { %v767_v20 = vadd.f32 %v766_v18, %v765_v17  ;;  %v2514_v39 = vpop.permute.xlu2 %1255 }
 0x1af   : > { %v814_v42 = vpop.permute.xlu0 %813 }
 0x1b0   : > { %v768_v23 = vrot.slane %v767_v20, 2  ;;  %v812_v41 = vpop.permute.xlu1 %811 }
 0x1b2   : > { %v769_v31 = vadd.f32 %v768_v23, %v767_v20 }
 0x1b4   : > { %v770_v33 = vrot.slane %v769_v31, 1 }
 0x1b5   : > { %1863 = vmatmul.msk.bf16.vlgmr.msrb.gmra.mxu1 %vm594_vm1, %v1029_v21 }
 0x1b6   : > { %v771_v34 = vadd.f32 %v770_v33, %v769_v31  ;;  %v810_v40 = vpop.permute.xlu2 %809 }
 0x1b8   : > { %v772_v24 = vadd.f32 %v771_v34, %v750_v16  ;;  %v2530_v45 = vpop.permute.xlu1 %1263 }
 0x1b9   : > { %1856 = vmatmul.msk.bf16.gmra.mxu2 %vm594_vm1, %v806_v37 }
 0x1ba   : > { %773 = vst [vmem:[#allocation4] sm:$0x1] %v772_v24 }
 0x1be   : > { %v2526_v43 = vpop.permute.xlu2 %1261 }
 0x1c0   : > { %v818_v50 = vpop.permute.xlu1 %817 }
 0x1c5   : > { %1864 = vmatmul.msk.bf16.gmra.mxu1 %vm594_vm1, %v1031_v35 }
 0x1c6   : > { %v816_v27 = vpop.permute.xlu2 %815 }
 0x1c9   : > { %1857 = vmatmul.msk.bf16.gmra.mxu2 %vm594_vm1, %v808_v28 }
 0x1d5   : > { %1865 = vmatmul.msk.bf16.gmra.mxu1 %vm594_vm1, %v1033_v12 }
 0x1d9   : > { %1858 = vmatmul.msk.bf16.gmra.mxu2 %vm594_vm1, %v810_v40 }
 0x1e5   : > { %1866 = vmatmul.msk.bf16.gmra.mxu1 %vm594_vm1, %v1035_v30 }
 0x1e9   : > { %1859 = vmatmul.msk.bf16.gmra.mxu2 %vm594_vm1, %v812_v41 }
 0x1f5   : > { %1867 = vmatmul.msk.bf16.gmra.mxu1 %vm594_vm1, %v1037_v7 }
 0x1f9   : > { %1860 = vmatmul.msk.bf16.gmra.mxu2 %vm594_vm1, %v814_v42 }
 0x205   : > { %1868 = vmatmul.msk.bf16.gmra.mxu1 %vm594_vm1, %v1039_v14 }
 0x209   : > { %1861 = vmatmul.msk.bf16.gmra.mxu2 %vm594_vm1, %v816_v27  ;;  %v2607_v27 = vld [vmem:[#allocation3 + $0x2] sm:$0x1] }
 0x215   : > { %1869 = vmatmul.msk.bf16.gmra.mxu1 %vm594_vm1, %v1041_v36 }
 0x219   : > { %1862 = vmatmul.msk.bf16.gmra.mxu2 %vm594_vm1, %v818_v50 }
 0x222   : > { %v791_v48 = vpop.f32.mrf.mxu1 }
 0x223   : > { %v800_v49 = vadd.f32 %v799_v47, %v791_v48 }
 0x225   : > { %801 = vst [vmem:[#allocation2 + $0x10] sm:$0xff] %v800_v49  ;;  %1870 = vmatmul.msk.bf16.gmra.mxu1 %vm594_vm1, %v1043_v25 }
 0x22a   : > { %v793_v51 = vpop.f32.mrf.mxu1 }
 0x22c   : > { %v2538_v54 = vpop.f32.mrf.mxu2 }
 0x232   : > { %v2534_v52 = vpop.f32.mrf.mxu1 }
 0x234   : > { %v2542_v56 = vpop.f32.mrf.mxu2 }
 0x23a   : > { %v2536_v53 = vpop.f32.mrf.mxu1 }
 0x23c   : > { %v2546_v58 = vpop.f32.mrf.mxu2 }
 0x242   : > { %v2540_v55 = vpop.f32.mrf.mxu1 }
 0x244   : > { %v2550_v61 = vpop.f32.mrf.mxu2 }
 0x24a   : > { %v2544_v57 = vpop.f32.mrf.mxu1 }
 0x24c   : > { %v2556_v1 = vpop.f32.mrf.mxu2 }
 0x24d   : > { %v897_v46 = vmax.f32 %v2538_v54, %v2556_v1 }
 0x252   : > { %v2548_v59 = vpop.f32.mrf.mxu1 }
 0x253   : > { %v1122_v20 = vmax.f32 %v2534_v52, %v2548_v59 }
 0x254   : > { %v2560_v3 = vpop.f32.mrf.mxu2 }
 0x255   : > { %v898_v47 = vmax.f32 %v2542_v56, %v2560_v3 }
 0x25a   : > { %v2552_v63 = vpop.f32.mrf.mxu1 }
 0x25b   : > { %v1123_v17 = vmax.f32 %v2536_v53, %v2552_v63 }
 0x25c   : > { %v2564_v5 = vpop.f32.mrf.mxu2 }
 0x25d   : > { %v899_v51 = vmax.f32 %v2546_v58, %v2564_v5 }
 0x262   : > { %v2554_v0 = vpop.f32.mrf.mxu1 }
 0x263   : > { %v1124_v21 = vmax.f32 %v2540_v55, %v2554_v0 }
 0x264   : > { %v2568_v7 = vpop.f32.mrf.mxu2 }
 0x26a   : > { %v2558_v2 = vpop.f32.mrf.mxu1 }
 0x26b   : > { %v1125_v23 = vmax.f32 %v2544_v57, %v2558_v2 }
 0x26c   : > { %v2574_v10 = vpop.f32.mrf.mxu2 }
 0x272   : > { %v2562_v4 = vpop.f32.mrf.mxu1 }
 0x273   : > { %v1126_v30 = vmax.f32 %v1122_v20, %v2562_v4 }
 0x274   : > { %v2578_v12 = vpop.f32.mrf.mxu2 }
 0x275   : > { %v902_v20 = vmax.f32 %v898_v47, %v2578_v12 }
 0x27a   : > { %v2566_v6 = vpop.f32.mrf.mxu1 }
 0x27b   : > { %v1127_v22 = vmax.f32 %v1123_v17, %v2566_v6  ;;  %v901_v17 = vmax.f32 %v897_v46, %v2574_v10 }
 0x27c   : > { %v2582_v14 = vpop.f32.mrf.mxu2 }
 0x282   : > { %v2570_v8 = vpop.f32.mrf.mxu1 }
 0x283   : > { %v1128_v31 = vmax.f32 %v1124_v21, %v2570_v8 }
 0x284   : > { %v2588_v18 = vpop.f32.mrf.mxu2 }
 0x28a   : > { %v2572_v9 = vpop.f32.mrf.mxu1 }
 0x28b   : > { %v1129_v60 = vmax.f32 %v1125_v23, %v2572_v9 }
 0x28c   : > { %v2603_v35 = vpop.f32.mrf.mxu2 }
 0x292   : > { %v2576_v11 = vpop.f32.mrf.mxu1 }
 0x293   : > { %v1130_v19 = vmax.f32 %v1126_v30, %v2576_v11 }
 0x294   : > { %v2605_v40 = vpop.f32.mrf.mxu2 }
 0x29a   : > { %v2580_v13 = vpop.f32.mrf.mxu1 }
 0x29b   : > { %v1131_v62 = vmax.f32 %v1127_v22, %v2580_v13  ;;  %v900_v22 = vmax.f32 %v2550_v61, %v2568_v7 }
 0x29c   : > { %v2616_v49 = vpop.f32.mrf.mxu2 }
 0x29d   : > { %v1134_v16 = vmax.f32 %v1130_v19, %v1131_v62  ;;  %v905_v62 = vmax.f32 %v901_v17, %v2603_v35  ;;  %v906_v19 = vmax.f32 %v902_v20, %v2605_v40 }
 0x2a2   : > { %v2584_v15 = vpop.f32.mrf.mxu1 }
 0x2a3   : > { %v1132_v33 = vmax.f32 %v1128_v31, %v2584_v15  ;;  %v903_v31 = vmax.f32 %v899_v51, %v2582_v14 }
 0x2aa   : > { %v1117_v32 = vpop.f32.mrf.mxu1 }
 0x2ab   : > { %v1133_v34 = vmax.f32 %v1129_v60, %v1117_v32 }
 0x2ad   : > { %v1135_v24 = vmax.f32 %v1132_v33, %v1133_v34  ;;  %v904_v34 = vmax.f32 %v900_v22, %v2588_v18 }
 0x2af   : > { %v1136_v25 = vmax.f32 %v1134_v16, %v1135_v24 }
 0x2b1   : > { %v1137_v36 = vrot.slane %v1136_v25, 4 }
 0x2b3   : > { %v1138_v37 = vmax.f32 %v1136_v25, %v1137_v36  ;;  %v907_v25 = vmax.f32 %v903_v31, %v2616_v49 }
 0x2b5   : > { %v1139_v28 = vrot.slane %v1138_v37, 2 }
 0x2b7   : > { %v1140_v41 = vmax.f32 %v1138_v37, %v1139_v28  ;;  %v909_v37 = vmax.f32 %v905_v62, %v906_v19 }
 0x2b9   : > { %v1141_v42 = vrot.slane %v1140_v41, 1 }
 0x2bb   : > { %v1142_v44 = vmax.f32 %v1140_v41, %v1141_v42 }
 0x2bd   : > { %v2614_v48 = vmax.f32 %v2607_v27, %v1142_v44 }
 0x2bf   : > { %v2619_v50 = vperm.slane %v2614_v48, 0  ;;  %1252 = vst [vmem:[#allocation3 + $0x2] sm:$0x1] %v2614_v48 }
 0x2c1   : > { %v1150_v21 = vsub.f32 %v2534_v52, %v2619_v50  ;;  %v1151_v23 = vsub.f32 %v2536_v53, %v2619_v50  ;;  %v1152_v30 = vsub.f32 %v2540_v55, %v2619_v50  ;;  %v1153_v60 = vsub.f32 %v2544_v57, %v2619_v50  ;;  %v2643_v55 = vpop.f32.mrf.mxu2 }
 0x2c2   : > { %v1154_v53 = vsub.f32 %v2548_v59, %v2619_v50  ;;  %v1165_v24 = vsub.f32 %v1117_v32, %v2619_v50  ;;  %v1155_v57 = vsub.f32 %v2552_v63, %v2619_v50  ;;  %v1156_v28 = vsub.f32 %v2554_v0, %v2619_v50 }
 0x2c3   : > { %v1166_v33 = vmul.f32 1.442695, %v1150_v21  ;;  %v1168_v52 = vmul.f32 1.442695, %v1151_v23  ;;  %v1170_v16 = vmul.f32 1.442695, %v1152_v30  ;;  %v1157_v59 = vsub.f32 %v2558_v2, %v2619_v50 }
 0x2c4   : > { %v1172_v36 = vmul.f32 1.442695, %v1153_v60  ;;  %v1174_v41 = vmul.f32 1.442695, %v1154_v53  ;;  %v908_v32 = vmax.f32 %v904_v34, %v2643_v55  ;;  %v1196_v42 = vmul.f32 1.442695, %v1165_v24 }
 0x2c5   : > { %2035 = vpow2.f32 %v1166_v33  ;;  %v1158_v44 = vsub.f32 %v2562_v4, %v2619_v50  ;;  %v1162_v63 = vsub.f32 %v2576_v11, %v2619_v50  ;;  %v1176_v46 = vmul.f32 1.442695, %v1155_v57 }
 0x2c6   : > { %2037 = vpow2.f32 %v1168_v52  ;;  %v910_v47 = vmax.f32 %v907_v25, %v908_v32  ;;  %v1164_v0 = vsub.f32 %v2584_v15, %v2619_v50  ;;  %v1178_v2 = vmul.f32 1.442695, %v1156_v28 }
 0x2c7   : > { %2039 = vpow2.f32 %v1170_v16  ;;  %v1163_v20 = vsub.f32 %v2580_v13, %v2619_v50  ;;  %v1180_v21 = vmul.f32 1.442695, %v1157_v59  ;;  %v1182_v23 = vmul.f32 1.442695, %v1158_v44  ;;  %v2692_v44 = vld [vmem:[#allocation3 + $0x1] sm:$0x1] }
 0x2c8   : > { %2041 = vpow2.f32 %v1172_v36  ;;  %v911_v4 = vmax.f32 %v909_v37, %v910_v47  ;;  %v1159_v30 = vsub.f32 %v2566_v6, %v2619_v50  ;;  %v1190_v15 = vmul.f32 1.442695, %v1162_v63 }
 0x2c9   : > { %2043 = vpow2.f32 %v1174_v41  ;;  %v1194_v60 = vmul.f32 1.442695, %v1164_v0  ;;  %v1160_v19 = vsub.f32 %v2570_v8, %v2619_v50  ;;  %v1192_v33 = vmul.f32 1.442695, %v1163_v20 }
 0x2ca   : > { %2045 = vpow2.f32 %v1196_v42  ;;  %v912_v31 = vrot.slane %v911_v4, 4  ;;  %v1161_v34 = vsub.f32 %v2572_v9, %v2619_v50  ;;  %v1184_v16 = vmul.f32 1.442695, %v1159_v30 }
 0x2cb   : > { %v2657_v51 = vpop.eup %2035  ;;  %2047 = vpow2.f32 %v1176_v46  ;;  %v1186_v36 = vmul.f32 1.442695, %v1160_v19 }
 0x2cc   : > { %v2661_v17 = vpop.eup %2037  ;;  %2049 = vpow2.f32 %v1178_v2  ;;  %v913_v52 = vmax.f32 %v911_v4, %v912_v31  ;;  %v1188_v9 = vmul.f32 1.442695, %v1161_v34 }
 0x2cd   : > { %v1201_v11 = vadd.f32 %v2661_v17, %v2657_v51  ;;  %v2667_v22 = vpop.eup %2039  ;;  %2051 = vpow2.f32 %v1180_v21 }
 0x2ce   : > { %v2672_v62 = vpop.eup %2041  ;;  %2053 = vpow2.f32 %v1182_v23  ;;  %v914_v24 = vrot.slane %v913_v52, 2 }
 0x2cf   : > { %v1202_v13 = vadd.f32 %v2667_v22, %v1201_v11  ;;  %v2679_v53 = vpop.eup %2043  ;;  %2055 = vpow2.f32 %v1190_v15 }
 0x2d0   : > { %v2681_v25 = vpop.eup %2045  ;;  %2057 = vpow2.f32 %v1194_v60  ;;  %v915_v37 = vmax.f32 %v913_v52, %v914_v24 }
 0x2d1   : > { %v1203_v6 = vadd.f32 %v2672_v62, %v1202_v13  ;;  %v2684_v8 = vpop.eup %2047  ;;  %2059 = vpow2.f32 %v1192_v33 }
 0x2d2   : > { %v2686_v28 = vpop.eup %2049  ;;  %2061 = vpow2.f32 %v1184_v16  ;;  %v916_v41 = vrot.slane %v915_v37, 1 }
 0x2d3   : > { %v1204_v57 = vadd.f32 %v2679_v53, %v1203_v6  ;;  %v2689_v59 = vpop.eup %2051  ;;  %2063 = vpow2.f32 %v1186_v36 }
 0x2d4   : > { %v2054_v32 = vpop.eup %2053  ;;  %v917_v46 = vmax.f32 %v915_v37, %v916_v41  ;;  %2065 = vpow2.f32 %v1188_v9 }
 0x2d5   : > { %v1205_v50 = vadd.f32 %v2684_v8, %v1204_v57  ;;  %v2056_v63 = vpop.eup %2055 }
 0x2d6   : > { %v2058_v47 = vpop.eup %2057  ;;  %v2697_v21 = vmax.f32 %v2692_v44, %v917_v46 }
 0x2d7   : > { %v1206_v42 = vadd.f32 %v2686_v28, %v1205_v50  ;;  %v2060_v2 = vpop.eup %2059  ;;  %v1231_v20 = vpack.c.bf16 %v2681_v25, %v2058_v47 }
 0x2d8   : > { %v2062_v23 = vpop.eup %2061  ;;  %v2700_v11 = vperm.slane %v2697_v21, 0  ;;  %1027 = vst [vmem:[#allocation3 + $0x1] sm:$0x1] %v2697_v21  ;;  %v1230_v15 = vpack.c.bf16 %v2060_v2, %v2056_v63 }
 0x2d9   : > { %v1207_v0 = vadd.f32 %v2689_v59, %v1206_v42  ;;  %1232 = vmatpush.bf16.msra.mxu3 %v1231_v20  ;;  %v2064_v31 = vpop.eup %2063  ;;  %v1228_v42 = vpack.c.bf16 %v2062_v23, %v2054_v32 }
 0x2da   : > { %v940_v60 = vsub.f32 %v2643_v55, %v2700_v11  ;;  %v939_v13 = vsub.f32 %v2616_v49, %v2700_v11  ;;  %v937_v19 = vsub.f32 %v2603_v35, %v2700_v11  ;;  %v938_v33 = vsub.f32 %v2605_v40, %v2700_v11  ;;  %v2066_v52 = vpop.eup %2065 }
 0x2db   : > { %v1208_v4 = vadd.f32 %v2054_v32, %v1207_v0  ;;  %v1229_v37 = vpack.c.bf16 %v2066_v52, %v2064_v31  ;;  %v935_v49 = vsub.f32 %v2582_v14, %v2700_v11  ;;  %v936_v35 = vsub.f32 %v2588_v18, %v2700_v11 }
 0x2dc   : > { %v971_v6 = vmul.f32 1.442695, %v940_v60  ;;  %v969_v16 = vmul.f32 1.442695, %v939_v13  ;;  %v965_v24 = vmul.f32 1.442695, %v937_v19  ;;  %v1144_v40 = vsub.f32 %v2607_v27, %v2614_v48 }
 0x2dd   : > { %v1209_v30 = vadd.f32 %v2062_v23, %v1208_v4  ;;  %1233 = vmatpush.bf16.msra.mxu3 %v1230_v15  ;;  %v967_v36 = vmul.f32 1.442695, %v938_v33  ;;  %v961_v50 = vmul.f32 1.442695, %v935_v49  ;;  %v963_v41 = vmul.f32 1.442695, %v936_v35 }
 0x2de   : > { %2067 = vpow2.f32 %v971_v6  ;;  %v934_v14 = vsub.f32 %v2578_v12, %v2700_v11  ;;  %v1145_v20 = vmul.f32 1.442695, %v1144_v40  ;;  %v931_v23 = vsub.f32 %v2564_v5, %v2700_v11 }
 0x2df   : > { %v1210_v34 = vadd.f32 %v2064_v31, %v1209_v30  ;;  %2069 = vpow2.f32 %v969_v16  ;;  %v1225_v16 = vpack.c.bf16 %v2672_v62, %v2667_v22 }
 0x2e0   : > { %2071 = vpow2.f32 %v965_v24  ;;  %v953_v60 = vmul.f32 1.442695, %v931_v23 }
 0x2e1   : > { %v1211_v57 = vadd.f32 %v2066_v52, %v1210_v34  ;;  %1234 = vmatpush.bf16.msra.mxu3 %v1229_v37  ;;  %2073 = vpow2.f32 %v967_v36  ;;  %v928_v36 = vsub.f32 %v2550_v61, %v2700_v11  ;;  %v1199_v37 = vld [vmem:[#allocation4 + $0x2] sm:$0x1]  ;;  %v925_v61 = vsub.f32 %v2538_v54, %v2700_v11 }
 0x2e2   : > { %2075 = vpow2.f32 %v961_v50 }
 0x2e3   : > { %v1212_v55 = vadd.f32 %v2056_v63, %v1211_v57  ;;  %v933_v63 = vsub.f32 %v2574_v10, %v2700_v11  ;;  %2077 = vpow2.f32 %v963_v41  ;;  %v927_v57 = vsub.f32 %v2546_v58, %v2700_v11 }
 0x2e4   : > { %v2721_v0 = vpop.eup %2067  ;;  %v947_v62 = vmul.f32 1.442695, %v928_v36  ;;  %v926_v41 = vsub.f32 %v2542_v56, %v2700_v11 }
 0x2e5   : > { %v1213_v9 = vadd.f32 %v2060_v2, %v1212_v55  ;;  %1235 = vmatpush.bf16.msra.mxu3 %v1228_v42  ;;  %v2723_v18 = vpop.eup %2069  ;;  %v957_v48 = vmul.f32 1.442695, %v933_v63  ;;  %v959_v2 = vmul.f32 1.442695, %v934_v14  ;;  %v945_v22 = vmul.f32 1.442695, %v927_v57 }
 0x2e6   : > { %v2726_v32 = vpop.eup %2071  ;;  %v1006_v10 = vpack.c.bf16 %v2721_v0, %v2723_v18 }
 0x2e7   : > { %v1214_v46 = vadd.f32 %v2058_v47, %v1213_v9  ;;  %v1227_v47 = vpack.c.bf16 %v2689_v59, %v2686_v28  ;;  %v2732_v12 = vpop.eup %2073  ;;  %2079 = vpow2.f32 %v957_v48  ;;  %v929_v28 = vsub.f32 %v2556_v1, %v2700_v11 }
 0x2e8   : > { %1007 = vmatpush.bf16.msrb.mxu2 %v1006_v10  ;;  %v1005_v30 = vpack.c.bf16 %v2732_v12, %v2726_v32  ;;  %2081 = vpow2.f32 %v959_v2  ;;  %v930_v59 = vsub.f32 %v2560_v3, %v2700_v11  ;;  %v2744_v15 = vpop.eup %2075  ;;  %v1224_v9 = vpack.c.bf16 %v2661_v17, %v2657_v51 }
 0x2e9   : > { %v1215_v27 = vadd.f32 %v2681_v25, %v1214_v46  ;;  %v932_v25 = vsub.f32 %v2568_v7, %v2700_v11  ;;  %1236 = vmatpush.bf16.msra.mxu3 %v1227_v47  ;;  %2083 = vpow2.f32 %v1145_v20  ;;  %v2746_v13 = vpop.eup %2077  ;;  %v1226_v7 = vpack.c.bf16 %v2684_v8, %v2679_v53  ;;  %v533_v8 = vld [vmem:[%s2417_s1 + $0xc] sm:$0xf]  ;;  %v536_v46 = vld [vmem:[%s2419_s23 + $0x8] sm:$0xf] }
 0x2ea   : > { %v949_v19 = vmul.f32 1.442695, %v929_v28  ;;  %2085 = vpow2.f32 %v953_v60  ;;  %v951_v52 = vmul.f32 1.442695, %v930_v59  ;;  %v1004_v1 = vpack.c.bf16 %v2746_v13, %v2744_v15 }
 0x2eb   : > { %v1216_v4 = vrot.slane %v1215_v27, 4  ;;  %v955_v5 = vmul.f32 1.442695, %v932_v25  ;;  %v1294_v50 = vsel %vm619_vm0, %v533_v8, 0  ;;  %v941_v51 = vmul.f32 1.442695, %v925_v61 }
 0x2ec   : > { %1008 = vmatpush.bf16.msrb.mxu2 %v1005_v30  ;;  %v943_v17 = vmul.f32 1.442695, %v926_v41  ;;  %v535_v25 = vld [vmem:[%s2419_s23 + $0x4] sm:$0xf] }
 0x2ed   : > { %v1217_v31 = vadd.f32 %v1216_v4, %v1215_v27  ;;  %1237 = vmatpush.bf16.msra.mxu3 %v1226_v7  ;;  %2087 = vpow2.f32 %v955_v5  ;;  %v2080_v3 = vpop.eup %2079 }
 0x2ee   : > { %v2082_v6 = vpop.eup %2081  ;;  %2089 = vpow2.f32 %v949_v19 }
 0x2ef   : > { %v1218_v33 = vrot.slane %v1217_v31, 2  ;;  %v2754_v24 = vpop.eup %2083  ;;  %2091 = vpow2.f32 %v951_v52  ;;  %v1003_v55 = vpack.c.bf16 %v2082_v6, %v2080_v3 }
 0x2f0   : > { %1009 = vmatpush.bf16.msrb.mxu2 %v1004_v1  ;;  %v2086_v49 = vpop.eup %2085  ;;  %v1200_v58 = vmul.f32 %v2754_v24, %v1199_v37  ;;  %2093 = vpow2.f32 %v945_v22 }
 0x2f1   : > { %v1219_v34 = vadd.f32 %v1218_v33, %v1217_v31  ;;  %1238 = vmatpush.bf16.msra.mxu3 %v1225_v16  ;;  %2095 = vpow2.f32 %v947_v62 }
 0x2f2   : > { %2097 = vpow2.f32 %v941_v51 }
 0x2f3   : > { %v1220_v53 = vrot.slane %v1219_v34, 1  ;;  %v2088_v40 = vpop.eup %2087  ;;  %2099 = vpow2.f32 %v943_v17 }
 0x2f4   : > { %v2090_v42 = vpop.eup %2089  ;;  %1010 = vmatpush.bf16.msrb.mxu2 %v1003_v55  ;;  %v1002_v63 = vpack.c.bf16 %v2088_v40, %v2086_v49 }
 0x2f5   : > { %v1221_v35 = vadd.f32 %v1220_v53, %v1219_v34  ;;  %1239 = vmatpush.bf16.msra.mxu3 %v1224_v9  ;;  %v2092_v27 = vpop.eup %2091  ;;  %v974_v53 = vld [vmem:[#allocation4 + $0x1] sm:$0x1] }
 0x2f6   : > { %v1001_v54 = vpack.c.bf16 %v2092_v27, %v2090_v42  ;;  %v2094_v48 = vpop.eup %2093 }
 0x2f7   : > { %v1222_v14 = vadd.f32 %v1221_v35, %v1200_v58  ;;  %v2096_v56 = vpop.eup %2095 }
 0x2f8   : > { %1240 = vmatmul.bf16.vlgmr.msra.gmra.mxu3 %v536_v46  ;;  %1011 = vmatpush.bf16.msrb.mxu2 %v1002_v63  ;;  %v1000_v11 = vpack.c.bf16 %v2096_v56, %v2094_v48  ;;  %v2098_v2 = vpop.eup %2097 }
 0x2f9   : > { %1303 = vmatpush.bf16.msrb.mxu3 %v1294_v50  ;;  %1223 = vst [vmem:[#allocation4 + $0x2] sm:$0x1] %v1222_v14  ;;  %v2100_v20 = vpop.eup %2099 }
 0x2fa   : > { %v976_v47 = vadd.f32 %v2100_v20, %v2098_v2  ;;  %v999_v10 = vpack.c.bf16 %v2100_v20, %v2098_v2 }
 0x2fc   : > { %1012 = vmatpush.bf16.msrb.mxu2 %v1001_v54  ;;  %v977_v4 = vadd.f32 %v2094_v48, %v976_v47 }
 0x2fe   : > { %v978_v23 = vadd.f32 %v2096_v56, %v977_v4 }
 0x300   : > { %1013 = vmatpush.bf16.msrb.mxu2 %v1000_v11  ;;  %v979_v30 = vadd.f32 %v2090_v42, %v978_v23 }
 0x302   : > { %v980_v28 = vadd.f32 %v2092_v27, %v979_v30 }
 0x304   : > { %1014 = vmatpush.bf16.msrb.mxu2 %v999_v10  ;;  %v981_v59 = vadd.f32 %v2086_v49, %v980_v28 }
 0x306   : > { %v982_v31 = vadd.f32 %v2088_v40, %v981_v59 }
 0x307   : > { %1015 = vmatmul.bf16.vlgmr.msrb.gmra.mxu2 %v535_v25 }
 0x308   : > { %1871 = vmatmul.msk.bf16.vlgmr.msrb.gmra.mxu3 %vm594_vm1, %v2510_v38  ;;  %v983_v60 = vadd.f32 %v2080_v3, %v982_v31 }
 0x30a   : > { %v984_v5 = vadd.f32 %v2082_v6, %v983_v60 }
 0x30c   : > { %v985_v7 = vadd.f32 %v2744_v15, %v984_v5  ;;  %v1245_v15 = vld [vmem:[#allocation2 + $0x18] sm:$0xff] }
 0x30e   : > { %v986_v19 = vadd.f32 %v2746_v13, %v985_v7 }
 0x310   : > { %v987_v33 = vadd.f32 %v2726_v32, %v986_v19  ;;  %v1266_v32 = vpop.permute.xlu0 %1265 }
 0x312   : > { %v988_v52 = vadd.f32 %v2732_v12, %v987_v33 }
 0x314   : > { %v989_v1 = vadd.f32 %v2723_v18, %v988_v52  ;;  %v1268_v18 = vpop.permute.xlu2 %1267 }
 0x316   : > { %v990_v38 = vadd.f32 %v2721_v0, %v989_v1  ;;  %v1247_v0 = vperm.slane %v2754_v24, 0  ;;  %v1020_v24 = vld [vmem:[#allocation2] sm:$0xff] }
 0x317   : > { %v2809_v1 = vld [vmem:[#allocation3 + $0x3] sm:$0x1] }
 0x318   : > { %1872 = vmatmul.msk.bf16.gmra.mxu3 %vm594_vm1, %v2514_v39  ;;  %v991_v39 = vrot.slane %v990_v38, 4 }
 0x31a   : > { %v992_v12 = vadd.f32 %v991_v39, %v990_v38 }
 0x31c   : > { %v993_v13 = vrot.slane %v992_v12, 2 }
 0x31e   : > { %v994_v3 = vadd.f32 %v993_v13, %v992_v12 }
 0x320   : > { %v995_v6 = vrot.slane %v994_v3, 1 }
 0x322   : > { %v996_v8 = vadd.f32 %v995_v6, %v994_v3 }
 0x328   : > { %1873 = vmatmul.msk.bf16.gmra.mxu3 %vm594_vm1, %v2518_v26  ;;  %v1249_v26 = vmul.f32 %v1247_v0, %v1245_v15 }
 0x338   : > { %1874 = vmatmul.msk.bf16.gmra.mxu3 %vm594_vm1, %v2522_v29 }
 0x348   : > { %1875 = vmatmul.msk.bf16.gmra.mxu3 %vm594_vm1, %v2526_v43  ;;  %v919_v43 = vsub.f32 %v2692_v44, %v2697_v21 }
 0x358   : > { %1876 = vmatmul.msk.bf16.gmra.mxu3 %vm594_vm1, %v2530_v45  ;;  %v920_v45 = vmul.f32 1.442695, %v919_v43 }
 0x35a   : > { %2101 = vpow2.f32 %v920_v45 }
 0x360   : > { %v2102_v57 = vpop.eup %2101 }
 0x361   : > { %v975_v36 = vmul.f32 %v2102_v57, %v974_v53  ;;  %v1022_v37 = vperm.slane %v2102_v57, 0 }
 0x363   : > { %v997_v55 = vadd.f32 %v996_v8, %v975_v36  ;;  %v1024_v49 = vmul.f32 %v1022_v37, %v1020_v24 }
 0x365   : > { %998 = vst [vmem:[#allocation4 + $0x1] sm:$0x1] %v997_v55 }
 0x368   : > { %1877 = vmatmul.msk.bf16.gmra.mxu3 %vm594_vm1, %v1266_v32 }
 0x378   : > { %1878 = vmatmul.msk.bf16.gmra.mxu3 %vm594_vm1, %v1268_v18 }
 0x37b   : > { %v1241_v29 = vpop.f32.mrf.mxu3 }
 0x37c   : > { %v1250_v34 = vadd.f32 %v1249_v26, %v1241_v29 }
 0x37e   : > { %1251 = vst [vmem:[#allocation2 + $0x18] sm:$0xff] %v1250_v34 }
 0x383   : > { %v1243_v16 = vpop.f32.mrf.mxu3 }
 0x38a   : > { %v1016_v22 = vpop.f32.mrf.mxu2 }
 0x38b   : > { %v1305_v35 = vpop.f32.mrf.mxu3  ;;  %v1025_v62 = vadd.f32 %v1024_v49, %v1016_v22 }
 0x38d   : > { %1026 = vst [vmem:[#allocation2] sm:$0xff] %v1025_v62 }
 0x392   : > { %v1018_v21 = vpop.f32.mrf.mxu2 }
 0x393   : > { %v1307_v44 = vpop.f32.mrf.mxu3 }
 0x39b   : > { %v1310_v40 = vpop.f32.mrf.mxu3 }
 0x3a3   : > { %v1312_v9 = vpop.f32.mrf.mxu3 }
 0x3ab   : > { %v1315_v50 = vpop.f32.mrf.mxu3 }
 0x3ac   : > { %v1347_v48 = vmax.f32 %v1305_v35, %v1315_v50 }
 0x3b3   : > { %v1317_v58 = vpop.f32.mrf.mxu3 }
 0x3b4   : > { %v1348_v54 = vmax.f32 %v1307_v44, %v1317_v58 }
 0x3bb   : > { %v1320_v61 = vpop.f32.mrf.mxu3 }
 0x3bc   : > { %v1349_v56 = vmax.f32 %v1310_v40, %v1320_v61 }
 0x3c3   : > { %v1322_v41 = vpop.f32.mrf.mxu3 }
 0x3c4   : > { %v1350_v11 = vmax.f32 %v1312_v9, %v1322_v41 }
 0x3cb   : > { %v2794_v42 = vpop.f32.mrf.mxu3 }
 0x3cc   : > { %v1351_v20 = vmax.f32 %v1347_v48, %v2794_v42 }
 0x3d3   : > { %v2796_v46 = vpop.f32.mrf.mxu3 }
 0x3d4   : > { %v1352_v2 = vmax.f32 %v1348_v54, %v2796_v46 }
 0x3db   : > { %v1330_v63 = vpop.f32.mrf.mxu3 }
 0x3dc   : > { %v1353_v47 = vmax.f32 %v1349_v56, %v1330_v63 }
 0x3e3   : > { %v1332_v14 = vpop.f32.mrf.mxu3 }
 0x3e4   : > { %v1354_v10 = vmax.f32 %v1350_v11, %v1332_v14 }
 0x3eb   : > { %v2798_v27 = vpop.f32.mrf.mxu3 }
 0x3ec   : > { %v1355_v25 = vmax.f32 %v1351_v20, %v2798_v27 }
 0x3f3   : > { %v2800_v51 = vpop.f32.mrf.mxu3 }
 0x3f4   : > { %v1356_v4 = vmax.f32 %v1352_v2, %v2800_v51 }
 0x3f6   : > { %v1359_v59 = vmax.f32 %v1355_v25, %v1356_v4 }
 0x3fb   : > { %v2802_v17 = vpop.f32.mrf.mxu3 }
 0x3fc   : > { %v1357_v30 = vmax.f32 %v1353_v47, %v2802_v17 }
 0x403   : > { %v1342_v23 = vpop.f32.mrf.mxu3 }
 0x404   : > { %v1358_v28 = vmax.f32 %v1354_v10, %v1342_v23 }
 0x406   : > { %v1360_v31 = vmax.f32 %v1357_v30, %v1358_v28 }
 0x408   : > { %v1361_v60 = vmax.f32 %v1359_v59, %v1360_v31 }
 0x40a   : > { %v1362_v5 = vrot.slane %v1361_v60, 4 }
 0x40c   : > { %v1363_v7 = vmax.f32 %v1361_v60, %v1362_v5 }
 0x40e   : > { %v1364_v19 = vrot.slane %v1363_v7, 2 }
 0x410   : > { %v1365_v33 = vmax.f32 %v1363_v7, %v1364_v19 }
 0x412   : > { %v1366_v52 = vrot.slane %v1365_v33, 1 }
 0x414   : > { %v1367_v38 = vmax.f32 %v1365_v33, %v1366_v52 }
 0x416   : > { %v2812_v32 = vmax.f32 %v2809_v1, %v1367_v38 }
 0x418   : > { %v1373_v39 = vperm.slane %v2812_v32, 0  ;;  %1477 = vst [vmem:[#allocation3 + $0x3] sm:$0x1] %v2812_v32 }
 0x41a   : > { %v1375_v12 = vsub.f32 %v1305_v35, %v1373_v39  ;;  %v1376_v18 = vsub.f32 %v1307_v44, %v1373_v39  ;;  %v1377_v0 = vsub.f32 %v1310_v40, %v1373_v39  ;;  %v1378_v15 = vsub.f32 %v1312_v9, %v1373_v39 }
 0x41b   : > { %v1379_v13 = vsub.f32 %v1315_v50, %v1373_v39  ;;  %v1380_v43 = vsub.f32 %v1317_v58, %v1373_v39  ;;  %v1381_v34 = vsub.f32 %v1320_v61, %v1373_v39  ;;  %v1382_v45 = vsub.f32 %v1322_v41, %v1373_v39 }
 0x41c   : > { %v1391_v26 = vmul.f32 1.442695, %v1375_v12  ;;  %v1393_v29 = vmul.f32 1.442695, %v1376_v18  ;;  %v1395_v3 = vmul.f32 1.442695, %v1377_v0  ;;  %v1385_v16 = vsub.f32 %v1330_v63, %v1373_v39 }
 0x41d   : > { %v1397_v6 = vmul.f32 1.442695, %v1378_v15  ;;  %v1399_v53 = vmul.f32 1.442695, %v1379_v13  ;;  %v1386_v8 = vsub.f32 %v1332_v14, %v1373_v39  ;;  %v1401_v57 = vmul.f32 1.442695, %v1380_v43 }
 0x41e   : > { %2103 = vpow2.f32 %v1391_v26  ;;  %v1383_v24 = vsub.f32 %v2794_v42, %v1373_v39  ;;  %v1403_v36 = vmul.f32 1.442695, %v1381_v34  ;;  %v1384_v37 = vsub.f32 %v2796_v46, %v1373_v39 }
 0x41f   : > { %2105 = vpow2.f32 %v1393_v29  ;;  %v1405_v55 = vmul.f32 1.442695, %v1382_v45  ;;  %v1389_v35 = vsub.f32 %v2802_v17, %v1373_v39  ;;  %v1411_v22 = vmul.f32 1.442695, %v1385_v16 }
 0x420   : > { %2107 = vpow2.f32 %v1395_v3  ;;  %v1390_v44 = vsub.f32 %v1342_v23, %v1373_v39  ;;  %v1413_v21 = vmul.f32 1.442695, %v1386_v8  ;;  %v1387_v40 = vsub.f32 %v2798_v27, %v1373_v39  ;;  %v1424_v8 = vld [vmem:[#allocation4 + $0x3] sm:$0x1] }
 0x421   : > { %2109 = vpow2.f32 %v1397_v6  ;;  %v1407_v9 = vmul.f32 1.442695, %v1383_v24  ;;  %v1388_v61 = vsub.f32 %v2800_v51, %v1373_v39  ;;  %v1409_v41 = vmul.f32 1.442695, %v1384_v37 }
 0x422   : > { %2111 = vpow2.f32 %v1399_v53  ;;  %v1419_v42 = vmul.f32 1.442695, %v1389_v35  ;;  %v1421_v14 = vmul.f32 1.442695, %v1390_v44  ;;  %v1415_v27 = vmul.f32 1.442695, %v1387_v40 }
 0x423   : > { %2113 = vpow2.f32 %v1401_v57  ;;  %v1417_v56 = vmul.f32 1.442695, %v1388_v61  ;;  %v1369_v18 = vsub.f32 %v2809_v1, %v2812_v32 }
 0x424   : > { %v2818_v49 = vpop.eup %2103  ;;  %2115 = vpow2.f32 %v1403_v36 }
 0x425   : > { %v2821_v62 = vpop.eup %2105  ;;  %2117 = vpow2.f32 %v1405_v55  ;;  %v1370_v26 = vmul.f32 1.442695, %v1369_v18  ;;  %v537_v55 = vld [vmem:[%s2419_s23 + $0xc] sm:$0xf] }
 0x426   : > { %v1426_v50 = vadd.f32 %v2821_v62, %v2818_v49  ;;  %v2826_v58 = vpop.eup %2107  ;;  %2119 = vpow2.f32 %v1411_v22  ;;  %v1449_v36 = vpack.c.bf16 %v2821_v62, %v2818_v49  ;;  %v1470_v22 = vld [vmem:[#allocation2 + $0x8] sm:$0xff] }
 0x427   : > { %v2110_v63 = vpop.eup %2109  ;;  %2121 = vpow2.f32 %v1413_v21 }
 0x428   : > { %v1427_v46 = vadd.f32 %v2826_v58, %v1426_v50  ;;  %v2112_v17 = vpop.eup %2111  ;;  %2123 = vpow2.f32 %v1407_v9  ;;  %v1450_v32 = vpack.c.bf16 %v2110_v63, %v2826_v58 }
 0x429   : > { %v2114_v48 = vpop.eup %2113  ;;  %2125 = vpow2.f32 %v1409_v41 }
 0x42a   : > { %v1428_v54 = vadd.f32 %v2110_v63, %v1427_v46  ;;  %v2116_v11 = vpop.eup %2115  ;;  %2127 = vpow2.f32 %v1419_v42  ;;  %v1451_v6 = vpack.c.bf16 %v2114_v48, %v2112_v17 }
 0x42b   : > { %v2118_v51 = vpop.eup %2117  ;;  %2129 = vpow2.f32 %v1421_v14 }
 0x42c   : > { %v1429_v2 = vadd.f32 %v2112_v17, %v1428_v54  ;;  %v2120_v20 = vpop.eup %2119  ;;  %2131 = vpow2.f32 %v1415_v27  ;;  %v1452_v3 = vpack.c.bf16 %v2118_v51, %v2116_v11 }
 0x42d   : > { %v2122_v10 = vpop.eup %2121  ;;  %2133 = vpow2.f32 %v1417_v56 }
 0x42e   : > { %v1430_v47 = vadd.f32 %v2114_v48, %v1429_v2  ;;  %v2124_v4 = vpop.eup %2123  ;;  %v1454_v25 = vpack.c.bf16 %v2122_v10, %v2120_v20  ;;  %2135 = vpow2.f32 %v1370_v26 }
 0x42f   : > { %v2126_v30 = vpop.eup %2125 }
 0x430   : > { %v1431_v23 = vadd.f32 %v2116_v11, %v1430_v47  ;;  %v2128_v28 = vpop.eup %2127  ;;  %v1453_v13 = vpack.c.bf16 %v2126_v30, %v2124_v4 }
 0x431   : > { %v2130_v31 = vpop.eup %2129 }
 0x432   : > { %v1432_v59 = vadd.f32 %v2118_v51, %v1431_v23  ;;  %v2132_v60 = vpop.eup %2131  ;;  %v1456_v7 = vpack.c.bf16 %v2130_v31, %v2128_v28 }
 0x433   : > { %v2134_v19 = vpop.eup %2133 }
 0x434   : > { %v1433_v5 = vadd.f32 %v2124_v4, %v1432_v59  ;;  %1457 = vmatpush.bf16.msrb.mxu0 %v1456_v7  ;;  %v1455_v38 = vpack.c.bf16 %v2134_v19, %v2132_v60  ;;  %v2136_v53 = vpop.eup %2135 }
 0x435   : > { %v1425_v24 = vmul.f32 %v2136_v53, %v1424_v8  ;;  %v1472_v35 = vperm.slane %v2136_v53, 0 }
 0x436   : > { %v1434_v33 = vadd.f32 %v2126_v30, %v1433_v5 }
 0x437   : > { %v1474_v44 = vmul.f32 %v1472_v35, %v1470_v22 }
 0x438   : > { %v1435_v52 = vadd.f32 %v2120_v20, %v1434_v33  ;;  %1458 = vmatpush.bf16.msrb.mxu0 %v1455_v38 }
 0x43a   : > { %v1436_v39 = vadd.f32 %v2122_v10, %v1435_v52 }
 0x43c   : > { %v1437_v12 = vadd.f32 %v2132_v60, %v1436_v39  ;;  %1459 = vmatpush.bf16.msrb.mxu0 %v1454_v25 }
 0x43e   : > { %v1438_v0 = vadd.f32 %v2134_v19, %v1437_v12 }
 0x440   : > { %v1439_v15 = vadd.f32 %v2128_v28, %v1438_v0  ;;  %1460 = vmatpush.bf16.msrb.mxu0 %v1453_v13 }
 0x442   : > { %v1440_v29 = vadd.f32 %v2130_v31, %v1439_v15 }
 0x444   : > { %v1441_v43 = vrot.slane %v1440_v29, 4  ;;  %1461 = vmatpush.bf16.msrb.mxu0 %v1452_v3 }
 0x446   : > { %v1442_v34 = vadd.f32 %v1441_v43, %v1440_v29 }
 0x448   : > { %v1443_v45 = vrot.slane %v1442_v34, 2  ;;  %1462 = vmatpush.bf16.msrb.mxu0 %v1451_v6 }
 0x44a   : > { %v1444_v16 = vadd.f32 %v1443_v45, %v1442_v34 }
 0x44c   : > { %v1445_v1 = vrot.slane %v1444_v16, 1  ;;  %1463 = vmatpush.bf16.msrb.mxu0 %v1450_v32 }
 0x44e   : > { %v1446_v57 = vadd.f32 %v1445_v1, %v1444_v16 }
 0x450   : > { %v1447_v37 = vadd.f32 %v1446_v57, %v1425_v24  ;;  %1464 = vmatpush.bf16.msrb.mxu0 %v1449_v36 }
 0x452   : > { %1448 = vst [vmem:[#allocation4 + $0x3] sm:$0x1] %v1447_v37 }
 0x453   : > { %1465 = vmatmul.bf16.vlgmr.msrb.gmra.mxu0 %v537_v55 }
 0x4d0   : > { %v1466_v21 = vpop.f32.mrf.mxu0 }
 0x4d1   : > { %v1475_v40 = vadd.f32 %v1474_v44, %v1466_v21 }
 0x4d3   : > { %1476 = vst [vmem:[#allocation2 + $0x8] sm:$0xff] %v1475_v40 }
 0x4d4   : > { %1481 = sbr.rel (%p1879_p5) target bundleno = 1403 (0x57b), region = 172 }
 0x4d8   : > { %v1468_v9 = vpop.f32.mrf.mxu0 }
 0x4d9   : > { %v1499_v50 = vld [vmem:[#allocation4 + $0x2] sm:$0x1]  ;;  %v1507_v58 = vld [vmem:[#allocation4 + $0x3] sm:$0x1]  ;;  %v1483_v61 = vld [vmem:[#allocation4] sm:$0x1] }
 0x4da   : > { %2139 = vrcp.f32 %v1499_v50  ;;  %v2240_v49 = vmov 0   ;;  %v1491_v62 = vld [vmem:[#allocation4 + $0x1] sm:$0x1]  ;;  %v1526_v41 = vld [vmem:[%s2912_s5 + $0x10] sm:$0xff]  ;;  %v1498_v63 = vld [vmem:[#allocation2 + $0x18] sm:$0xff]  ;;  %vm1558_vm2 = vcmask 261120  }
 0x4db   : > { %2138 = vset.pattern.permute.xlu1 %v2240_v49  ;;  %2137 = vset.pattern.permute.xlu0 %v2240_v49  ;;  %2141 = vrcp.f32 %v1507_v58  ;;  %v1524_v42 = vld [vmem:[%s2912_s5] sm:$0xff]  ;;  %v1506_v27 = vld [vmem:[#allocation2 + $0x8] sm:$0xff]  ;;  %v1482_v56 = vld [vmem:[#allocation2 + $0x10] sm:$0xff] }
 0x4dc   : > { %2143 = vrcp.f32 %v1483_v61  ;;  %1540 = vperm.xlu1 %2138, %v1526_v41   ;;  %1530 = vperm.xlu0 %2137, %v1524_v42   ;;  %v1527_v11 = vld [vmem:[%s2912_s5 + $0x18] sm:$0xff]  ;;  %v1525_v2 = vld [vmem:[%s2912_s5 + $0x8] sm:$0xff]  ;;  %v1490_v10 = vld [vmem:[#allocation2] sm:$0xff] }
 0x4dd   : > { %2145 = vrcp.f32 %v1491_v62  ;;  %v1903_v31 = vld [vmem:[%s2911_s4] sm:$0xff]  ;;  %v1904_v60 = vld [vmem:[%s2911_s4 + $0x8] sm:$0xff]  ;;  %v1586_v38 = vld [vmem:[%s2421_s21 + $0x10] sm:$0xff] }
 0x4de   : > { %v1584_v33 = vld [vmem:[%s2421_s21] sm:$0xff]  ;;  %v1585_v29 = vld [vmem:[%s2421_s21 + $0x8] sm:$0xff]  ;;  %v1587_v3 = vld [vmem:[%s2421_s21 + $0x18] sm:$0xff] }
 0x4e0   : > { %v2140_v46 = vpop.eup %2139 }
 0x4e1   : > { %v2142_v14 = vpop.eup %2141  ;;  %v1502_v17 = vperm.slane %v2140_v46, 0 }
 0x4e2   : > { %v2144_v54 = vpop.eup %2143  ;;  %v1510_v48 = vperm.slane %v2142_v14, 0 }
 0x4e3   : > { %v2146_v51 = vpop.eup %2145  ;;  %v1504_v20 = vmul.f32 %v1502_v17, %v1498_v63  ;;  %v1486_v47 = vperm.slane %v2144_v54, 0 }
 0x4e4   : > { %v1512_v4 = vmul.f32 %v1510_v48, %v1506_v27  ;;  %v1494_v23 = vperm.slane %v2146_v51, 0  ;;  %1545 = vperm.xlu1 %2138, %v1527_v11   ;;  %1535 = vperm.xlu0 %2137, %v1525_v2  }
 0x4e5   : > { %1505 = vst [vmem:[#allocation2 + $0x18] sm:$0xff] %v1504_v20  ;;  %v1488_v25 = vmul.f32 %v1486_v47, %v1482_v56 }
 0x4e6   : > { %1513 = vst [vmem:[#allocation2 + $0x8] sm:$0xff] %v1512_v4  ;;  %v1519_v30 = vpack.c.bf16 %v1512_v4, %v1504_v20  ;;  %v1496_v28 = vmul.f32 %v1494_v23, %v1490_v10 }
 0x4e7   : > { %1489 = vst [vmem:[#allocation2 + $0x10] sm:$0xff] %v1488_v25 }
 0x4e8   : > { %1571 = vmatpush.bf16.msra.mxu0 %v1519_v30  ;;  %1905 = vmatpush.bf16.msra.mxu1 %v1519_v30  ;;  %1497 = vst [vmem:[#allocation2] sm:$0xff] %v1496_v28  ;;  %v1518_v59 = vpack.c.bf16 %v1496_v28, %v1488_v25 }
 0x4ec   : > { %1572 = vmatpush.bf16.msra.mxu0 %v1518_v59  ;;  %1906 = vmatpush.bf16.msra.mxu1 %v1518_v59 }
 0x4ef   : > { %1888 = vmatmul.msk.bf16.vlgmr.msra.gmra.mxu0 %vm1558_vm2, %v1903_v31  ;;  %1889 = vmatmul.msk.bf16.vlgmr.msra.gmra.mxu1 %vm1558_vm2, %v1904_v60 }
 0x54e   : > { %v1541_v5 = vpop.permute.xlu1 %1540  ;;  %v1531_v7 = vpop.permute.xlu0 %1530 }
 0x556   : > { %v1546_v15 = vpop.permute.xlu1 %1545  ;;  %v1536_v13 = vpop.permute.xlu0 %1535 }
 0x56c   : > { %v1574_v19 = vpop.f32.mrf.mxu0  ;;  %v1579_v52 = vpop.f32.mrf.mxu1 }
 0x56d   : > { %v1575_v39 = vadd.f32 %v1574_v19, %v1531_v7  ;;  %v1580_v12 = vadd.f32 %v1579_v52, %v1541_v5 }
 0x56f   : > { %v1588_v18 = vadd.f32 %v1584_v33, %v1575_v39  ;;  %v1590_v0 = vadd.f32 %v1586_v38, %v1580_v12 }
 0x571   : > { %1592 = vst [vmem:[%s2423_s12] sm:$0xff] %v1588_v18 }
 0x572   : > { %1594 = vst [vmem:[%s2423_s12 + $0x10] sm:$0xff] %v1590_v0 }
 0x574   : > { %v1576_v26 = vpop.f32.mrf.mxu0  ;;  %v1581_v43 = vpop.f32.mrf.mxu1 }
 0x575   : > { %v1577_v34 = vadd.f32 %v1576_v26, %v1536_v13  ;;  %v1582_v45 = vadd.f32 %v1581_v43, %v1546_v15 }
 0x577   : > { %v1589_v6 = vadd.f32 %v1585_v29, %v1577_v34  ;;  %v1591_v16 = vadd.f32 %v1587_v3, %v1582_v45 }
 0x579   : > { %1593 = vst [vmem:[%s2423_s12 + $0x8] sm:$0xff] %v1589_v6 }
 0x57a   : > { %1595 = vst [vmem:[%s2423_s12 + $0x18] sm:$0xff] %v1591_v16 }
 0x57b PF: > { %1602 = sbr.rel (!%p2367_p9) target bundleno = 1416 (0x588), region = 176  ;;  %s2929_s26 = sld [smem:[#allocation9_spill]] (%p2367_p9)  ;;  %v1641_v53 = vld [vmem:[%s2423_s12] sm:$0xff] (%p2367_p9)  ;;  %v1645_v1 = vld [vmem:[%s2423_s12 + $0x10] sm:$0xff] (%p2367_p9) }
 0x57c   : > { %s1891_s16 = sshll.u32 (%p2367_p9), %s2217_s27, 3  ;;  %s2930_s19 = sld [smem:[#allocation15_spill]] (%p2367_p9) }
 0x580   : > { %v1643_v8 = vld [vmem:[%s2423_s12 + $0x8] sm:$0xff] }
 0x581   : > { %s1604_s15 = sadd.s32 %s2929_s26, %s1891_s16  ;;  %v1647_v32 = vld [vmem:[%s2423_s12 + $0x18] sm:$0xff] }
 0x582   : > { %s1892_s21 = sshll.u32 %s1604_s15, 3 }
 0x583   : > { %s1606_s6 = scalar_lea.vmem %s2930_s19, %s1892_s21 }
 0x584   : > { %1642 = vst [vmem:[%s1606_s6] sm:$0xff] %v1641_v53 }
 0x585   : > { %1644 = vst [vmem:[%s1606_s6 + $0x10] sm:$0xff] %v1643_v8 }
 0x586   : > { %1646 = vst [vmem:[%s1606_s6 + $0x20] sm:$0xff] %v1645_v1 }
 0x587   : > { %1648 = vst [vmem:[%s1606_s6 + $0x30] sm:$0xff] %v1647_v32 }
 0x588 PF: > { %s16_s7 = sadd.s32 1, %s2233_s7   ;;  %s2931_s17 = sld [smem:[#allocation10_spill]] }
 0x589   : > { %p13_p6 = scmp.ge.s32.totalorder %s16_s7, 10   ;;  %s2932_s10 = sld [smem:[#allocation11_spill]] }
 0x58a   : > { %s2933_s14 = sld [smem:[#allocation12_spill]]  ;;  %s2934_s21 = smov %s2197_s22 }
 0x58b   : > { %s2935_s22 = smov %s2378_s9  ;;  %s2936_s23 = smov %s2205_s24 }
 0x58c   : > { %s2937_s24 = smov %s2375_s11  ;;  %s2938_s25 = smov %s2221_s28 }
 0x58d   : > { %s2939_s26 = smov %s2225_s29  ;;  %s2940_s27 = smov %s2229_s30 }
 0x58e   : > { %s2941_s28 = smov %s2931_s17  ;;  %15 = sbr.rel (!%p13_p6) target bundleno = 10 (0xa), region = 270 }
 0x58f   : > { %s2942_s29 = smov %s2932_s10 }
 0x590   : > { %s2943_s30 = smov %s2933_s14 }

</bundles_post_ra>
